<compile_context>
chip_gen: v5e
topology: v5e:2x2
jax: 0.10.0
libtpu: 0.0.40
codegen_flags: <defaults>
</compile_context>

<pallas_src>
import jax
import jax.numpy as jnp
from jax import lax
from jax.experimental import pallas as pl
from jax.experimental.pallas import tpu as pltpu


def _make_visionnet_kernel(num_layers, S, B, H):
    """Builds the fused all-layer bidirectional LSTM kernel for static (S, B, H)."""
    H2, H3, H4, H8 = 2 * H, 3 * H, 4 * H, 8 * H

    def kernel(x_ref, *args):
        # args = [wih_0, whh_f_0, whh_b_0, b_0, ..., wih_{L-1}, ..., out_ref]
        out_ref = args[-1]
        prm = args[:-1]

        cur = x_ref[...]                                   # (S*B, Din0), time-major rows

        for l in range(num_layers):
            wih   = prm[4 * l + 0][...]                    # (Din_l, 8H)  [fwd i,f,o,g | bwd i,f,o,g]
            whh_f = prm[4 * l + 1][...]                    # (H, 4H)      [i,f,o,g]
            whh_b = prm[4 * l + 2][...]                    # (H, 4H)
            bias  = prm[4 * l + 3][...]                    # (1, 8H)

            # Hoisted input projection: ONE MXU matmul for every timestep & both dirs.
            gx = jnp.dot(cur, wih, preferred_element_type=jnp.float32) + bias   # (S*B, 8H)

            # Per-step gate-input slices, pre-extracted (no dependence on the
            # recurrence -> off the serial critical path). Backward direction is
            # handled purely by index arithmetic (time S-1-k), no flips.
            gx_f = [gx[k * B:(k + 1) * B, 0:H4] for k in range(S)]
            gx_b = [gx[(S - 1 - k) * B:(S - k) * B, H4:H8] for k in range(S)]

            h_f = jnp.zeros((B, H), jnp.float32)
            c_f = jnp.zeros((B, H), jnp.float32)
            h_b = jnp.zeros((B, H), jnp.float32)
            c_b = jnp.zeros((B, H), jnp.float32)
            hs_f, hs_b = [], []

            # Fully unrolled recurrence (S is small and static).
            # NOTE: at larger S/H, switch to lax.fori_loop(unroll=True) + VMEM
            # scratch accumulators to bound live ranges (review item 7).
            for k in range(S):
                gf = gx_f[k] + jnp.dot(h_f, whh_f, preferred_element_type=jnp.float32)  # (B, 4H)
                gb = gx_b[k] + jnp.dot(h_b, whh_b, preferred_element_type=jnp.float32)  # (B, 4H)

                # sigmoid only on the contiguous [i|f|o] block, tanh only on g.
                sf = jax.nn.sigmoid(gf[:, 0:H3])
                sb = jax.nn.sigmoid(gb[:, 0:H3])
                gf_t = jnp.tanh(gf[:, H3:H4])
                gb_t = jnp.tanh(gb[:, H3:H4])

                c_f = sf[:, H:H2] * c_f + sf[:, 0:H] * gf_t
                h_f = sf[:, H2:H3] * jnp.tanh(c_f)
                c_b = sb[:, H:H2] * c_b + sb[:, 0:H] * gb_t
                h_b = sb[:, H2:H3] * jnp.tanh(c_b)

                hs_f.append(h_f)        # fwd hidden for time k
                hs_b.append(h_b)        # bwd hidden for time S-1-k

            # Single assembly per layer (3 concatenates), time-major rows:
            fwd_all = jnp.concatenate(hs_f, axis=0)              # (S*B, H)
            bwd_all = jnp.concatenate(hs_b[::-1], axis=0)        # (S*B, H), back to time order
            cur = jnp.concatenate([fwd_all, bwd_all], axis=-1)   # (S*B, 2H)

        # Single HBM writeback for the whole network.
        out_ref[...] = cur

    return kernel


def visionnet_forward(x, fused_params):
    """x: (batch, seq, in_size) -> hiddens (seq, batch, 2H) (squeezed if batch==1)."""
    Bsz, S, Din = x.shape
    H = fused_params[0][1].shape[0]           # whh_f: (H, 4H)
    num_layers = len(fused_params)

    # torch.transpose(x, 0, 1): (B,S,D) -> (S,B,D); flatten time-major for the kernel.
    # (Kept in the wrapper: folding it into the kernel buys nothing at this size —
    #  review item 10 — and batch-major in-kernel addressing would add per-step shuffles.)
    x_flat = jnp.transpose(x, (1, 0, 2)).reshape(S * Bsz, Din).astype(jnp.float32)

    flat_params = [p for layer_params in fused_params for p in layer_params]
    kernel = _make_visionnet_kernel(num_layers, S, Bsz, H)

    n_in = 1 + len(flat_params)
    out = pl.pallas_call(
        kernel,
        out_shape=jax.ShapeDtypeStruct((S * Bsz, 2 * H), jnp.float32),
        in_specs=[pl.BlockSpec(memory_space=pltpu.MemorySpace.VMEM) for _ in range(n_in)],
        out_specs=pl.BlockSpec(memory_space=pltpu.MemorySpace.VMEM),
    )(x_flat, *flat_params)

    out = out.reshape(S, Bsz, 2 * H)
    # torch's .squeeze(1): only squeezes if that dim is size 1
    if out.shape[1] == 1:
        out = jnp.squeeze(out, axis=1)
    return out


# ---------------- parameter construction ----------------
def init_lstm_params(key, input_size, hidden_size, num_layers):
    """Raw PyTorch-layout params: per layer, per direction (w_ih, w_hh, b_ih, b_hh)."""
    stdv = 1.0 / (hidden_size ** 0.5)
    params = []
    for layer in range(num_layers):
        layer_in = input_size if layer == 0 else 2 * hidden_size
        dirs = []
        for _ in range(2):
            key, k1, k2, k3, k4 = jax.random.split(key, 5)
            w_ih = jax.random.uniform(k1, (4 * hidden_size, layer_in),
                                      minval=-stdv, maxval=stdv, dtype=jnp.float32)
            w_hh = jax.random.uniform(k2, (4 * hidden_size, hidden_size),
                                      minval=-stdv, maxval=stdv, dtype=jnp.float32)
            b_ih = jax.random.uniform(k3, (4 * hidden_size,),
                                      minval=-stdv, maxval=stdv, dtype=jnp.float32)
            b_hh = jax.random.uniform(k4, (4 * hidden_size,),
                                      minval=-stdv, maxval=stdv, dtype=jnp.float32)
            dirs.append((w_ih, w_hh, b_ih, b_hh))
        params.append(dirs)
    return params


def fuse_layer_params(dir_params):
    """Fused per-layer kernel params with gate columns reordered to [i | f | o | g].

    Returns (wih_cat (Din,8H), whh_f (H,4H), whh_b (H,4H), bias_cat (1,8H)).
    Column layout of the 8H axis: [fwd i,f,o,g | bwd i,f,o,g], each block H wide.
    """
    (wif, whf, bif, bhf), (wib, whb, bib, bhb) = dir_params
    H = whf.shape[1]

    def reorder_cols(w_t):   # (X, 4H) in torch order [i,f,g,o] -> [i,f,o,g]
        return jnp.concatenate([w_t[:, 0:H], w_t[:, H:2 * H],
                                w_t[:, 3 * H:4 * H], w_t[:, 2 * H:3 * H]], axis=1)

    def reorder_bias(b_i, b_h):
        b = b_i + b_h
        return jnp.concatenate([b[0:H], b[H:2 * H], b[3 * H:4 * H], b[2 * H:3 * H]])

    wih_cat = jnp.concatenate([reorder_cols(wif.T), reorder_cols(wib.T)], axis=1)  # (Din, 8H)
    whh_f = reorder_cols(whf.T)                                                    # (H, 4H)
    whh_b = reorder_cols(whb.T)                                                    # (H, 4H)
    bias_cat = jnp.concatenate([reorder_bias(bif, bhf),
                                reorder_bias(bib, bhb)])[None, :]                  # (1, 8H)
    return wih_cat, whh_f, whh_b, bias_cat


# ---------------- pure-JAX reference (correctness check only) ----------------
def _lstm_dir_ref(x_seq, w_ih, w_hh, b_ih, b_hh):
    S, B, _ = x_seq.shape
    H = w_hh.shape[1]
    wih_t, whh_t = w_ih.T, w_hh.T
    b = (b_ih + b_hh)[None, :]

    def step(carry, x_t):
        h, c = carry
        gates = (jnp.dot(x_t, wih_t, precision=lax.Precision.HIGHEST)
                 + jnp.dot(h, whh_t, precision=lax.Precision.HIGHEST) + b)
        i_g = jax.nn.sigmoid(gates[:, 0 * H:1 * H])
        f_g = jax.nn.sigmoid(gates[:, 1 * H:2 * H])
        g_g = jnp.tanh(gates[:, 2 * H:3 * H])
        o_g = jax.nn.sigmoid(gates[:, 3 * H:4 * H])
        c = f_g * c + i_g * g_g
        h = o_g * jnp.tanh(c)
        return (h, c), h

    init = (jnp.zeros((B, H), jnp.float32), jnp.zeros((B, H), jnp.float32))
    _, hs = lax.scan(step, init, x_seq)
    return hs


def _visionnet_ref(x, raw_params):
    h = jnp.transpose(x, (1, 0, 2)).astype(jnp.float32)
    for dir_params in raw_params:
        fwd = _lstm_dir_ref(h, *dir_params[0])
        bwd = jnp.flip(_lstm_dir_ref(jnp.flip(h, axis=0), *dir_params[1]), axis=0)
        h = jnp.concatenate([fwd, bwd], axis=-1)
    if h.shape[1] == 1:
        h = jnp.squeeze(h, axis=1)
    return h


if __name__ == "__main__":
    key = jax.random.PRNGKey(0)
    batch, seq_len, input_size = 2, 8, 16
    hidden_size, num_layers = 32, 2

    k_x, k_p = jax.random.split(key)
    x = jax.random.normal(k_x, (batch, seq_len, input_size), dtype=jnp.float32)

    raw_params = init_lstm_params(k_p, input_size, hidden_size, num_layers)
    fused_params = [fuse_layer_params(lp) for lp in raw_params]

    out = jax.block_until_ready(visionnet_forward(x, fused_params))
    ref = jax.block_until_ready(_visionnet_ref(x, raw_params))

    assert out.shape == (seq_len, batch, 2 * hidden_size), out.shape
    assert jnp.allclose(out, ref, atol=1e-4, rtol=1e-4), "mismatch vs reference"

    print("KERNEL_OK")
</pallas_src>

<mosaic_0001>
module attributes {stable_mosaic.version = 11 : i64} {
  func.func @kernel(%arg0: memref<16x16xf32, #tpu.memory_space<vmem>>, %arg1: memref<16x256xf32, #tpu.memory_space<vmem>>, %arg2: memref<32x128xf32, #tpu.memory_space<vmem>>, %arg3: memref<32x128xf32, #tpu.memory_space<vmem>>, %arg4: memref<1x256xf32, #tpu.memory_space<vmem>>, %arg5: memref<64x256xf32, #tpu.memory_space<vmem>>, %arg6: memref<32x128xf32, #tpu.memory_space<vmem>>, %arg7: memref<32x128xf32, #tpu.memory_space<vmem>>, %arg8: memref<1x256xf32, #tpu.memory_space<vmem>>, %arg9: memref<16x64xf32, #tpu.memory_space<vmem>>) attributes {dimension_semantics = [], scalar_prefetch = 0 : i64, scratch_operands = 0 : i64, tpu.core_type = #tpu.core_type<tc>} {
    %c0 = arith.constant 0 : index
    %c0_0 = arith.constant 0 : index
    %0 = vector.load %arg0[%c0, %c0_0] : memref<16x16xf32, #tpu.memory_space<vmem>>, vector<16x16xf32>
    %c0_1 = arith.constant 0 : index
    %c0_2 = arith.constant 0 : index
    %1 = vector.load %arg1[%c0_1, %c0_2] : memref<16x256xf32, #tpu.memory_space<vmem>>, vector<16x256xf32>
    %c0_3 = arith.constant 0 : index
    %c0_4 = arith.constant 0 : index
    %2 = vector.load %arg2[%c0_3, %c0_4] : memref<32x128xf32, #tpu.memory_space<vmem>>, vector<32x128xf32>
    %c0_5 = arith.constant 0 : index
    %c0_6 = arith.constant 0 : index
    %3 = vector.load %arg3[%c0_5, %c0_6] : memref<32x128xf32, #tpu.memory_space<vmem>>, vector<32x128xf32>
    %c0_7 = arith.constant 0 : index
    %c0_8 = arith.constant 0 : index
    %4 = vector.load %arg4[%c0_7, %c0_8] : memref<1x256xf32, #tpu.memory_space<vmem>>, vector<1x256xf32>
    %cst = arith.constant dense<0.000000e+00> : vector<16x256xf32>
    %5 = tpu.matmul %0, %1, %cst {dimension_numbers = #tpu.dot_dimension_numbers<[1], [0], [0], [1], [0, 0, 1, 1], [], []>} : vector<16x16xf32>, vector<16x256xf32>, vector<16x256xf32> -> vector<16x256xf32>
    %6 = vector.broadcast %4 : vector<1x256xf32> to vector<16x256xf32>
    %7 = arith.addf %5, %6 : vector<16x256xf32>
    %8 = vector.extract_strided_slice %7 {offsets = [0, 0], sizes = [2, 128], strides = [1, 1]} : vector<16x256xf32> to vector<2x128xf32>
    %9 = vector.extract_strided_slice %7 {offsets = [2, 0], sizes = [2, 128], strides = [1, 1]} : vector<16x256xf32> to vector<2x128xf32>
    %10 = vector.extract_strided_slice %7 {offsets = [4, 0], sizes = [2, 128], strides = [1, 1]} : vector<16x256xf32> to vector<2x128xf32>
    %11 = vector.extract_strided_slice %7 {offsets = [6, 0], sizes = [2, 128], strides = [1, 1]} : vector<16x256xf32> to vector<2x128xf32>
    %12 = vector.extract_strided_slice %7 {offsets = [8, 0], sizes = [2, 128], strides = [1, 1]} : vector<16x256xf32> to vector<2x128xf32>
    %13 = vector.extract_strided_slice %7 {offsets = [10, 0], sizes = [2, 128], strides = [1, 1]} : vector<16x256xf32> to vector<2x128xf32>
    %14 = vector.extract_strided_slice %7 {offsets = [12, 0], sizes = [2, 128], strides = [1, 1]} : vector<16x256xf32> to vector<2x128xf32>
    %15 = vector.extract_strided_slice %7 {offsets = [14, 0], sizes = [2, 128], strides = [1, 1]} : vector<16x256xf32> to vector<2x128xf32>
    %16 = vector.extract_strided_slice %7 {offsets = [14, 128], sizes = [2, 128], strides = [1, 1]} : vector<16x256xf32> to vector<2x128xf32>
    %17 = vector.extract_strided_slice %7 {offsets = [12, 128], sizes = [2, 128], strides = [1, 1]} : vector<16x256xf32> to vector<2x128xf32>
    %18 = vector.extract_strided_slice %7 {offsets = [10, 128], sizes = [2, 128], strides = [1, 1]} : vector<16x256xf32> to vector<2x128xf32>
    %19 = vector.extract_strided_slice %7 {offsets = [8, 128], sizes = [2, 128], strides = [1, 1]} : vector<16x256xf32> to vector<2x128xf32>
    %20 = vector.extract_strided_slice %7 {offsets = [6, 128], sizes = [2, 128], strides = [1, 1]} : vector<16x256xf32> to vector<2x128xf32>
    %21 = vector.extract_strided_slice %7 {offsets = [4, 128], sizes = [2, 128], strides = [1, 1]} : vector<16x256xf32> to vector<2x128xf32>
    %22 = vector.extract_strided_slice %7 {offsets = [2, 128], sizes = [2, 128], strides = [1, 1]} : vector<16x256xf32> to vector<2x128xf32>
    %23 = vector.extract_strided_slice %7 {offsets = [0, 128], sizes = [2, 128], strides = [1, 1]} : vector<16x256xf32> to vector<2x128xf32>
    %cst_9 = arith.constant 0.000000e+00 : f32
    %24 = vector.broadcast %cst_9 : f32 to vector<2x32xf32>
    %cst_10 = arith.constant 0.000000e+00 : f32
    %25 = vector.broadcast %cst_10 : f32 to vector<2x32xf32>
    %cst_11 = arith.constant 0.000000e+00 : f32
    %26 = vector.broadcast %cst_11 : f32 to vector<2x32xf32>
    %cst_12 = arith.constant 0.000000e+00 : f32
    %27 = vector.broadcast %cst_12 : f32 to vector<2x32xf32>
    %cst_13 = arith.constant dense<0.000000e+00> : vector<2x128xf32>
    %28 = tpu.matmul %24, %2, %cst_13 {dimension_numbers = #tpu.dot_dimension_numbers<[1], [0], [0], [1], [0, 0, 1, 1], [], []>} : vector<2x32xf32>, vector<32x128xf32>, vector<2x128xf32> -> vector<2x128xf32>
    %29 = arith.addf %8, %28 : vector<2x128xf32>
    %cst_14 = arith.constant dense<0.000000e+00> : vector<2x128xf32>
    %30 = tpu.matmul %26, %3, %cst_14 {dimension_numbers = #tpu.dot_dimension_numbers<[1], [0], [0], [1], [0, 0, 1, 1], [], []>} : vector<2x32xf32>, vector<32x128xf32>, vector<2x128xf32> -> vector<2x128xf32>
    %31 = arith.addf %16, %30 : vector<2x128xf32>
    %32 = vector.extract_strided_slice %29 {offsets = [0, 0], sizes = [2, 96], strides = [1, 1]} : vector<2x128xf32> to vector<2x96xf32>
    %33 = arith.negf %32 : vector<2x96xf32>
    %34 = math.exp %33 : vector<2x96xf32>
    %cst_15 = arith.constant 1.000000e+00 : f32
    %35 = vector.broadcast %cst_15 : f32 to vector<2x96xf32>
    %36 = arith.addf %35, %34 : vector<2x96xf32>
    %37 = arith.divf %35, %36 : vector<2x96xf32>
    %38 = vector.extract_strided_slice %31 {offsets = [0, 0], sizes = [2, 96], strides = [1, 1]} : vector<2x128xf32> to vector<2x96xf32>
    %39 = arith.negf %38 : vector<2x96xf32>
    %40 = math.exp %39 : vector<2x96xf32>
    %cst_16 = arith.constant 1.000000e+00 : f32
    %41 = vector.broadcast %cst_16 : f32 to vector<2x96xf32>
    %42 = arith.addf %41, %40 : vector<2x96xf32>
    %43 = arith.divf %41, %42 : vector<2x96xf32>
    %44 = vector.extract_strided_slice %29 {offsets = [0, 96], sizes = [2, 32], strides = [1, 1]} : vector<2x128xf32> to vector<2x32xf32>
    %45 = math.tanh %44 : vector<2x32xf32>
    %46 = vector.extract_strided_slice %31 {offsets = [0, 96], sizes = [2, 32], strides = [1, 1]} : vector<2x128xf32> to vector<2x32xf32>
    %47 = math.tanh %46 : vector<2x32xf32>
    %48 = vector.extract_strided_slice %37 {offsets = [0, 32], sizes = [2, 32], strides = [1, 1]} : vector<2x96xf32> to vector<2x32xf32>
    %49 = arith.mulf %48, %25 : vector<2x32xf32>
    %50 = vector.extract_strided_slice %37 {offsets = [0, 0], sizes = [2, 32], strides = [1, 1]} : vector<2x96xf32> to vector<2x32xf32>
    %51 = arith.mulf %50, %45 : vector<2x32xf32>
    %52 = arith.addf %49, %51 : vector<2x32xf32>
    %53 = vector.extract_strided_slice %37 {offsets = [0, 64], sizes = [2, 32], strides = [1, 1]} : vector<2x96xf32> to vector<2x32xf32>
    %54 = math.tanh %52 : vector<2x32xf32>
    %55 = arith.mulf %53, %54 : vector<2x32xf32>
    %56 = vector.extract_strided_slice %43 {offsets = [0, 32], sizes = [2, 32], strides = [1, 1]} : vector<2x96xf32> to vector<2x32xf32>
    %57 = arith.mulf %56, %27 : vector<2x32xf32>
    %58 = vector.extract_strided_slice %43 {offsets = [0, 0], sizes = [2, 32], strides = [1, 1]} : vector<2x96xf32> to vector<2x32xf32>
    %59 = arith.mulf %58, %47 : vector<2x32xf32>
    %60 = arith.addf %57, %59 : vector<2x32xf32>
    %61 = vector.extract_strided_slice %43 {offsets = [0, 64], sizes = [2, 32], strides = [1, 1]} : vector<2x96xf32> to vector<2x32xf32>
    %62 = math.tanh %60 : vector<2x32xf32>
    %63 = arith.mulf %61, %62 : vector<2x32xf32>
    %cst_17 = arith.constant dense<0.000000e+00> : vector<2x128xf32>
    %64 = tpu.matmul %55, %2, %cst_17 {dimension_numbers = #tpu.dot_dimension_numbers<[1], [0], [0], [1], [0, 0, 1, 1], [], []>} : vector<2x32xf32>, vector<32x128xf32>, vector<2x128xf32> -> vector<2x128xf32>
    %65 = arith.addf %9, %64 : vector<2x128xf32>
    %cst_18 = arith.constant dense<0.000000e+00> : vector<2x128xf32>
    %66 = tpu.matmul %63, %3, %cst_18 {dimension_numbers = #tpu.dot_dimension_numbers<[1], [0], [0], [1], [0, 0, 1, 1], [], []>} : vector<2x32xf32>, vector<32x128xf32>, vector<2x128xf32> -> vector<2x128xf32>
    %67 = arith.addf %17, %66 : vector<2x128xf32>
    %68 = vector.extract_strided_slice %65 {offsets = [0, 0], sizes = [2, 96], strides = [1, 1]} : vector<2x128xf32> to vector<2x96xf32>
    %69 = arith.negf %68 : vector<2x96xf32>
    %70 = math.exp %69 : vector<2x96xf32>
    %cst_19 = arith.constant 1.000000e+00 : f32
    %71 = vector.broadcast %cst_19 : f32 to vector<2x96xf32>
    %72 = arith.addf %71, %70 : vector<2x96xf32>
    %73 = arith.divf %71, %72 : vector<2x96xf32>
    %74 = vector.extract_strided_slice %67 {offsets = [0, 0], sizes = [2, 96], strides = [1, 1]} : vector<2x128xf32> to vector<2x96xf32>
    %75 = arith.negf %74 : vector<2x96xf32>
    %76 = math.exp %75 : vector<2x96xf32>
    %cst_20 = arith.constant 1.000000e+00 : f32
    %77 = vector.broadcast %cst_20 : f32 to vector<2x96xf32>
    %78 = arith.addf %77, %76 : vector<2x96xf32>
    %79 = arith.divf %77, %78 : vector<2x96xf32>
    %80 = vector.extract_strided_slice %65 {offsets = [0, 96], sizes = [2, 32], strides = [1, 1]} : vector<2x128xf32> to vector<2x32xf32>
    %81 = math.tanh %80 : vector<2x32xf32>
    %82 = vector.extract_strided_slice %67 {offsets = [0, 96], sizes = [2, 32], strides = [1, 1]} : vector<2x128xf32> to vector<2x32xf32>
    %83 = math.tanh %82 : vector<2x32xf32>
    %84 = vector.extract_strided_slice %73 {offsets = [0, 32], sizes = [2, 32], strides = [1, 1]} : vector<2x96xf32> to vector<2x32xf32>
    %85 = arith.mulf %84, %52 : vector<2x32xf32>
    %86 = vector.extract_strided_slice %73 {offsets = [0, 0], sizes = [2, 32], strides = [1, 1]} : vector<2x96xf32> to vector<2x32xf32>
    %87 = arith.mulf %86, %81 : vector<2x32xf32>
    %88 = arith.addf %85, %87 : vector<2x32xf32>
    %89 = vector.extract_strided_slice %73 {offsets = [0, 64], sizes = [2, 32], strides = [1, 1]} : vector<2x96xf32> to vector<2x32xf32>
    %90 = math.tanh %88 : vector<2x32xf32>
    %91 = arith.mulf %89, %90 : vector<2x32xf32>
    %92 = vector.extract_strided_slice %79 {offsets = [0, 32], sizes = [2, 32], strides = [1, 1]} : vector<2x96xf32> to vector<2x32xf32>
    %93 = arith.mulf %92, %60 : vector<2x32xf32>
    %94 = vector.extract_strided_slice %79 {offsets = [0, 0], sizes = [2, 32], strides = [1, 1]} : vector<2x96xf32> to vector<2x32xf32>
    %95 = arith.mulf %94, %83 : vector<2x32xf32>
    %96 = arith.addf %93, %95 : vector<2x32xf32>
    %97 = vector.extract_strided_slice %79 {offsets = [0, 64], sizes = [2, 32], strides = [1, 1]} : vector<2x96xf32> to vector<2x32xf32>
    %98 = math.tanh %96 : vector<2x32xf32>
    %99 = arith.mulf %97, %98 : vector<2x32xf32>
    %cst_21 = arith.constant dense<0.000000e+00> : vector<2x128xf32>
    %100 = tpu.matmul %91, %2, %cst_21 {dimension_numbers = #tpu.dot_dimension_numbers<[1], [0], [0], [1], [0, 0, 1, 1], [], []>} : vector<2x32xf32>, vector<32x128xf32>, vector<2x128xf32> -> vector<2x128xf32>
    %101 = arith.addf %10, %100 : vector<2x128xf32>
    %cst_22 = arith.constant dense<0.000000e+00> : vector<2x128xf32>
    %102 = tpu.matmul %99, %3, %cst_22 {dimension_numbers = #tpu.dot_dimension_numbers<[1], [0], [0], [1], [0, 0, 1, 1], [], []>} : vector<2x32xf32>, vector<32x128xf32>, vector<2x128xf32> -> vector<2x128xf32>
    %103 = arith.addf %18, %102 : vector<2x128xf32>
    %104 = vector.extract_strided_slice %101 {offsets = [0, 0], sizes = [2, 96], strides = [1, 1]} : vector<2x128xf32> to vector<2x96xf32>
    %105 = arith.negf %104 : vector<2x96xf32>
    %106 = math.exp %105 : vector<2x96xf32>
    %cst_23 = arith.constant 1.000000e+00 : f32
    %107 = vector.broadcast %cst_23 : f32 to vector<2x96xf32>
    %108 = arith.addf %107, %106 : vector<2x96xf32>
    %109 = arith.divf %107, %108 : vector<2x96xf32>
    %110 = vector.extract_strided_slice %103 {offsets = [0, 0], sizes = [2, 96], strides = [1, 1]} : vector<2x128xf32> to vector<2x96xf32>
    %111 = arith.negf %110 : vector<2x96xf32>
    %112 = math.exp %111 : vector<2x96xf32>
    %cst_24 = arith.constant 1.000000e+00 : f32
    %113 = vector.broadcast %cst_24 : f32 to vector<2x96xf32>
    %114 = arith.addf %113, %112 : vector<2x96xf32>
    %115 = arith.divf %113, %114 : vector<2x96xf32>
    %116 = vector.extract_strided_slice %101 {offsets = [0, 96], sizes = [2, 32], strides = [1, 1]} : vector<2x128xf32> to vector<2x32xf32>
    %117 = math.tanh %116 : vector<2x32xf32>
    %118 = vector.extract_strided_slice %103 {offsets = [0, 96], sizes = [2, 32], strides = [1, 1]} : vector<2x128xf32> to vector<2x32xf32>
    %119 = math.tanh %118 : vector<2x32xf32>
    %120 = vector.extract_strided_slice %109 {offsets = [0, 32], sizes = [2, 32], strides = [1, 1]} : vector<2x96xf32> to vector<2x32xf32>
    %121 = arith.mulf %120, %88 : vector<2x32xf32>
    %122 = vector.extract_strided_slice %109 {offsets = [0, 0], sizes = [2, 32], strides = [1, 1]} : vector<2x96xf32> to vector<2x32xf32>
    %123 = arith.mulf %122, %117 : vector<2x32xf32>
    %124 = arith.addf %121, %123 : vector<2x32xf32>
    %125 = vector.extract_strided_slice %109 {offsets = [0, 64], sizes = [2, 32], strides = [1, 1]} : vector<2x96xf32> to vector<2x32xf32>
    %126 = math.tanh %124 : vector<2x32xf32>
    %127 = arith.mulf %125, %126 : vector<2x32xf32>
    %128 = vector.extract_strided_slice %115 {offsets = [0, 32], sizes = [2, 32], strides = [1, 1]} : vector<2x96xf32> to vector<2x32xf32>
    %129 = arith.mulf %128, %96 : vector<2x32xf32>
    %130 = vector.extract_strided_slice %115 {offsets = [0, 0], sizes = [2, 32], strides = [1, 1]} : vector<2x96xf32> to vector<2x32xf32>
    %131 = arith.mulf %130, %119 : vector<2x32xf32>
    %132 = arith.addf %129, %131 : vector<2x32xf32>
    %133 = vector.extract_strided_slice %115 {offsets = [0, 64], sizes = [2, 32], strides = [1, 1]} : vector<2x96xf32> to vector<2x32xf32>
    %134 = math.tanh %132 : vector<2x32xf32>
    %135 = arith.mulf %133, %134 : vector<2x32xf32>
    %cst_25 = arith.constant dense<0.000000e+00> : vector<2x128xf32>
    %136 = tpu.matmul %127, %2, %cst_25 {dimension_numbers = #tpu.dot_dimension_numbers<[1], [0], [0], [1], [0, 0, 1, 1], [], []>} : vector<2x32xf32>, vector<32x128xf32>, vector<2x128xf32> -> vector<2x128xf32>
    %137 = arith.addf %11, %136 : vector<2x128xf32>
    %cst_26 = arith.constant dense<0.000000e+00> : vector<2x128xf32>
    %138 = tpu.matmul %135, %3, %cst_26 {dimension_numbers = #tpu.dot_dimension_numbers<[1], [0], [0], [1], [0, 0, 1, 1], [], []>} : vector<2x32xf32>, vector<32x128xf32>, vector<2x128xf32> -> vector<2x128xf32>
    %139 = arith.addf %19, %138 : vector<2x128xf32>
    %140 = vector.extract_strided_slice %137 {offsets = [0, 0], sizes = [2, 96], strides = [1, 1]} : vector<2x128xf32> to vector<2x96xf32>
    %141 = arith.negf %140 : vector<2x96xf32>
    %142 = math.exp %141 : vector<2x96xf32>
    %cst_27 = arith.constant 1.000000e+00 : f32
    %143 = vector.broadcast %cst_27 : f32 to vector<2x96xf32>
    %144 = arith.addf %143, %142 : vector<2x96xf32>
    %145 = arith.divf %143, %144 : vector<2x96xf32>
    %146 = vector.extract_strided_slice %139 {offsets = [0, 0], sizes = [2, 96], strides = [1, 1]} : vector<2x128xf32> to vector<2x96xf32>
    %147 = arith.negf %146 : vector<2x96xf32>
    %148 = math.exp %147 : vector<2x96xf32>
    %cst_28 = arith.constant 1.000000e+00 : f32
    %149 = vector.broadcast %cst_28 : f32 to vector<2x96xf32>
    %150 = arith.addf %149, %148 : vector<2x96xf32>
    %151 = arith.divf %149, %150 : vector<2x96xf32>
    %152 = vector.extract_strided_slice %137 {offsets = [0, 96], sizes = [2, 32], strides = [1, 1]} : vector<2x128xf32> to vector<2x32xf32>
    %153 = math.tanh %152 : vector<2x32xf32>
    %154 = vector.extract_strided_slice %139 {offsets = [0, 96], sizes = [2, 32], strides = [1, 1]} : vector<2x128xf32> to vector<2x32xf32>
    %155 = math.tanh %154 : vector<2x32xf32>
    %156 = vector.extract_strided_slice %145 {offsets = [0, 32], sizes = [2, 32], strides = [1, 1]} : vector<2x96xf32> to vector<2x32xf32>
    %157 = arith.mulf %156, %124 : vector<2x32xf32>
    %158 = vector.extract_strided_slice %145 {offsets = [0, 0], sizes = [2, 32], strides = [1, 1]} : vector<2x96xf32> to vector<2x32xf32>
    %159 = arith.mulf %158, %153 : vector<2x32xf32>
    %160 = arith.addf %157, %159 : vector<2x32xf32>
    %161 = vector.extract_strided_slice %145 {offsets = [0, 64], sizes = [2, 32], strides = [1, 1]} : vector<2x96xf32> to vector<2x32xf32>
    %162 = math.tanh %160 : vector<2x32xf32>
    %163 = arith.mulf %161, %162 : vector<2x32xf32>
    %164 = vector.extract_strided_slice %151 {offsets = [0, 32], sizes = [2, 32], strides = [1, 1]} : vector<2x96xf32> to vector<2x32xf32>
    %165 = arith.mulf %164, %132 : vector<2x32xf32>
    %166 = vector.extract_strided_slice %151 {offsets = [0, 0], sizes = [2, 32], strides = [1, 1]} : vector<2x96xf32> to vector<2x32xf32>
    %167 = arith.mulf %166, %155 : vector<2x32xf32>
    %168 = arith.addf %165, %167 : vector<2x32xf32>
    %169 = vector.extract_strided_slice %151 {offsets = [0, 64], sizes = [2, 32], strides = [1, 1]} : vector<2x96xf32> to vector<2x32xf32>
    %170 = math.tanh %168 : vector<2x32xf32>
    %171 = arith.mulf %169, %170 : vector<2x32xf32>
    %cst_29 = arith.constant dense<0.000000e+00> : vector<2x128xf32>
    %172 = tpu.matmul %163, %2, %cst_29 {dimension_numbers = #tpu.dot_dimension_numbers<[1], [0], [0], [1], [0, 0, 1, 1], [], []>} : vector<2x32xf32>, vector<32x128xf32>, vector<2x128xf32> -> vector<2x128xf32>
    %173 = arith.addf %12, %172 : vector<2x128xf32>
    %cst_30 = arith.constant dense<0.000000e+00> : vector<2x128xf32>
    %174 = tpu.matmul %171, %3, %cst_30 {dimension_numbers = #tpu.dot_dimension_numbers<[1], [0], [0], [1], [0, 0, 1, 1], [], []>} : vector<2x32xf32>, vector<32x128xf32>, vector<2x128xf32> -> vector<2x128xf32>
    %175 = arith.addf %20, %174 : vector<2x128xf32>
    %176 = vector.extract_strided_slice %173 {offsets = [0, 0], sizes = [2, 96], strides = [1, 1]} : vector<2x128xf32> to vector<2x96xf32>
    %177 = arith.negf %176 : vector<2x96xf32>
    %178 = math.exp %177 : vector<2x96xf32>
    %cst_31 = arith.constant 1.000000e+00 : f32
    %179 = vector.broadcast %cst_31 : f32 to vector<2x96xf32>
    %180 = arith.addf %179, %178 : vector<2x96xf32>
    %181 = arith.divf %179, %180 : vector<2x96xf32>
    %182 = vector.extract_strided_slice %175 {offsets = [0, 0], sizes = [2, 96], strides = [1, 1]} : vector<2x128xf32> to vector<2x96xf32>
    %183 = arith.negf %182 : vector<2x96xf32>
    %184 = math.exp %183 : vector<2x96xf32>
    %cst_32 = arith.constant 1.000000e+00 : f32
    %185 = vector.broadcast %cst_32 : f32 to vector<2x96xf32>
    %186 = arith.addf %185, %184 : vector<2x96xf32>
    %187 = arith.divf %185, %186 : vector<2x96xf32>
    %188 = vector.extract_strided_slice %173 {offsets = [0, 96], sizes = [2, 32], strides = [1, 1]} : vector<2x128xf32> to vector<2x32xf32>
    %189 = math.tanh %188 : vector<2x32xf32>
    %190 = vector.extract_strided_slice %175 {offsets = [0, 96], sizes = [2, 32], strides = [1, 1]} : vector<2x128xf32> to vector<2x32xf32>
    %191 = math.tanh %190 : vector<2x32xf32>
    %192 = vector.extract_strided_slice %181 {offsets = [0, 32], sizes = [2, 32], strides = [1, 1]} : vector<2x96xf32> to vector<2x32xf32>
    %193 = arith.mulf %192, %160 : vector<2x32xf32>
    %194 = vector.extract_strided_slice %181 {offsets = [0, 0], sizes = [2, 32], strides = [1, 1]} : vector<2x96xf32> to vector<2x32xf32>
    %195 = arith.mulf %194, %189 : vector<2x32xf32>
    %196 = arith.addf %193, %195 : vector<2x32xf32>
    %197 = vector.extract_strided_slice %181 {offsets = [0, 64], sizes = [2, 32], strides = [1, 1]} : vector<2x96xf32> to vector<2x32xf32>
    %198 = math.tanh %196 : vector<2x32xf32>
    %199 = arith.mulf %197, %198 : vector<2x32xf32>
    %200 = vector.extract_strided_slice %187 {offsets = [0, 32], sizes = [2, 32], strides = [1, 1]} : vector<2x96xf32> to vector<2x32xf32>
    %201 = arith.mulf %200, %168 : vector<2x32xf32>
    %202 = vector.extract_strided_slice %187 {offsets = [0, 0], sizes = [2, 32], strides = [1, 1]} : vector<2x96xf32> to vector<2x32xf32>
    %203 = arith.mulf %202, %191 : vector<2x32xf32>
    %204 = arith.addf %201, %203 : vector<2x32xf32>
    %205 = vector.extract_strided_slice %187 {offsets = [0, 64], sizes = [2, 32], strides = [1, 1]} : vector<2x96xf32> to vector<2x32xf32>
    %206 = math.tanh %204 : vector<2x32xf32>
    %207 = arith.mulf %205, %206 : vector<2x32xf32>
    %cst_33 = arith.constant dense<0.000000e+00> : vector<2x128xf32>
    %208 = tpu.matmul %199, %2, %cst_33 {dimension_numbers = #tpu.dot_dimension_numbers<[1], [0], [0], [1], [0, 0, 1, 1], [], []>} : vector<2x32xf32>, vector<32x128xf32>, vector<2x128xf32> -> vector<2x128xf32>
    %209 = arith.addf %13, %208 : vector<2x128xf32>
    %cst_34 = arith.constant dense<0.000000e+00> : vector<2x128xf32>
    %210 = tpu.matmul %207, %3, %cst_34 {dimension_numbers = #tpu.dot_dimension_numbers<[1], [0], [0], [1], [0, 0, 1, 1], [], []>} : vector<2x32xf32>, vector<32x128xf32>, vector<2x128xf32> -> vector<2x128xf32>
    %211 = arith.addf %21, %210 : vector<2x128xf32>
    %212 = vector.extract_strided_slice %209 {offsets = [0, 0], sizes = [2, 96], strides = [1, 1]} : vector<2x128xf32> to vector<2x96xf32>
    %213 = arith.negf %212 : vector<2x96xf32>
    %214 = math.exp %213 : vector<2x96xf32>
    %cst_35 = arith.constant 1.000000e+00 : f32
    %215 = vector.broadcast %cst_35 : f32 to vector<2x96xf32>
    %216 = arith.addf %215, %214 : vector<2x96xf32>
    %217 = arith.divf %215, %216 : vector<2x96xf32>
    %218 = vector.extract_strided_slice %211 {offsets = [0, 0], sizes = [2, 96], strides = [1, 1]} : vector<2x128xf32> to vector<2x96xf32>
    %219 = arith.negf %218 : vector<2x96xf32>
    %220 = math.exp %219 : vector<2x96xf32>
    %cst_36 = arith.constant 1.000000e+00 : f32
    %221 = vector.broadcast %cst_36 : f32 to vector<2x96xf32>
    %222 = arith.addf %221, %220 : vector<2x96xf32>
    %223 = arith.divf %221, %222 : vector<2x96xf32>
    %224 = vector.extract_strided_slice %209 {offsets = [0, 96], sizes = [2, 32], strides = [1, 1]} : vector<2x128xf32> to vector<2x32xf32>
    %225 = math.tanh %224 : vector<2x32xf32>
    %226 = vector.extract_strided_slice %211 {offsets = [0, 96], sizes = [2, 32], strides = [1, 1]} : vector<2x128xf32> to vector<2x32xf32>
    %227 = math.tanh %226 : vector<2x32xf32>
    %228 = vector.extract_strided_slice %217 {offsets = [0, 32], sizes = [2, 32], strides = [1, 1]} : vector<2x96xf32> to vector<2x32xf32>
    %229 = arith.mulf %228, %196 : vector<2x32xf32>
    %230 = vector.extract_strided_slice %217 {offsets = [0, 0], sizes = [2, 32], strides = [1, 1]} : vector<2x96xf32> to vector<2x32xf32>
    %231 = arith.mulf %230, %225 : vector<2x32xf32>
    %232 = arith.addf %229, %231 : vector<2x32xf32>
    %233 = vector.extract_strided_slice %217 {offsets = [0, 64], sizes = [2, 32], strides = [1, 1]} : vector<2x96xf32> to vector<2x32xf32>
    %234 = math.tanh %232 : vector<2x32xf32>
    %235 = arith.mulf %233, %234 : vector<2x32xf32>
    %236 = vector.extract_strided_slice %223 {offsets = [0, 32], sizes = [2, 32], strides = [1, 1]} : vector<2x96xf32> to vector<2x32xf32>
    %237 = arith.mulf %236, %204 : vector<2x32xf32>
    %238 = vector.extract_strided_slice %223 {offsets = [0, 0], sizes = [2, 32], strides = [1, 1]} : vector<2x96xf32> to vector<2x32xf32>
    %239 = arith.mulf %238, %227 : vector<2x32xf32>
    %240 = arith.addf %237, %239 : vector<2x32xf32>
    %241 = vector.extract_strided_slice %223 {offsets = [0, 64], sizes = [2, 32], strides = [1, 1]} : vector<2x96xf32> to vector<2x32xf32>
    %242 = math.tanh %240 : vector<2x32xf32>
    %243 = arith.mulf %241, %242 : vector<2x32xf32>
    %cst_37 = arith.constant dense<0.000000e+00> : vector<2x128xf32>
    %244 = tpu.matmul %235, %2, %cst_37 {dimension_numbers = #tpu.dot_dimension_numbers<[1], [0], [0], [1], [0, 0, 1, 1], [], []>} : vector<2x32xf32>, vector<32x128xf32>, vector<2x128xf32> -> vector<2x128xf32>
    %245 = arith.addf %14, %244 : vector<2x128xf32>
    %cst_38 = arith.constant dense<0.000000e+00> : vector<2x128xf32>
    %246 = tpu.matmul %243, %3, %cst_38 {dimension_numbers = #tpu.dot_dimension_numbers<[1], [0], [0], [1], [0, 0, 1, 1], [], []>} : vector<2x32xf32>, vector<32x128xf32>, vector<2x128xf32> -> vector<2x128xf32>
    %247 = arith.addf %22, %246 : vector<2x128xf32>
    %248 = vector.extract_strided_slice %245 {offsets = [0, 0], sizes = [2, 96], strides = [1, 1]} : vector<2x128xf32> to vector<2x96xf32>
    %249 = arith.negf %248 : vector<2x96xf32>
    %250 = math.exp %249 : vector<2x96xf32>
    %cst_39 = arith.constant 1.000000e+00 : f32
    %251 = vector.broadcast %cst_39 : f32 to vector<2x96xf32>
    %252 = arith.addf %251, %250 : vector<2x96xf32>
    %253 = arith.divf %251, %252 : vector<2x96xf32>
    %254 = vector.extract_strided_slice %247 {offsets = [0, 0], sizes = [2, 96], strides = [1, 1]} : vector<2x128xf32> to vector<2x96xf32>
    %255 = arith.negf %254 : vector<2x96xf32>
    %256 = math.exp %255 : vector<2x96xf32>
    %cst_40 = arith.constant 1.000000e+00 : f32
    %257 = vector.broadcast %cst_40 : f32 to vector<2x96xf32>
    %258 = arith.addf %257, %256 : vector<2x96xf32>
    %259 = arith.divf %257, %258 : vector<2x96xf32>
    %260 = vector.extract_strided_slice %245 {offsets = [0, 96], sizes = [2, 32], strides = [1, 1]} : vector<2x128xf32> to vector<2x32xf32>
    %261 = math.tanh %260 : vector<2x32xf32>
    %262 = vector.extract_strided_slice %247 {offsets = [0, 96], sizes = [2, 32], strides = [1, 1]} : vector<2x128xf32> to vector<2x32xf32>
    %263 = math.tanh %262 : vector<2x32xf32>
    %264 = vector.extract_strided_slice %253 {offsets = [0, 32], sizes = [2, 32], strides = [1, 1]} : vector<2x96xf32> to vector<2x32xf32>
    %265 = arith.mulf %264, %232 : vector<2x32xf32>
    %266 = vector.extract_strided_slice %253 {offsets = [0, 0], sizes = [2, 32], strides = [1, 1]} : vector<2x96xf32> to vector<2x32xf32>
    %267 = arith.mulf %266, %261 : vector<2x32xf32>
    %268 = arith.addf %265, %267 : vector<2x32xf32>
    %269 = vector.extract_strided_slice %253 {offsets = [0, 64], sizes = [2, 32], strides = [1, 1]} : vector<2x96xf32> to vector<2x32xf32>
    %270 = math.tanh %268 : vector<2x32xf32>
    %271 = arith.mulf %269, %270 : vector<2x32xf32>
    %272 = vector.extract_strided_slice %259 {offsets = [0, 32], sizes = [2, 32], strides = [1, 1]} : vector<2x96xf32> to vector<2x32xf32>
    %273 = arith.mulf %272, %240 : vector<2x32xf32>
    %274 = vector.extract_strided_slice %259 {offsets = [0, 0], sizes = [2, 32], strides = [1, 1]} : vector<2x96xf32> to vector<2x32xf32>
    %275 = arith.mulf %274, %263 : vector<2x32xf32>
    %276 = arith.addf %273, %275 : vector<2x32xf32>
    %277 = vector.extract_strided_slice %259 {offsets = [0, 64], sizes = [2, 32], strides = [1, 1]} : vector<2x96xf32> to vector<2x32xf32>
    %278 = math.tanh %276 : vector<2x32xf32>
    %279 = arith.mulf %277, %278 : vector<2x32xf32>
    %cst_41 = arith.constant dense<0.000000e+00> : vector<2x128xf32>
    %280 = tpu.matmul %271, %2, %cst_41 {dimension_numbers = #tpu.dot_dimension_numbers<[1], [0], [0], [1], [0, 0, 1, 1], [], []>} : vector<2x32xf32>, vector<32x128xf32>, vector<2x128xf32> -> vector<2x128xf32>
    %281 = arith.addf %15, %280 : vector<2x128xf32>
    %cst_42 = arith.constant dense<0.000000e+00> : vector<2x128xf32>
    %282 = tpu.matmul %279, %3, %cst_42 {dimension_numbers = #tpu.dot_dimension_numbers<[1], [0], [0], [1], [0, 0, 1, 1], [], []>} : vector<2x32xf32>, vector<32x128xf32>, vector<2x128xf32> -> vector<2x128xf32>
    %283 = arith.addf %23, %282 : vector<2x128xf32>
    %284 = vector.extract_strided_slice %281 {offsets = [0, 0], sizes = [2, 96], strides = [1, 1]} : vector<2x128xf32> to vector<2x96xf32>
    %285 = arith.negf %284 : vector<2x96xf32>
    %286 = math.exp %285 : vector<2x96xf32>
    %cst_43 = arith.constant 1.000000e+00 : f32
    %287 = vector.broadcast %cst_43 : f32 to vector<2x96xf32>
    %288 = arith.addf %287, %286 : vector<2x96xf32>
    %289 = arith.divf %287, %288 : vector<2x96xf32>
    %290 = vector.extract_strided_slice %283 {offsets = [0, 0], sizes = [2, 96], strides = [1, 1]} : vector<2x128xf32> to vector<2x96xf32>
    %291 = arith.negf %290 : vector<2x96xf32>
    %292 = math.exp %291 : vector<2x96xf32>
    %cst_44 = arith.constant 1.000000e+00 : f32
    %293 = vector.broadcast %cst_44 : f32 to vector<2x96xf32>
    %294 = arith.addf %293, %292 : vector<2x96xf32>
    %295 = arith.divf %293, %294 : vector<2x96xf32>
    %296 = vector.extract_strided_slice %281 {offsets = [0, 96], sizes = [2, 32], strides = [1, 1]} : vector<2x128xf32> to vector<2x32xf32>
    %297 = math.tanh %296 : vector<2x32xf32>
    %298 = vector.extract_strided_slice %283 {offsets = [0, 96], sizes = [2, 32], strides = [1, 1]} : vector<2x128xf32> to vector<2x32xf32>
    %299 = math.tanh %298 : vector<2x32xf32>
    %300 = vector.extract_strided_slice %289 {offsets = [0, 32], sizes = [2, 32], strides = [1, 1]} : vector<2x96xf32> to vector<2x32xf32>
    %301 = arith.mulf %300, %268 : vector<2x32xf32>
    %302 = vector.extract_strided_slice %289 {offsets = [0, 0], sizes = [2, 32], strides = [1, 1]} : vector<2x96xf32> to vector<2x32xf32>
    %303 = arith.mulf %302, %297 : vector<2x32xf32>
    %304 = arith.addf %301, %303 : vector<2x32xf32>
    %305 = vector.extract_strided_slice %289 {offsets = [0, 64], sizes = [2, 32], strides = [1, 1]} : vector<2x96xf32> to vector<2x32xf32>
    %306 = math.tanh %304 : vector<2x32xf32>
    %307 = arith.mulf %305, %306 : vector<2x32xf32>
    %308 = vector.extract_strided_slice %295 {offsets = [0, 32], sizes = [2, 32], strides = [1, 1]} : vector<2x96xf32> to vector<2x32xf32>
    %309 = arith.mulf %308, %276 : vector<2x32xf32>
    %310 = vector.extract_strided_slice %295 {offsets = [0, 0], sizes = [2, 32], strides = [1, 1]} : vector<2x96xf32> to vector<2x32xf32>
    %311 = arith.mulf %310, %299 : vector<2x32xf32>
    %312 = arith.addf %309, %311 : vector<2x32xf32>
    %313 = vector.extract_strided_slice %295 {offsets = [0, 64], sizes = [2, 32], strides = [1, 1]} : vector<2x96xf32> to vector<2x32xf32>
    %314 = math.tanh %312 : vector<2x32xf32>
    %315 = arith.mulf %313, %314 : vector<2x32xf32>
    %316 = tpu.concatenate %55, %91, %127, %163, %199, %235, %271, %307 in 0 : vector<2x32xf32>, vector<2x32xf32>, vector<2x32xf32>, vector<2x32xf32>, vector<2x32xf32>, vector<2x32xf32>, vector<2x32xf32>, vector<2x32xf32> -> vector<16x32xf32>
    %317 = tpu.concatenate %315, %279, %243, %207, %171, %135, %99, %63 in 0 : vector<2x32xf32>, vector<2x32xf32>, vector<2x32xf32>, vector<2x32xf32>, vector<2x32xf32>, vector<2x32xf32>, vector<2x32xf32>, vector<2x32xf32> -> vector<16x32xf32>
    %318 = tpu.concatenate %316, %317 in 1 : vector<16x32xf32>, vector<16x32xf32> -> vector<16x64xf32>
    %c0_45 = arith.constant 0 : index
    %c0_46 = arith.constant 0 : index
    %319 = vector.load %arg5[%c0_45, %c0_46] : memref<64x256xf32, #tpu.memory_space<vmem>>, vector<64x256xf32>
    %c0_47 = arith.constant 0 : index
    %c0_48 = arith.constant 0 : index
    %320 = vector.load %arg6[%c0_47, %c0_48] : memref<32x128xf32, #tpu.memory_space<vmem>>, vector<32x128xf32>
    %c0_49 = arith.constant 0 : index
    %c0_50 = arith.constant 0 : index
    %321 = vector.load %arg7[%c0_49, %c0_50] : memref<32x128xf32, #tpu.memory_space<vmem>>, vector<32x128xf32>
    %c0_51 = arith.constant 0 : index
    %c0_52 = arith.constant 0 : index
    %322 = vector.load %arg8[%c0_51, %c0_52] : memref<1x256xf32, #tpu.memory_space<vmem>>, vector<1x256xf32>
    %cst_53 = arith.constant dense<0.000000e+00> : vector<16x256xf32>
    %323 = tpu.matmul %318, %319, %cst_53 {dimension_numbers = #tpu.dot_dimension_numbers<[1], [0], [0], [1], [0, 0, 1, 1], [], []>} : vector<16x64xf32>, vector<64x256xf32>, vector<16x256xf32> -> vector<16x256xf32>
    %324 = vector.broadcast %322 : vector<1x256xf32> to vector<16x256xf32>
    %325 = arith.addf %323, %324 : vector<16x256xf32>
    %326 = vector.extract_strided_slice %325 {offsets = [0, 0], sizes = [2, 128], strides = [1, 1]} : vector<16x256xf32> to vector<2x128xf32>
    %327 = vector.extract_strided_slice %325 {offsets = [2, 0], sizes = [2, 128], strides = [1, 1]} : vector<16x256xf32> to vector<2x128xf32>
    %328 = vector.extract_strided_slice %325 {offsets = [4, 0], sizes = [2, 128], strides = [1, 1]} : vector<16x256xf32> to vector<2x128xf32>
    %329 = vector.extract_strided_slice %325 {offsets = [6, 0], sizes = [2, 128], strides = [1, 1]} : vector<16x256xf32> to vector<2x128xf32>
    %330 = vector.extract_strided_slice %325 {offsets = [8, 0], sizes = [2, 128], strides = [1, 1]} : vector<16x256xf32> to vector<2x128xf32>
    %331 = vector.extract_strided_slice %325 {offsets = [10, 0], sizes = [2, 128], strides = [1, 1]} : vector<16x256xf32> to vector<2x128xf32>
    %332 = vector.extract_strided_slice %325 {offsets = [12, 0], sizes = [2, 128], strides = [1, 1]} : vector<16x256xf32> to vector<2x128xf32>
    %333 = vector.extract_strided_slice %325 {offsets = [14, 0], sizes = [2, 128], strides = [1, 1]} : vector<16x256xf32> to vector<2x128xf32>
    %334 = vector.extract_strided_slice %325 {offsets = [14, 128], sizes = [2, 128], strides = [1, 1]} : vector<16x256xf32> to vector<2x128xf32>
    %335 = vector.extract_strided_slice %325 {offsets = [12, 128], sizes = [2, 128], strides = [1, 1]} : vector<16x256xf32> to vector<2x128xf32>
    %336 = vector.extract_strided_slice %325 {offsets = [10, 128], sizes = [2, 128], strides = [1, 1]} : vector<16x256xf32> to vector<2x128xf32>
    %337 = vector.extract_strided_slice %325 {offsets = [8, 128], sizes = [2, 128], strides = [1, 1]} : vector<16x256xf32> to vector<2x128xf32>
    %338 = vector.extract_strided_slice %325 {offsets = [6, 128], sizes = [2, 128], strides = [1, 1]} : vector<16x256xf32> to vector<2x128xf32>
    %339 = vector.extract_strided_slice %325 {offsets = [4, 128], sizes = [2, 128], strides = [1, 1]} : vector<16x256xf32> to vector<2x128xf32>
    %340 = vector.extract_strided_slice %325 {offsets = [2, 128], sizes = [2, 128], strides = [1, 1]} : vector<16x256xf32> to vector<2x128xf32>
    %341 = vector.extract_strided_slice %325 {offsets = [0, 128], sizes = [2, 128], strides = [1, 1]} : vector<16x256xf32> to vector<2x128xf32>
    %cst_54 = arith.constant 0.000000e+00 : f32
    %342 = vector.broadcast %cst_54 : f32 to vector<2x32xf32>
    %cst_55 = arith.constant 0.000000e+00 : f32
    %343 = vector.broadcast %cst_55 : f32 to vector<2x32xf32>
    %cst_56 = arith.constant 0.000000e+00 : f32
    %344 = vector.broadcast %cst_56 : f32 to vector<2x32xf32>
    %cst_57 = arith.constant 0.000000e+00 : f32
    %345 = vector.broadcast %cst_57 : f32 to vector<2x32xf32>
    %cst_58 = arith.constant dense<0.000000e+00> : vector<2x128xf32>
    %346 = tpu.matmul %342, %320, %cst_58 {dimension_numbers = #tpu.dot_dimension_numbers<[1], [0], [0], [1], [0, 0, 1, 1], [], []>} : vector<2x32xf32>, vector<32x128xf32>, vector<2x128xf32> -> vector<2x128xf32>
    %347 = arith.addf %326, %346 : vector<2x128xf32>
    %cst_59 = arith.constant dense<0.000000e+00> : vector<2x128xf32>
    %348 = tpu.matmul %344, %321, %cst_59 {dimension_numbers = #tpu.dot_dimension_numbers<[1], [0], [0], [1], [0, 0, 1, 1], [], []>} : vector<2x32xf32>, vector<32x128xf32>, vector<2x128xf32> -> vector<2x128xf32>
    %349 = arith.addf %334, %348 : vector<2x128xf32>
    %350 = vector.extract_strided_slice %347 {offsets = [0, 0], sizes = [2, 96], strides = [1, 1]} : vector<2x128xf32> to vector<2x96xf32>
    %351 = arith.negf %350 : vector<2x96xf32>
    %352 = math.exp %351 : vector<2x96xf32>
    %cst_60 = arith.constant 1.000000e+00 : f32
    %353 = vector.broadcast %cst_60 : f32 to vector<2x96xf32>
    %354 = arith.addf %353, %352 : vector<2x96xf32>
    %355 = arith.divf %353, %354 : vector<2x96xf32>
    %356 = vector.extract_strided_slice %349 {offsets = [0, 0], sizes = [2, 96], strides = [1, 1]} : vector<2x128xf32> to vector<2x96xf32>
    %357 = arith.negf %356 : vector<2x96xf32>
    %358 = math.exp %357 : vector<2x96xf32>
    %cst_61 = arith.constant 1.000000e+00 : f32
    %359 = vector.broadcast %cst_61 : f32 to vector<2x96xf32>
    %360 = arith.addf %359, %358 : vector<2x96xf32>
    %361 = arith.divf %359, %360 : vector<2x96xf32>
    %362 = vector.extract_strided_slice %347 {offsets = [0, 96], sizes = [2, 32], strides = [1, 1]} : vector<2x128xf32> to vector<2x32xf32>
    %363 = math.tanh %362 : vector<2x32xf32>
    %364 = vector.extract_strided_slice %349 {offsets = [0, 96], sizes = [2, 32], strides = [1, 1]} : vector<2x128xf32> to vector<2x32xf32>
    %365 = math.tanh %364 : vector<2x32xf32>
    %366 = vector.extract_strided_slice %355 {offsets = [0, 32], sizes = [2, 32], strides = [1, 1]} : vector<2x96xf32> to vector<2x32xf32>
    %367 = arith.mulf %366, %343 : vector<2x32xf32>
    %368 = vector.extract_strided_slice %355 {offsets = [0, 0], sizes = [2, 32], strides = [1, 1]} : vector<2x96xf32> to vector<2x32xf32>
    %369 = arith.mulf %368, %363 : vector<2x32xf32>
    %370 = arith.addf %367, %369 : vector<2x32xf32>
    %371 = vector.extract_strided_slice %355 {offsets = [0, 64], sizes = [2, 32], strides = [1, 1]} : vector<2x96xf32> to vector<2x32xf32>
    %372 = math.tanh %370 : vector<2x32xf32>
    %373 = arith.mulf %371, %372 : vector<2x32xf32>
    %374 = vector.extract_strided_slice %361 {offsets = [0, 32], sizes = [2, 32], strides = [1, 1]} : vector<2x96xf32> to vector<2x32xf32>
    %375 = arith.mulf %374, %345 : vector<2x32xf32>
    %376 = vector.extract_strided_slice %361 {offsets = [0, 0], sizes = [2, 32], strides = [1, 1]} : vector<2x96xf32> to vector<2x32xf32>
    %377 = arith.mulf %376, %365 : vector<2x32xf32>
    %378 = arith.addf %375, %377 : vector<2x32xf32>
    %379 = vector.extract_strided_slice %361 {offsets = [0, 64], sizes = [2, 32], strides = [1, 1]} : vector<2x96xf32> to vector<2x32xf32>
    %380 = math.tanh %378 : vector<2x32xf32>
    %381 = arith.mulf %379, %380 : vector<2x32xf32>
    %cst_62 = arith.constant dense<0.000000e+00> : vector<2x128xf32>
    %382 = tpu.matmul %373, %320, %cst_62 {dimension_numbers = #tpu.dot_dimension_numbers<[1], [0], [0], [1], [0, 0, 1, 1], [], []>} : vector<2x32xf32>, vector<32x128xf32>, vector<2x128xf32> -> vector<2x128xf32>
    %383 = arith.addf %327, %382 : vector<2x128xf32>
    %cst_63 = arith.constant dense<0.000000e+00> : vector<2x128xf32>
    %384 = tpu.matmul %381, %321, %cst_63 {dimension_numbers = #tpu.dot_dimension_numbers<[1], [0], [0], [1], [0, 0, 1, 1], [], []>} : vector<2x32xf32>, vector<32x128xf32>, vector<2x128xf32> -> vector<2x128xf32>
    %385 = arith.addf %335, %384 : vector<2x128xf32>
    %386 = vector.extract_strided_slice %383 {offsets = [0, 0], sizes = [2, 96], strides = [1, 1]} : vector<2x128xf32> to vector<2x96xf32>
    %387 = arith.negf %386 : vector<2x96xf32>
    %388 = math.exp %387 : vector<2x96xf32>
    %cst_64 = arith.constant 1.000000e+00 : f32
    %389 = vector.broadcast %cst_64 : f32 to vector<2x96xf32>
    %390 = arith.addf %389, %388 : vector<2x96xf32>
    %391 = arith.divf %389, %390 : vector<2x96xf32>
    %392 = vector.extract_strided_slice %385 {offsets = [0, 0], sizes = [2, 96], strides = [1, 1]} : vector<2x128xf32> to vector<2x96xf32>
    %393 = arith.negf %392 : vector<2x96xf32>
    %394 = math.exp %393 : vector<2x96xf32>
    %cst_65 = arith.constant 1.000000e+00 : f32
    %395 = vector.broadcast %cst_65 : f32 to vector<2x96xf32>
    %396 = arith.addf %395, %394 : vector<2x96xf32>
    %397 = arith.divf %395, %396 : vector<2x96xf32>
    %398 = vector.extract_strided_slice %383 {offsets = [0, 96], sizes = [2, 32], strides = [1, 1]} : vector<2x128xf32> to vector<2x32xf32>
    %399 = math.tanh %398 : vector<2x32xf32>
    %400 = vector.extract_strided_slice %385 {offsets = [0, 96], sizes = [2, 32], strides = [1, 1]} : vector<2x128xf32> to vector<2x32xf32>
    %401 = math.tanh %400 : vector<2x32xf32>
    %402 = vector.extract_strided_slice %391 {offsets = [0, 32], sizes = [2, 32], strides = [1, 1]} : vector<2x96xf32> to vector<2x32xf32>
    %403 = arith.mulf %402, %370 : vector<2x32xf32>
    %404 = vector.extract_strided_slice %391 {offsets = [0, 0], sizes = [2, 32], strides = [1, 1]} : vector<2x96xf32> to vector<2x32xf32>
    %405 = arith.mulf %404, %399 : vector<2x32xf32>
    %406 = arith.addf %403, %405 : vector<2x32xf32>
    %407 = vector.extract_strided_slice %391 {offsets = [0, 64], sizes = [2, 32], strides = [1, 1]} : vector<2x96xf32> to vector<2x32xf32>
    %408 = math.tanh %406 : vector<2x32xf32>
    %409 = arith.mulf %407, %408 : vector<2x32xf32>
    %410 = vector.extract_strided_slice %397 {offsets = [0, 32], sizes = [2, 32], strides = [1, 1]} : vector<2x96xf32> to vector<2x32xf32>
    %411 = arith.mulf %410, %378 : vector<2x32xf32>
    %412 = vector.extract_strided_slice %397 {offsets = [0, 0], sizes = [2, 32], strides = [1, 1]} : vector<2x96xf32> to vector<2x32xf32>
    %413 = arith.mulf %412, %401 : vector<2x32xf32>
    %414 = arith.addf %411, %413 : vector<2x32xf32>
    %415 = vector.extract_strided_slice %397 {offsets = [0, 64], sizes = [2, 32], strides = [1, 1]} : vector<2x96xf32> to vector<2x32xf32>
    %416 = math.tanh %414 : vector<2x32xf32>
    %417 = arith.mulf %415, %416 : vector<2x32xf32>
    %cst_66 = arith.constant dense<0.000000e+00> : vector<2x128xf32>
    %418 = tpu.matmul %409, %320, %cst_66 {dimension_numbers = #tpu.dot_dimension_numbers<[1], [0], [0], [1], [0, 0, 1, 1], [], []>} : vector<2x32xf32>, vector<32x128xf32>, vector<2x128xf32> -> vector<2x128xf32>
    %419 = arith.addf %328, %418 : vector<2x128xf32>
    %cst_67 = arith.constant dense<0.000000e+00> : vector<2x128xf32>
    %420 = tpu.matmul %417, %321, %cst_67 {dimension_numbers = #tpu.dot_dimension_numbers<[1], [0], [0], [1], [0, 0, 1, 1], [], []>} : vector<2x32xf32>, vector<32x128xf32>, vector<2x128xf32> -> vector<2x128xf32>
    %421 = arith.addf %336, %420 : vector<2x128xf32>
    %422 = vector.extract_strided_slice %419 {offsets = [0, 0], sizes = [2, 96], strides = [1, 1]} : vector<2x128xf32> to vector<2x96xf32>
    %423 = arith.negf %422 : vector<2x96xf32>
    %424 = math.exp %423 : vector<2x96xf32>
    %cst_68 = arith.constant 1.000000e+00 : f32
    %425 = vector.broadcast %cst_68 : f32 to vector<2x96xf32>
    %426 = arith.addf %425, %424 : vector<2x96xf32>
    %427 = arith.divf %425, %426 : vector<2x96xf32>
    %428 = vector.extract_strided_slice %421 {offsets = [0, 0], sizes = [2, 96], strides = [1, 1]} : vector<2x128xf32> to vector<2x96xf32>
    %429 = arith.negf %428 : vector<2x96xf32>
    %430 = math.exp %429 : vector<2x96xf32>
    %cst_69 = arith.constant 1.000000e+00 : f32
    %431 = vector.broadcast %cst_69 : f32 to vector<2x96xf32>
    %432 = arith.addf %431, %430 : vector<2x96xf32>
    %433 = arith.divf %431, %432 : vector<2x96xf32>
    %434 = vector.extract_strided_slice %419 {offsets = [0, 96], sizes = [2, 32], strides = [1, 1]} : vector<2x128xf32> to vector<2x32xf32>
    %435 = math.tanh %434 : vector<2x32xf32>
    %436 = vector.extract_strided_slice %421 {offsets = [0, 96], sizes = [2, 32], strides = [1, 1]} : vector<2x128xf32> to vector<2x32xf32>
    %437 = math.tanh %436 : vector<2x32xf32>
    %438 = vector.extract_strided_slice %427 {offsets = [0, 32], sizes = [2, 32], strides = [1, 1]} : vector<2x96xf32> to vector<2x32xf32>
    %439 = arith.mulf %438, %406 : vector<2x32xf32>
    %440 = vector.extract_strided_slice %427 {offsets = [0, 0], sizes = [2, 32], strides = [1, 1]} : vector<2x96xf32> to vector<2x32xf32>
    %441 = arith.mulf %440, %435 : vector<2x32xf32>
    %442 = arith.addf %439, %441 : vector<2x32xf32>
    %443 = vector.extract_strided_slice %427 {offsets = [0, 64], sizes = [2, 32], strides = [1, 1]} : vector<2x96xf32> to vector<2x32xf32>
    %444 = math.tanh %442 : vector<2x32xf32>
    %445 = arith.mulf %443, %444 : vector<2x32xf32>
    %446 = vector.extract_strided_slice %433 {offsets = [0, 32], sizes = [2, 32], strides = [1, 1]} : vector<2x96xf32> to vector<2x32xf32>
    %447 = arith.mulf %446, %414 : vector<2x32xf32>
    %448 = vector.extract_strided_slice %433 {offsets = [0, 0], sizes = [2, 32], strides = [1, 1]} : vector<2x96xf32> to vector<2x32xf32>
    %449 = arith.mulf %448, %437 : vector<2x32xf32>
    %450 = arith.addf %447, %449 : vector<2x32xf32>
    %451 = vector.extract_strided_slice %433 {offsets = [0, 64], sizes = [2, 32], strides = [1, 1]} : vector<2x96xf32> to vector<2x32xf32>
    %452 = math.tanh %450 : vector<2x32xf32>
    %453 = arith.mulf %451, %452 : vector<2x32xf32>
    %cst_70 = arith.constant dense<0.000000e+00> : vector<2x128xf32>
    %454 = tpu.matmul %445, %320, %cst_70 {dimension_numbers = #tpu.dot_dimension_numbers<[1], [0], [0], [1], [0, 0, 1, 1], [], []>} : vector<2x32xf32>, vector<32x128xf32>, vector<2x128xf32> -> vector<2x128xf32>
    %455 = arith.addf %329, %454 : vector<2x128xf32>
    %cst_71 = arith.constant dense<0.000000e+00> : vector<2x128xf32>
    %456 = tpu.matmul %453, %321, %cst_71 {dimension_numbers = #tpu.dot_dimension_numbers<[1], [0], [0], [1], [0, 0, 1, 1], [], []>} : vector<2x32xf32>, vector<32x128xf32>, vector<2x128xf32> -> vector<2x128xf32>
    %457 = arith.addf %337, %456 : vector<2x128xf32>
    %458 = vector.extract_strided_slice %455 {offsets = [0, 0], sizes = [2, 96], strides = [1, 1]} : vector<2x128xf32> to vector<2x96xf32>
    %459 = arith.negf %458 : vector<2x96xf32>
    %460 = math.exp %459 : vector<2x96xf32>
    %cst_72 = arith.constant 1.000000e+00 : f32
    %461 = vector.broadcast %cst_72 : f32 to vector<2x96xf32>
    %462 = arith.addf %461, %460 : vector<2x96xf32>
    %463 = arith.divf %461, %462 : vector<2x96xf32>
    %464 = vector.extract_strided_slice %457 {offsets = [0, 0], sizes = [2, 96], strides = [1, 1]} : vector<2x128xf32> to vector<2x96xf32>
    %465 = arith.negf %464 : vector<2x96xf32>
    %466 = math.exp %465 : vector<2x96xf32>
    %cst_73 = arith.constant 1.000000e+00 : f32
    %467 = vector.broadcast %cst_73 : f32 to vector<2x96xf32>
    %468 = arith.addf %467, %466 : vector<2x96xf32>
    %469 = arith.divf %467, %468 : vector<2x96xf32>
    %470 = vector.extract_strided_slice %455 {offsets = [0, 96], sizes = [2, 32], strides = [1, 1]} : vector<2x128xf32> to vector<2x32xf32>
    %471 = math.tanh %470 : vector<2x32xf32>
    %472 = vector.extract_strided_slice %457 {offsets = [0, 96], sizes = [2, 32], strides = [1, 1]} : vector<2x128xf32> to vector<2x32xf32>
    %473 = math.tanh %472 : vector<2x32xf32>
    %474 = vector.extract_strided_slice %463 {offsets = [0, 32], sizes = [2, 32], strides = [1, 1]} : vector<2x96xf32> to vector<2x32xf32>
    %475 = arith.mulf %474, %442 : vector<2x32xf32>
    %476 = vector.extract_strided_slice %463 {offsets = [0, 0], sizes = [2, 32], strides = [1, 1]} : vector<2x96xf32> to vector<2x32xf32>
    %477 = arith.mulf %476, %471 : vector<2x32xf32>
    %478 = arith.addf %475, %477 : vector<2x32xf32>
    %479 = vector.extract_strided_slice %463 {offsets = [0, 64], sizes = [2, 32], strides = [1, 1]} : vector<2x96xf32> to vector<2x32xf32>
    %480 = math.tanh %478 : vector<2x32xf32>
    %481 = arith.mulf %479, %480 : vector<2x32xf32>
    %482 = vector.extract_strided_slice %469 {offsets = [0, 32], sizes = [2, 32], strides = [1, 1]} : vector<2x96xf32> to vector<2x32xf32>
    %483 = arith.mulf %482, %450 : vector<2x32xf32>
    %484 = vector.extract_strided_slice %469 {offsets = [0, 0], sizes = [2, 32], strides = [1, 1]} : vector<2x96xf32> to vector<2x32xf32>
    %485 = arith.mulf %484, %473 : vector<2x32xf32>
    %486 = arith.addf %483, %485 : vector<2x32xf32>
    %487 = vector.extract_strided_slice %469 {offsets = [0, 64], sizes = [2, 32], strides = [1, 1]} : vector<2x96xf32> to vector<2x32xf32>
    %488 = math.tanh %486 : vector<2x32xf32>
    %489 = arith.mulf %487, %488 : vector<2x32xf32>
    %cst_74 = arith.constant dense<0.000000e+00> : vector<2x128xf32>
    %490 = tpu.matmul %481, %320, %cst_74 {dimension_numbers = #tpu.dot_dimension_numbers<[1], [0], [0], [1], [0, 0, 1, 1], [], []>} : vector<2x32xf32>, vector<32x128xf32>, vector<2x128xf32> -> vector<2x128xf32>
    %491 = arith.addf %330, %490 : vector<2x128xf32>
    %cst_75 = arith.constant dense<0.000000e+00> : vector<2x128xf32>
    %492 = tpu.matmul %489, %321, %cst_75 {dimension_numbers = #tpu.dot_dimension_numbers<[1], [0], [0], [1], [0, 0, 1, 1], [], []>} : vector<2x32xf32>, vector<32x128xf32>, vector<2x128xf32> -> vector<2x128xf32>
    %493 = arith.addf %338, %492 : vector<2x128xf32>
    %494 = vector.extract_strided_slice %491 {offsets = [0, 0], sizes = [2, 96], strides = [1, 1]} : vector<2x128xf32> to vector<2x96xf32>
    %495 = arith.negf %494 : vector<2x96xf32>
    %496 = math.exp %495 : vector<2x96xf32>
    %cst_76 = arith.constant 1.000000e+00 : f32
    %497 = vector.broadcast %cst_76 : f32 to vector<2x96xf32>
    %498 = arith.addf %497, %496 : vector<2x96xf32>
    %499 = arith.divf %497, %498 : vector<2x96xf32>
    %500 = vector.extract_strided_slice %493 {offsets = [0, 0], sizes = [2, 96], strides = [1, 1]} : vector<2x128xf32> to vector<2x96xf32>
    %501 = arith.negf %500 : vector<2x96xf32>
    %502 = math.exp %501 : vector<2x96xf32>
    %cst_77 = arith.constant 1.000000e+00 : f32
    %503 = vector.broadcast %cst_77 : f32 to vector<2x96xf32>
    %504 = arith.addf %503, %502 : vector<2x96xf32>
    %505 = arith.divf %503, %504 : vector<2x96xf32>
    %506 = vector.extract_strided_slice %491 {offsets = [0, 96], sizes = [2, 32], strides = [1, 1]} : vector<2x128xf32> to vector<2x32xf32>
    %507 = math.tanh %506 : vector<2x32xf32>
    %508 = vector.extract_strided_slice %493 {offsets = [0, 96], sizes = [2, 32], strides = [1, 1]} : vector<2x128xf32> to vector<2x32xf32>
    %509 = math.tanh %508 : vector<2x32xf32>
    %510 = vector.extract_strided_slice %499 {offsets = [0, 32], sizes = [2, 32], strides = [1, 1]} : vector<2x96xf32> to vector<2x32xf32>
    %511 = arith.mulf %510, %478 : vector<2x32xf32>
    %512 = vector.extract_strided_slice %499 {offsets = [0, 0], sizes = [2, 32], strides = [1, 1]} : vector<2x96xf32> to vector<2x32xf32>
    %513 = arith.mulf %512, %507 : vector<2x32xf32>
    %514 = arith.addf %511, %513 : vector<2x32xf32>
    %515 = vector.extract_strided_slice %499 {offsets = [0, 64], sizes = [2, 32], strides = [1, 1]} : vector<2x96xf32> to vector<2x32xf32>
    %516 = math.tanh %514 : vector<2x32xf32>
    %517 = arith.mulf %515, %516 : vector<2x32xf32>
    %518 = vector.extract_strided_slice %505 {offsets = [0, 32], sizes = [2, 32], strides = [1, 1]} : vector<2x96xf32> to vector<2x32xf32>
    %519 = arith.mulf %518, %486 : vector<2x32xf32>
    %520 = vector.extract_strided_slice %505 {offsets = [0, 0], sizes = [2, 32], strides = [1, 1]} : vector<2x96xf32> to vector<2x32xf32>
    %521 = arith.mulf %520, %509 : vector<2x32xf32>
    %522 = arith.addf %519, %521 : vector<2x32xf32>
    %523 = vector.extract_strided_slice %505 {offsets = [0, 64], sizes = [2, 32], strides = [1, 1]} : vector<2x96xf32> to vector<2x32xf32>
    %524 = math.tanh %522 : vector<2x32xf32>
    %525 = arith.mulf %523, %524 : vector<2x32xf32>
    %cst_78 = arith.constant dense<0.000000e+00> : vector<2x128xf32>
    %526 = tpu.matmul %517, %320, %cst_78 {dimension_numbers = #tpu.dot_dimension_numbers<[1], [0], [0], [1], [0, 0, 1, 1], [], []>} : vector<2x32xf32>, vector<32x128xf32>, vector<2x128xf32> -> vector<2x128xf32>
    %527 = arith.addf %331, %526 : vector<2x128xf32>
    %cst_79 = arith.constant dense<0.000000e+00> : vector<2x128xf32>
    %528 = tpu.matmul %525, %321, %cst_79 {dimension_numbers = #tpu.dot_dimension_numbers<[1], [0], [0], [1], [0, 0, 1, 1], [], []>} : vector<2x32xf32>, vector<32x128xf32>, vector<2x128xf32> -> vector<2x128xf32>
    %529 = arith.addf %339, %528 : vector<2x128xf32>
    %530 = vector.extract_strided_slice %527 {offsets = [0, 0], sizes = [2, 96], strides = [1, 1]} : vector<2x128xf32> to vector<2x96xf32>
    %531 = arith.negf %530 : vector<2x96xf32>
    %532 = math.exp %531 : vector<2x96xf32>
    %cst_80 = arith.constant 1.000000e+00 : f32
    %533 = vector.broadcast %cst_80 : f32 to vector<2x96xf32>
    %534 = arith.addf %533, %532 : vector<2x96xf32>
    %535 = arith.divf %533, %534 : vector<2x96xf32>
    %536 = vector.extract_strided_slice %529 {offsets = [0, 0], sizes = [2, 96], strides = [1, 1]} : vector<2x128xf32> to vector<2x96xf32>
    %537 = arith.negf %536 : vector<2x96xf32>
    %538 = math.exp %537 : vector<2x96xf32>
    %cst_81 = arith.constant 1.000000e+00 : f32
    %539 = vector.broadcast %cst_81 : f32 to vector<2x96xf32>
    %540 = arith.addf %539, %538 : vector<2x96xf32>
    %541 = arith.divf %539, %540 : vector<2x96xf32>
    %542 = vector.extract_strided_slice %527 {offsets = [0, 96], sizes = [2, 32], strides = [1, 1]} : vector<2x128xf32> to vector<2x32xf32>
    %543 = math.tanh %542 : vector<2x32xf32>
    %544 = vector.extract_strided_slice %529 {offsets = [0, 96], sizes = [2, 32], strides = [1, 1]} : vector<2x128xf32> to vector<2x32xf32>
    %545 = math.tanh %544 : vector<2x32xf32>
    %546 = vector.extract_strided_slice %535 {offsets = [0, 32], sizes = [2, 32], strides = [1, 1]} : vector<2x96xf32> to vector<2x32xf32>
    %547 = arith.mulf %546, %514 : vector<2x32xf32>
    %548 = vector.extract_strided_slice %535 {offsets = [0, 0], sizes = [2, 32], strides = [1, 1]} : vector<2x96xf32> to vector<2x32xf32>
    %549 = arith.mulf %548, %543 : vector<2x32xf32>
    %550 = arith.addf %547, %549 : vector<2x32xf32>
    %551 = vector.extract_strided_slice %535 {offsets = [0, 64], sizes = [2, 32], strides = [1, 1]} : vector<2x96xf32> to vector<2x32xf32>
    %552 = math.tanh %550 : vector<2x32xf32>
    %553 = arith.mulf %551, %552 : vector<2x32xf32>
    %554 = vector.extract_strided_slice %541 {offsets = [0, 32], sizes = [2, 32], strides = [1, 1]} : vector<2x96xf32> to vector<2x32xf32>
    %555 = arith.mulf %554, %522 : vector<2x32xf32>
    %556 = vector.extract_strided_slice %541 {offsets = [0, 0], sizes = [2, 32], strides = [1, 1]} : vector<2x96xf32> to vector<2x32xf32>
    %557 = arith.mulf %556, %545 : vector<2x32xf32>
    %558 = arith.addf %555, %557 : vector<2x32xf32>
    %559 = vector.extract_strided_slice %541 {offsets = [0, 64], sizes = [2, 32], strides = [1, 1]} : vector<2x96xf32> to vector<2x32xf32>
    %560 = math.tanh %558 : vector<2x32xf32>
    %561 = arith.mulf %559, %560 : vector<2x32xf32>
    %cst_82 = arith.constant dense<0.000000e+00> : vector<2x128xf32>
    %562 = tpu.matmul %553, %320, %cst_82 {dimension_numbers = #tpu.dot_dimension_numbers<[1], [0], [0], [1], [0, 0, 1, 1], [], []>} : vector<2x32xf32>, vector<32x128xf32>, vector<2x128xf32> -> vector<2x128xf32>
    %563 = arith.addf %332, %562 : vector<2x128xf32>
    %cst_83 = arith.constant dense<0.000000e+00> : vector<2x128xf32>
    %564 = tpu.matmul %561, %321, %cst_83 {dimension_numbers = #tpu.dot_dimension_numbers<[1], [0], [0], [1], [0, 0, 1, 1], [], []>} : vector<2x32xf32>, vector<32x128xf32>, vector<2x128xf32> -> vector<2x128xf32>
    %565 = arith.addf %340, %564 : vector<2x128xf32>
    %566 = vector.extract_strided_slice %563 {offsets = [0, 0], sizes = [2, 96], strides = [1, 1]} : vector<2x128xf32> to vector<2x96xf32>
    %567 = arith.negf %566 : vector<2x96xf32>
    %568 = math.exp %567 : vector<2x96xf32>
    %cst_84 = arith.constant 1.000000e+00 : f32
    %569 = vector.broadcast %cst_84 : f32 to vector<2x96xf32>
    %570 = arith.addf %569, %568 : vector<2x96xf32>
    %571 = arith.divf %569, %570 : vector<2x96xf32>
    %572 = vector.extract_strided_slice %565 {offsets = [0, 0], sizes = [2, 96], strides = [1, 1]} : vector<2x128xf32> to vector<2x96xf32>
    %573 = arith.negf %572 : vector<2x96xf32>
    %574 = math.exp %573 : vector<2x96xf32>
    %cst_85 = arith.constant 1.000000e+00 : f32
    %575 = vector.broadcast %cst_85 : f32 to vector<2x96xf32>
    %576 = arith.addf %575, %574 : vector<2x96xf32>
    %577 = arith.divf %575, %576 : vector<2x96xf32>
    %578 = vector.extract_strided_slice %563 {offsets = [0, 96], sizes = [2, 32], strides = [1, 1]} : vector<2x128xf32> to vector<2x32xf32>
    %579 = math.tanh %578 : vector<2x32xf32>
    %580 = vector.extract_strided_slice %565 {offsets = [0, 96], sizes = [2, 32], strides = [1, 1]} : vector<2x128xf32> to vector<2x32xf32>
    %581 = math.tanh %580 : vector<2x32xf32>
    %582 = vector.extract_strided_slice %571 {offsets = [0, 32], sizes = [2, 32], strides = [1, 1]} : vector<2x96xf32> to vector<2x32xf32>
    %583 = arith.mulf %582, %550 : vector<2x32xf32>
    %584 = vector.extract_strided_slice %571 {offsets = [0, 0], sizes = [2, 32], strides = [1, 1]} : vector<2x96xf32> to vector<2x32xf32>
    %585 = arith.mulf %584, %579 : vector<2x32xf32>
    %586 = arith.addf %583, %585 : vector<2x32xf32>
    %587 = vector.extract_strided_slice %571 {offsets = [0, 64], sizes = [2, 32], strides = [1, 1]} : vector<2x96xf32> to vector<2x32xf32>
    %588 = math.tanh %586 : vector<2x32xf32>
    %589 = arith.mulf %587, %588 : vector<2x32xf32>
    %590 = vector.extract_strided_slice %577 {offsets = [0, 32], sizes = [2, 32], strides = [1, 1]} : vector<2x96xf32> to vector<2x32xf32>
    %591 = arith.mulf %590, %558 : vector<2x32xf32>
    %592 = vector.extract_strided_slice %577 {offsets = [0, 0], sizes = [2, 32], strides = [1, 1]} : vector<2x96xf32> to vector<2x32xf32>
    %593 = arith.mulf %592, %581 : vector<2x32xf32>
    %594 = arith.addf %591, %593 : vector<2x32xf32>
    %595 = vector.extract_strided_slice %577 {offsets = [0, 64], sizes = [2, 32], strides = [1, 1]} : vector<2x96xf32> to vector<2x32xf32>
    %596 = math.tanh %594 : vector<2x32xf32>
    %597 = arith.mulf %595, %596 : vector<2x32xf32>
    %cst_86 = arith.constant dense<0.000000e+00> : vector<2x128xf32>
    %598 = tpu.matmul %589, %320, %cst_86 {dimension_numbers = #tpu.dot_dimension_numbers<[1], [0], [0], [1], [0, 0, 1, 1], [], []>} : vector<2x32xf32>, vector<32x128xf32>, vector<2x128xf32> -> vector<2x128xf32>
    %599 = arith.addf %333, %598 : vector<2x128xf32>
    %cst_87 = arith.constant dense<0.000000e+00> : vector<2x128xf32>
    %600 = tpu.matmul %597, %321, %cst_87 {dimension_numbers = #tpu.dot_dimension_numbers<[1], [0], [0], [1], [0, 0, 1, 1], [], []>} : vector<2x32xf32>, vector<32x128xf32>, vector<2x128xf32> -> vector<2x128xf32>
    %601 = arith.addf %341, %600 : vector<2x128xf32>
    %602 = vector.extract_strided_slice %599 {offsets = [0, 0], sizes = [2, 96], strides = [1, 1]} : vector<2x128xf32> to vector<2x96xf32>
    %603 = arith.negf %602 : vector<2x96xf32>
    %604 = math.exp %603 : vector<2x96xf32>
    %cst_88 = arith.constant 1.000000e+00 : f32
    %605 = vector.broadcast %cst_88 : f32 to vector<2x96xf32>
    %606 = arith.addf %605, %604 : vector<2x96xf32>
    %607 = arith.divf %605, %606 : vector<2x96xf32>
    %608 = vector.extract_strided_slice %601 {offsets = [0, 0], sizes = [2, 96], strides = [1, 1]} : vector<2x128xf32> to vector<2x96xf32>
    %609 = arith.negf %608 : vector<2x96xf32>
    %610 = math.exp %609 : vector<2x96xf32>
    %cst_89 = arith.constant 1.000000e+00 : f32
    %611 = vector.broadcast %cst_89 : f32 to vector<2x96xf32>
    %612 = arith.addf %611, %610 : vector<2x96xf32>
    %613 = arith.divf %611, %612 : vector<2x96xf32>
    %614 = vector.extract_strided_slice %599 {offsets = [0, 96], sizes = [2, 32], strides = [1, 1]} : vector<2x128xf32> to vector<2x32xf32>
    %615 = math.tanh %614 : vector<2x32xf32>
    %616 = vector.extract_strided_slice %601 {offsets = [0, 96], sizes = [2, 32], strides = [1, 1]} : vector<2x128xf32> to vector<2x32xf32>
    %617 = math.tanh %616 : vector<2x32xf32>
    %618 = vector.extract_strided_slice %607 {offsets = [0, 32], sizes = [2, 32], strides = [1, 1]} : vector<2x96xf32> to vector<2x32xf32>
    %619 = arith.mulf %618, %586 : vector<2x32xf32>
    %620 = vector.extract_strided_slice %607 {offsets = [0, 0], sizes = [2, 32], strides = [1, 1]} : vector<2x96xf32> to vector<2x32xf32>
    %621 = arith.mulf %620, %615 : vector<2x32xf32>
    %622 = arith.addf %619, %621 : vector<2x32xf32>
    %623 = vector.extract_strided_slice %607 {offsets = [0, 64], sizes = [2, 32], strides = [1, 1]} : vector<2x96xf32> to vector<2x32xf32>
    %624 = math.tanh %622 : vector<2x32xf32>
    %625 = arith.mulf %623, %624 : vector<2x32xf32>
    %626 = vector.extract_strided_slice %613 {offsets = [0, 32], sizes = [2, 32], strides = [1, 1]} : vector<2x96xf32> to vector<2x32xf32>
    %627 = arith.mulf %626, %594 : vector<2x32xf32>
    %628 = vector.extract_strided_slice %613 {offsets = [0, 0], sizes = [2, 32], strides = [1, 1]} : vector<2x96xf32> to vector<2x32xf32>
    %629 = arith.mulf %628, %617 : vector<2x32xf32>
    %630 = arith.addf %627, %629 : vector<2x32xf32>
    %631 = vector.extract_strided_slice %613 {offsets = [0, 64], sizes = [2, 32], strides = [1, 1]} : vector<2x96xf32> to vector<2x32xf32>
    %632 = math.tanh %630 : vector<2x32xf32>
    %633 = arith.mulf %631, %632 : vector<2x32xf32>
    %634 = tpu.concatenate %373, %409, %445, %481, %517, %553, %589, %625 in 0 : vector<2x32xf32>, vector<2x32xf32>, vector<2x32xf32>, vector<2x32xf32>, vector<2x32xf32>, vector<2x32xf32>, vector<2x32xf32>, vector<2x32xf32> -> vector<16x32xf32>
    %635 = tpu.concatenate %633, %597, %561, %525, %489, %453, %417, %381 in 0 : vector<2x32xf32>, vector<2x32xf32>, vector<2x32xf32>, vector<2x32xf32>, vector<2x32xf32>, vector<2x32xf32>, vector<2x32xf32>, vector<2x32xf32> -> vector<16x32xf32>
    %636 = tpu.concatenate %634, %635 in 1 : vector<16x32xf32>, vector<16x32xf32> -> vector<16x64xf32>
    %c0_90 = arith.constant 0 : index
    %c0_91 = arith.constant 0 : index
    %637 = vector.load %arg9[%c0_90, %c0_91] : memref<16x64xf32, #tpu.memory_space<vmem>>, vector<16x64xf32>
    tpu.vector_store %arg9[%c0_90, %c0_91], %636 {strides = array<i32>} : memref<16x64xf32, #tpu.memory_space<vmem>>, vector<16x64xf32>,
    return
  }
}

</mosaic_0001>

<bundles_post_ra>
// kernel: tpu_custom_call.1
= control target key start
LH: loop header
LB: loop body
LE: loop exit
PB: predicated region body
PF: predicated region fallthrough
CT: control target
= control target key end

     0   :  { %14 = vsyncpa [#allocation3], 0  ;;  %s3885_s0 = inlined_call_operand.hbm [shape: f32[16,16], index: 0, kind: input, shape index: {}]   ;;  %s3886_s1 = inlined_call_operand.hbm [shape: f32[16,256], index: 1, kind: input, shape index: {}]   ;;  %s3887_s2 = inlined_call_operand.hbm [shape: f32[32,128], index: 2, kind: input, shape index: {}]   ;;  %s3888_s3 = inlined_call_operand.hbm [shape: f32[32,128], index: 3, kind: input, shape index: {}]   ;;  %s3889_s4 = inlined_call_operand.vmem [shape: f32[1,256], index: 4, kind: input, shape index: {}]   ;;  %s3890_s5 = inlined_call_operand.hbm [shape: f32[64,256], index: 5, kind: input, shape index: {}]   ;;  %s3891_s6 = inlined_call_operand.hbm [shape: f32[32,128], index: 6, kind: input, shape index: {}]   ;;  %s3892_s7 = inlined_call_operand.hbm [shape: f32[32,128], index: 7, kind: input, shape index: {}]   ;;  %s3893_s8 = inlined_call_operand.vmem [shape: f32[1,256], index: 8, kind: input, shape index: {}]   ;;  %s3894_s9 = inlined_call_operand.hbm [shape: f32[16,64], index: 9, kind: output, shape index: {}]  }
   0x1   :  { %15 = vsyncpa [#allocation6], 0 }
   0x2   :  { %16 = vsyncpa [#allocation9], 0 }
   0x3   :  { %17 = vsyncpa [#allocation12], 0  ;;  %s36_s11 = sshll.u32 %s3886_s1, 4  ;;  %s37_s11 = int_to_ptr.hbm [resolvable:$true] %s36_s11 }
   0x4   :  { %18 = vsyncpa [#allocation4], 0  ;;  %s3105_s12 = smov [#allocation5]   ;;  %s3106_s14 = smov 256  }
   0x5   :  { %s38_s13 = sshll.u32 %s3105_s12, 4  ;;  %s3107_s15 = smov 16   ;;  %s39_s13 = int_to_ptr.vmem [resolvable:$true] %s38_s13 }
   0x6   :  { %44 = dma.hbm_to_vmem [thread:$0]  %s37_s11, 512, %s39_s13, [#allocation6], %s3106_s14, %s3106_s14, %s3107_s15  }
   0x7   :  { %s62_s18 = sshll.u32 %s3888_s3, 4  ;;  %s3108_s19 = smov [#allocation8]   ;;  %s63_s18 = int_to_ptr.hbm [resolvable:$true] %s62_s18 }
   0x8   :  { %s64_s20 = sshll.u32 %s3108_s19, 4  ;;  %s90_s22 = sshll.u32 %s3891_s6, 4  ;;  %s65_s20 = int_to_ptr.vmem [resolvable:$true] %s64_s20  ;;  %s91_s22 = int_to_ptr.hbm [resolvable:$true] %s90_s22 }
   0x9   :  { %s3109_s23 = smov 128   ;;  %s3110_s24 = smov 8  }
   0xa   :  { %70 = dma.hbm_to_vmem [thread:$0]  %s63_s18, 512, %s65_s20, [#allocation9], %s3109_s23, %s3109_s23, %s3110_s24  }
   0xb   :  { %s23_s27 = sshll.u32 %s3885_s0, 4  ;;  %s3111_s3 = smov [#allocation11]   ;;  %s24_s27 = int_to_ptr.hbm [resolvable:$true] %s23_s27 }
   0xc   :  { %s92_s28 = sshll.u32 %s3111_s3, 4  ;;  %s3112_s6 = smov [#allocation2]   ;;  %s93_s28 = int_to_ptr.vmem [resolvable:$true] %s92_s28 }
   0xd   :  { %98 = dma.hbm_to_vmem [thread:$0]  %s91_s22, 512, %s93_s28, [#allocation12], %s3109_s23, %s3109_s23, %s3110_s24  }
   0xe   :  { %s25_s29 = sshll.u32 %s3112_s6, 4  ;;  %s49_s11 = sshll.u32 %s3887_s2, 4  ;;  %s26_s29 = int_to_ptr.vmem [resolvable:$true] %s25_s29  ;;  %s50_s11 = int_to_ptr.hbm [resolvable:$true] %s49_s11 }
   0xf   :  { %31 = dma.hbm_to_vmem [thread:$0]  %s24_s27, 256, %s26_s29, [#allocation3], %s3109_s23, %s3109_s23, %s3110_s24  }
  0x10   :  { %s77_s13 = sshll.u32 %s3890_s5, 4  ;;  %s3113_s16 = smov [#allocation7]   ;;  %s78_s13 = int_to_ptr.hbm [resolvable:$true] %s77_s13 }
  0x11   :  { %s51_s17 = sshll.u32 %s3113_s16, 4  ;;  %s3114_s18 = smov [#allocation10]   ;;  %s52_s17 = int_to_ptr.vmem [resolvable:$true] %s51_s17 }
  0x12   :  { %57 = dma.hbm_to_vmem [thread:$0]  %s50_s11, 512, %s52_s17, [#allocation6], %s3109_s23, %s3109_s23, %s3110_s24  }
  0x13   :  { %s79_s2 = sshll.u32 %s3114_s18, 4  ;;  %s103_s21 = sshll.u32 %s3892_s7, 4  ;;  %s80_s2 = int_to_ptr.vmem [resolvable:$true] %s79_s2  ;;  %s104_s21 = int_to_ptr.hbm [resolvable:$true] %s103_s21 }
  0x14   :  { %85 = dma.hbm_to_vmem [thread:$0]  %s78_s13, 2048, %s80_s2, [#allocation9], %s3106_s14, %s3106_s14, %s3107_s15  }
  0x15   :  { %s3115_s5 = smov [#allocation13]  }
  0x16   :  { %s105_s1 = sshll.u32 %s3115_s5, 4  ;;  %s106_s1 = int_to_ptr.vmem [resolvable:$true] %s105_s1 }
  0x17   :  { %111 = dma.hbm_to_vmem [thread:$0]  %s104_s21, 512, %s106_s1, [#allocation12], %s3109_s23, %s3109_s23, %s3110_s24  }
  0x18   :  { %3095 = dma.done.wait [#allocation3], 256  }
  0x19   :  { %3096 = vsyncadd [#allocation3], 4294967040 }
  0x1a   :  { %3097 = dma.done.wait [#allocation6], 1024  }
  0x1b   :  { %3098 = vsyncadd [#allocation6], 4294966272 }
  0x1c   :  { %3099 = dma.done.wait [#allocation9], 2560  }
  0x1d   :  { %3100 = vsyncadd [#allocation9], 4294964736 }
  0x1e   :  { %3101 = dma.done.wait [#allocation12], 1024  }
  0x1f   :  { %3102 = vsyncadd [#allocation12], 4294966272  ;;  %v3213_v0 = vld [vmem:[#allocation7 + $0x18] sm:$0xff]  ;;  %v3219_v3 = vld [vmem:[#allocation7 + $0x10] sm:$0xff]  ;;  %vm162_vm0 = vcmask 130048   ;;  %v3116_v13 = vmov 0.0  }
  0x20   :  { %v3215_v1 = vld [vmem:[#allocation8 + $0x18] sm:$0xff]  ;;  %231 = vmatpush.msra.mxu2 %v3213_v0  ;;  %v3221_v4 = vld [vmem:[#allocation8 + $0x10] sm:$0xff]  ;;  %v145_v5 = vld [vmem:[#allocation5 + $0x8] sm:$0xff]  ;;  %s3118_s15 = smov 64   ;;  %vm215_vm9 = vcmask 261120   ;;  %s3119_s22 = smov 96  }
  0x21   :  { %v147_v2 = vld [vmem:[#allocation5 + $0x18] sm:$0xff]  ;;  %252 = vmatpush.msra.mxu3 %v3215_v1  ;;  %v3223_v6 = vld [vmem:[#allocation7 + $0x8] sm:$0xff]  ;;  %v142_v8 = vld [vmem:[#allocation2] sm:$0xff]  ;;  %s2547_s6 = sshll.u32 %s3894_s9, 4  ;;  %s2548_s6 = int_to_ptr.hbm [resolvable:$true] %s2547_s6 }
  0x22   :  { %206 = vmatpush.msra.mxu1 %v147_v2  ;;  %v3225_v7 = vld [vmem:[#allocation8 + $0x8] sm:$0xff]  ;;  %232 = vmatpush.msra.mxu2 %v3219_v3  ;;  %v146_v9 = vld [vmem:[#allocation5 + $0x10] sm:$0xff]  ;;  %v3229_v10 = vld [vmem:[#allocation7] sm:$0xff] }
  0x23   :  { %253 = vmatpush.msra.mxu3 %v3221_v4  ;;  %v3231_v11 = vld [vmem:[#allocation8] sm:$0xff]  ;;  %183 = vmatpush.msra.mxu0 %v146_v9  ;;  %v143_v14 = vld [vmem:[#allocation2 + $0x8] sm:$0xff]  ;;  %v3278_v15 = vld [vmem:[%s3889_s4] sm:$0x3]  ;;  %s3117_s4 = smov 32  }
  0x24   :  { %207 = vmatpush.msra.mxu1 %v145_v5  ;;  %v144_v12 = vld [vmem:[#allocation5] sm:$0xff]  ;;  %233 = vmatpush.msra.mxu2 %v3223_v6  ;;  %v159_v16 = vperm.slane %v3278_v15, 1  ;;  %v158_v22 = vperm.slane %v3278_v15, 0 }
  0x25   :  { %254 = vmatpush.msra.mxu3 %v3225_v7  ;;  %2565 = vmatmul.msk.f32.vlgmr.msra.gmra.mxu1 %vm162_vm0, %v142_v8 }
  0x26   :  { %184 = vmatpush.msra.mxu0 %v144_v12  ;;  %234 = vmatpush.msra.mxu2 %v3229_v10 }
  0x27   :  { %255 = vmatpush.msra.mxu3 %v3231_v11  ;;  %235 = vmatmul.f32.vlgmr.msra.gmra.mxu2 %v3116_v13 }
  0x28   :  { %256 = vmatmul.f32.vlgmr.msra.gmra.mxu3 %v3116_v13  ;;  %2563 = vmatmul.msk.f32.vlgmr.msra.gmra.mxu0 %vm162_vm0, %v142_v8 }
  0x29   :  { %385 = vmatpush.msrb.mxu3 %v3215_v1  ;;  %355 = vmatpush.msrb.mxu2 %v3213_v0 }
  0x2a   :  { %525 = vmatpush.msrb.mxu1 %v3215_v1  ;;  %495 = vmatpush.msrb.mxu0 %v3213_v0 }
  0x2b   :  { %386 = vmatpush.msrb.mxu3 %v3221_v4  ;;  %356 = vmatpush.msrb.mxu2 %v3219_v3 }
  0x2c   :  { %526 = vmatpush.msrb.mxu1 %v3221_v4  ;;  %496 = vmatpush.msrb.mxu0 %v3219_v3 }
  0x2d   :  { %387 = vmatpush.msrb.mxu3 %v3225_v7  ;;  %2566 = vmatmul.msk.f32.gmra.mxu1 %vm162_vm0, %v143_v14 }
  0x2e   :  { %357 = vmatpush.msrb.mxu2 %v3223_v6  ;;  %527 = vmatpush.msrb.mxu1 %v3225_v7 }
  0x2f   :  { %388 = vmatpush.msrb.mxu3 %v3231_v11  ;;  %497 = vmatpush.msrb.mxu0 %v3223_v6 }
  0x30   :  { %358 = vmatpush.msrb.mxu2 %v3229_v10  ;;  %528 = vmatpush.msrb.mxu1 %v3231_v11 }
  0x31   :  { %2564 = vmatmul.msk.f32.gmra.mxu0 %vm162_vm0, %v143_v14  ;;  %665 = vmatpush.msra.mxu3 %v3215_v1 }
  0x32   :  { %498 = vmatpush.msrb.mxu0 %v3229_v10  ;;  %635 = vmatpush.msra.mxu2 %v3213_v0 }
  0x33   :  { %798 = vmatpush.msra.mxu1 %v3215_v1  ;;  %666 = vmatpush.msra.mxu3 %v3221_v4 }
  0x34   :  { %772 = vmatpush.msra.mxu0 %v3213_v0  ;;  %636 = vmatpush.msra.mxu2 %v3219_v3 }
  0x35   :  { %799 = vmatpush.msra.mxu1 %v3221_v4  ;;  %667 = vmatpush.msra.mxu3 %v3225_v7 }
  0x36   :  { %773 = vmatpush.msra.mxu0 %v3219_v3  ;;  %637 = vmatpush.msra.mxu2 %v3223_v6 }
  0x37   :  { %800 = vmatpush.msra.mxu1 %v3225_v7  ;;  %668 = vmatpush.msra.mxu3 %v3231_v11 }
  0x38   :  { %774 = vmatpush.msra.mxu0 %v3223_v6  ;;  %638 = vmatpush.msra.mxu2 %v3229_v10 }
  0x39   :  { %801 = vmatpush.msra.mxu1 %v3231_v11 }
  0x3a   :  { %775 = vmatpush.msra.mxu0 %v3229_v10 }
  0xa2   :  { %v209_v17 = vpop.f32.mrf.mxu1 }
  0xa3   :  { %v3281_v18 = vadd.f32 %v209_v17, %v159_v16 }
  0xa5   :  { %v186_v24 = vpop.f32.mrf.mxu0 }
  0xa6   :  { %v3289_v26 = vadd.f32 %v186_v24, %v158_v22 }
  0xaa   :  { %v212_v19 = vpop.f32.mrf.mxu1  ;;  %v236_v27 = vpop.f32.mrf.mxu2 }
  0xab   :  { %v3283_v20 = vadd.f32 %v212_v19, %v159_v16  ;;  %v257_v21 = vpop.f32.mrf.mxu3  ;;  %v239_v28 = vadd.f32 %v236_v27, %v3289_v26 }
  0xac   :  { %v261_v23 = vrot.slane %v257_v21, 2 }
  0xad   :  { %v2567_v32 = vmul.f32 -1.442695, %v239_v28 }
  0xae   :  { %v263_v25 = vadd.f32 %v261_v23, %v3283_v20 }
  0xb0   :  { %2647 = vtanh.f32 %v263_v25  ;;  %v2568_v31 = vmul.f32 -1.442695, %v263_v25 }
  0xb1   :  { %2649 = vtanh.f32 %v239_v28 }
  0xb2   :  { %2651 = vpow2.f32 %v2568_v31 }
  0xb3   :  { %2653 = vpow2.f32 %v2567_v32 }
  0xb6   :  { %v2648_v29 = vpop.eup %2647 }
  0xb7   :  { %323 = vrot.lane.b32.xlu0 %v2648_v29, %s3117_s4  ;;  %v2650_v30 = vpop.eup %2649 }
  0xb8   :  { %v2652_v33 = vpop.eup %2651 }
  0xb9   :  { %v286_v34 = vadd.f32 1.0, %v2652_v33  ;;  %v2654_v35 = vpop.eup %2653 }
  0xba   :  { %v267_v36 = vadd.f32 1.0, %v2654_v35 }
  0xbb   :  { %2655 = vrcp.f32 %v286_v34  ;;  %v298_v45 = vand.u32 2147483648, %v286_v34  ;;  %vm292_vm2 = vweird.f32 %v286_v34  ;;  %v296_v46 = vand.u32 2147483647, %v286_v34 }
  0xbc   :  { %2657 = vrcp.f32 %v267_v36  ;;  %vm273_vm5 = vweird.f32 %v267_v36  ;;  %v279_v52 = vand.u32 2147483648, %v267_v36  ;;  %v277_v55 = vand.u32 2147483647, %v267_v36 }
  0xbd   :  { %v299_v49 = vor.u32 1.1754944e-38, %v298_v45  ;;  %vm297_vm4 = vcmp.eq.f32.partialorder %v296_v46, 8.507059e+37 }
  0xbe   :  { %v280_v56 = vor.u32 1.1754944e-38, %v279_v52  ;;  %vm278_vm8 = vcmp.eq.f32.partialorder %v277_v55, 8.507059e+37 }
  0xbf   :  { %306 = vrot.lane.b32.xlu0 %v2650_v30, %s3117_s4 }
  0xc1   :  { %v2656_v37 = vpop.eup %2655 }
  0xc2   :  { %v288_v38 = vmul.f32 %v2656_v37, %v286_v34  ;;  %v2658_v40 = vpop.eup %2657  ;;  %vm293_vm1 = vweird.f32 %v2656_v37 }
  0xc3   :  { %v269_v42 = vmul.f32 %v2658_v40, %v267_v36  ;;  %vm294_vm3 = vmor %vm292_vm2, %vm293_vm1  ;;  %vm274_vm6 = vweird.f32 %v2658_v40 }
  0xc4   :  { %v289_v39 = vsub.f32 1.0, %v288_v38  ;;  %vm275_vm7 = vmor %vm273_vm5, %vm274_vm6 }
  0xc5   :  { %v270_v44 = vsub.f32 1.0, %v269_v42 }
  0xc6   :  { %v290_v41 = vmul.f32 %v2656_v37, %v289_v39 }
  0xc7   :  { %v271_v48 = vmul.f32 %v2658_v40, %v270_v44 }
  0xc8   :  { %v291_v43 = vadd.f32 %v2656_v37, %v290_v41 }
  0xc9   :  { %v272_v54 = vadd.f32 %v2658_v40, %v271_v48 }
  0xca   :  { %v295_v47 = vsel %vm294_vm3, %v2656_v37, %v291_v43 }
  0xcb   :  { %v300_v51 = vsel %vm297_vm4, %v299_v49, %v295_v47  ;;  %v276_v57 = vsel %vm275_vm7, %v2658_v40, %v272_v54 }
  0xcc   :  { %v281_v59 = vsel %vm278_vm8, %v280_v56, %v276_v57  ;;  %v321_v61 = vmul.f32 0.0, %v300_v51 }
  0xcd   :  { %v304_v2 = vmul.f32 0.0, %v281_v59 }
 0x129   :  { %v324_v50 = vpop.permute.xlu0 %323 }
 0x12a   :  { %v326_v53 = vmul.f32 %v324_v50, %v300_v51 }
 0x12c   :  { %328 = vrot.lane.b32.xlu1 %v326_v53, %s3117_s4 }
 0x131   :  { %v307_v58 = vpop.permute.xlu0 %306 }
 0x132   :  { %v309_v60 = vmul.f32 %v307_v58, %v281_v59 }
 0x134   :  { %311 = vrot.lane.b32.xlu1 %v309_v60, %s3117_s4 }
 0x19e   :  { %v329_v62 = vpop.permute.xlu1 %328 }
 0x19f   :  { %v3296_v63 = vadd.f32 %v329_v62, %v321_v61 }
 0x1a1   :  { %2659 = vtanh.f32 %v3296_v63 }
 0x1a6   :  { %v312_v5 = vpop.permute.xlu1 %311 }
 0x1a7   :  { %v2660_v8 = vpop.eup %2659  ;;  %v3299_v9 = vadd.f32 %v312_v5, %v304_v2  ;;  %v458_v5 = vrot.slane %v3296_v63, 2 }
 0x1a8   :  { %334 = vrot.lane.b32.xlu2 %v2660_v8, %s3117_s4 }
 0x1a9   :  { %2661 = vtanh.f32 %v3299_v9 }
 0x1af   :  { %v2662_v12 = vpop.eup %2661 }
 0x1b0   :  { %317 = vrot.lane.b32.xlu2 %v2662_v12, %s3117_s4 }
 0x202   :  { %v335_v14 = vpop.permute.xlu2 %334 }
 0x203   :  { %v3304_v16 = vmul.f32 %v335_v14, %v300_v51 }
 0x205   :  { %v368_v17 = vrot.slane %v3304_v16, 6 }
 0x207   :  { %369 = vrot.lane.b32.xlu0 %v368_v17, %s3118_s15  ;;  %v438_v17 = vrot.slane %v3299_v9, 6 }
 0x20a   :  { %v318_v19 = vpop.permute.xlu2 %317 }
 0x20b   :  { %v3308_v21 = vmul.f32 %v318_v19, %v281_v59 }
 0x20d   :  { %339 = vrot.lane.b32.xlu1 %v3308_v21, %s3118_s15 }
 0x279   :  { %v370_v23 = vpop.permute.xlu0 %369 }
 0x27a   :  { %2570 = vmatmul.msk.f32.vlgmr.msrb.gmra.mxu3 %vm215_vm9, %v370_v23 }
 0x27b   :  { %937 = vmatpush.msrb.mxu3 %v3215_v1 }
 0x27d   :  { %938 = vmatpush.msrb.mxu3 %v3221_v4 }
 0x27f   :  { %v340_v24 = vpop.permute.xlu1 %339  ;;  %939 = vmatpush.msrb.mxu3 %v3225_v7 }
 0x280   :  { %2569 = vmatmul.msk.f32.vlgmr.msrb.gmra.mxu2 %vm215_vm9, %v340_v24 }
 0x281   :  { %940 = vmatpush.msrb.mxu3 %v3231_v11  ;;  %907 = vmatpush.msrb.mxu2 %v3213_v0 }
 0x283   :  { %908 = vmatpush.msrb.mxu2 %v3219_v3 }
 0x285   :  { %909 = vmatpush.msrb.mxu2 %v3223_v6 }
 0x287   :  { %910 = vmatpush.msrb.mxu2 %v3229_v10 }
 0x2fd   :  { %v390_v25 = vpop.f32.mrf.mxu3 }
 0x2fe   :  { %v394_v27 = vrot.slane %v390_v25, 4 }
 0x300   :  { %v396_v28 = vadd.f32 %v394_v27, %v3283_v20 }
 0x302   :  { %2663 = vtanh.f32 %v396_v28  ;;  %v2572_v34 = vmul.f32 -1.442695, %v396_v28 }
 0x303   :  { %v360_v29 = vpop.f32.mrf.mxu2 }
 0x304   :  { %v364_v30 = vrot.slane %v360_v29, 6 }
 0x306   :  { %v366_v31 = vadd.f32 %v364_v30, %v3289_v26 }
 0x308   :  { %v2664_v32 = vpop.eup %2663  ;;  %2665 = vtanh.f32 %v366_v31  ;;  %v2571_v39 = vmul.f32 -1.442695, %v366_v31 }
 0x309   :  { %462 = vrot.lane.b32.xlu2 %v2664_v32, %s3117_s4  ;;  %2667 = vpow2.f32 %v2572_v34 }
 0x30e   :  { %v2666_v33 = vpop.eup %2665 }
 0x30f   :  { %442 = vrot.lane.b32.xlu0 %v2666_v33, %s3117_s4  ;;  %v2668_v35 = vpop.eup %2667 }
 0x310   :  { %v419_v36 = vadd.f32 1.0, %v2668_v35 }
 0x312   :  { %2669 = vrcp.f32 %v419_v36  ;;  %v431_v43 = vand.u32 2147483648, %v419_v36  ;;  %vm425_vm11 = vweird.f32 %v419_v36  ;;  %v429_v45 = vand.u32 2147483647, %v419_v36 }
 0x313   :  { %2671 = vpow2.f32 %v2571_v39 }
 0x314   :  { %v432_v48 = vor.u32 1.1754944e-38, %v431_v43  ;;  %vm430_vm13 = vcmp.eq.f32.partialorder %v429_v45, 8.507059e+37 }
 0x318   :  { %v2670_v37 = vpop.eup %2669 }
 0x319   :  { %v421_v38 = vmul.f32 %v2670_v37, %v419_v36  ;;  %vm426_vm10 = vweird.f32 %v2670_v37  ;;  %v2672_v44 = vpop.eup %2671 }
 0x31a   :  { %vm427_vm12 = vmor %vm425_vm11, %vm426_vm10  ;;  %v400_v47 = vadd.f32 1.0, %v2672_v44  ;;  %vm1306_vm11 = vcmask 1041408  }
 0x31b   :  { %v422_v40 = vsub.f32 1.0, %v421_v38  ;;  %v3358_v38 = vpop.f32.mrf.mxu0 }
 0x31c   :  { %2673 = vrcp.f32 %v400_v47  ;;  %v412_v57 = vand.u32 2147483648, %v400_v47  ;;  %vm406_vm15 = vweird.f32 %v400_v47  ;;  %v410_v58 = vand.u32 2147483647, %v400_v47 }
 0x31d   :  { %v423_v41 = vmul.f32 %v2670_v37, %v422_v40 }
 0x31e   :  { %v413_v60 = vor.u32 1.1754944e-38, %v412_v57  ;;  %vm411_vm1 = vcmp.eq.f32.partialorder %v410_v58, 8.507059e+37 }
 0x31f   :  { %v424_v42 = vadd.f32 %v2670_v37, %v423_v41 }
 0x321   :  { %v428_v46 = vsel %vm427_vm12, %v2670_v37, %v424_v42  ;;  %vm1308_vm12 = vcmask 1043456  }
 0x322   :  { %v433_v49 = vsel %vm430_vm13, %v432_v48, %v428_v46  ;;  %v2674_v52 = vpop.eup %2673 }
 0x323   :  { %v402_v53 = vmul.f32 %v2674_v52, %v400_v47  ;;  %vm407_vm14 = vweird.f32 %v2674_v52  ;;  %v460_v8 = vmul.f32 %v458_v5, %v433_v49 }
 0x324   :  { %vm408_vm0 = vmor %vm406_vm15, %vm407_vm14 }
 0x325   :  { %v403_v54 = vsub.f32 1.0, %v402_v53 }
 0x327   :  { %v404_v55 = vmul.f32 %v2674_v52, %v403_v54 }
 0x329   :  { %v405_v56 = vadd.f32 %v2674_v52, %v404_v55 }
 0x32b   :  { %v409_v59 = vsel %vm408_vm0, %v2674_v52, %v405_v56 }
 0x32c   :  { %v414_v62 = vsel %vm411_vm1, %v413_v60, %v409_v59 }
 0x32d   :  { %v440_v19 = vmul.f32 %v438_v17, %v414_v62 }
 0x363   :  { %v463_v50 = vpop.permute.xlu2 %462 }
 0x364   :  { %v465_v51 = vmul.f32 %v463_v50, %v433_v49 }
 0x366   :  { %467 = vrot.lane.b32.xlu1 %v465_v51, %s3117_s4 }
 0x381   :  { %v443_v61 = vpop.permute.xlu0 %442 }
 0x382   :  { %v445_v2 = vmul.f32 %v443_v61, %v414_v62 }
 0x384   :  { %447 = vrot.lane.b32.xlu2 %v445_v2, %s3117_s4 }
 0x3d8   :  { %v468_v12 = vpop.permute.xlu1 %467 }
 0x3d9   :  { %v3329_v14 = vadd.f32 %v468_v12, %v460_v8 }
 0x3db   :  { %2675 = vtanh.f32 %v3329_v14 }
 0x3de   :  { %v448_v23 = vpop.permute.xlu2 %447 }
 0x3df   :  { %v3333_v24 = vadd.f32 %v448_v23, %v440_v19 }
 0x3e1   :  { %v2676_v25 = vpop.eup %2675  ;;  %2677 = vtanh.f32 %v3333_v24 }
 0x3e2   :  { %473 = vrot.lane.b32.xlu0 %v2676_v25, %s3117_s4 }
 0x3e7   :  { %v2678_v27 = vpop.eup %2677 }
 0x3e8   :  { %453 = vrot.lane.b32.xlu1 %v2678_v27, %s3117_s4 }
 0x454   :  { %v474_v63 = vpop.permute.xlu0 %473 }
 0x455   :  { %v3338_v28 = vmul.f32 %v474_v63, %v433_v49 }
 0x457   :  { %v508_v29 = vrot.slane %v3338_v28, 4 }
 0x459   :  { %509 = vrot.lane.b32.xlu2 %v508_v29, %s3118_s15  ;;  %v598_v29 = vrot.slane %v3329_v14, 2 }
 0x45a   :  { %v454_v9 = vpop.permute.xlu1 %453 }
 0x45b   :  { %v3342_v30 = vmul.f32 %v454_v9, %v414_v62 }
 0x45d   :  { %v478_v31 = vrot.slane %v3342_v30, 2 }
 0x45f   :  { %479 = vrot.lane.b32.xlu0 %v478_v31, %s3118_s15 }
 0x4b3   :  { %v510_v32 = vpop.permute.xlu2 %509 }
 0x4b4   :  { %2574 = vmatmul.msk.f32.vlgmr.msrb.gmra.mxu1 %vm215_vm9, %v510_v32 }
 0x4b5   :  { %1077 = vmatpush.msrb.mxu1 %v3215_v1 }
 0x4b7   :  { %1078 = vmatpush.msrb.mxu1 %v3221_v4 }
 0x4b9   :  { %1079 = vmatpush.msrb.mxu1 %v3225_v7 }
 0x4bb   :  { %1080 = vmatpush.msrb.mxu1 %v3231_v11 }
 0x4d1   :  { %v480_v33 = vpop.permute.xlu0 %479 }
 0x4d2   :  { %2573 = vmatmul.msk.f32.vlgmr.msrb.gmra.mxu0 %vm215_vm9, %v480_v33  ;;  %v578_v33 = vrot.slane %v3333_v24, 6 }
 0x4d3   :  { %1047 = vmatpush.msrb.mxu0 %v3213_v0 }
 0x4d5   :  { %1048 = vmatpush.msrb.mxu0 %v3219_v3 }
 0x4d7   :  { %1049 = vmatpush.msrb.mxu0 %v3223_v6 }
 0x4d9   :  { %1050 = vmatpush.msrb.mxu0 %v3229_v10 }
 0x531   :  { %v530_v34 = vpop.f32.mrf.mxu1 }
 0x532   :  { %v534_v35 = vrot.slane %v530_v34, 6 }
 0x534   :  { %v536_v36 = vadd.f32 %v534_v35, %v3283_v20 }
 0x536   :  { %2679 = vtanh.f32 %v536_v36  ;;  %v2576_v43 = vmul.f32 -1.442695, %v536_v36 }
 0x53c   :  { %v2680_v37 = vpop.eup %2679 }
 0x53d   :  { %602 = vrot.lane.b32.xlu1 %v2680_v37, %s3117_s4 }
 0x54f   :  { %v500_v39 = vpop.f32.mrf.mxu0 }
 0x550   :  { %v504_v40 = vrot.slane %v500_v39, 4 }
 0x552   :  { %v506_v41 = vadd.f32 %v504_v40, %v3289_v26 }
 0x554   :  { %2681 = vtanh.f32 %v506_v41  ;;  %v2575_v44 = vmul.f32 -1.442695, %v506_v41 }
 0x555   :  { %2683 = vpow2.f32 %v2576_v43  ;;  %v1307_v43 = vsel %vm1306_vm11, %v3308_v21, %v3342_v30 }
 0x556   :  { %2685 = vpow2.f32 %v2575_v44 }
 0x55a   :  { %v2682_v42 = vpop.eup %2681 }
 0x55b   :  { %582 = vrot.lane.b32.xlu2 %v2682_v42, %s3117_s4  ;;  %v2684_v45 = vpop.eup %2683 }
 0x55c   :  { %v559_v46 = vadd.f32 1.0, %v2684_v45  ;;  %v2686_v47 = vpop.eup %2685 }
 0x55d   :  { %v540_v48 = vadd.f32 1.0, %v2686_v47 }
 0x55e   :  { %2687 = vrcp.f32 %v559_v46  ;;  %v571_v57 = vand.u32 2147483648, %v559_v46  ;;  %vm565_vm3 = vweird.f32 %v559_v46  ;;  %v569_v58 = vand.u32 2147483647, %v559_v46 }
 0x55f   :  { %2689 = vrcp.f32 %v540_v48  ;;  %v552_v8 = vand.u32 2147483648, %v540_v48  ;;  %vm546_vm7 = vweird.f32 %v540_v48  ;;  %v550_v17 = vand.u32 2147483647, %v540_v48 }
 0x560   :  { %v572_v61 = vor.u32 1.1754944e-38, %v571_v57  ;;  %vm570_vm5 = vcmp.eq.f32.partialorder %v569_v58, 8.507059e+37 }
 0x561   :  { %v553_v23 = vor.u32 1.1754944e-38, %v552_v8  ;;  %vm551_vm10 = vcmp.eq.f32.partialorder %v550_v17, 8.507059e+37 }
 0x564   :  { %v2688_v49 = vpop.eup %2687 }
 0x565   :  { %v561_v50 = vmul.f32 %v2688_v49, %v559_v46  ;;  %v2690_v51 = vpop.eup %2689  ;;  %vm566_vm2 = vweird.f32 %v2688_v49 }
 0x566   :  { %v542_v53 = vmul.f32 %v2690_v51, %v540_v48  ;;  %vm567_vm4 = vmor %vm565_vm3, %vm566_vm2  ;;  %vm547_vm6 = vweird.f32 %v2690_v51 }
 0x567   :  { %v562_v52 = vsub.f32 1.0, %v561_v50  ;;  %vm548_vm8 = vmor %vm546_vm7, %vm547_vm6 }
 0x568   :  { %v543_v55 = vsub.f32 1.0, %v542_v53 }
 0x569   :  { %v563_v54 = vmul.f32 %v2688_v49, %v562_v52 }
 0x56a   :  { %v544_v59 = vmul.f32 %v2690_v51, %v543_v55 }
 0x56b   :  { %v564_v56 = vadd.f32 %v2688_v49, %v563_v54 }
 0x56c   :  { %v545_v62 = vadd.f32 %v2690_v51, %v544_v59 }
 0x56d   :  { %v568_v60 = vsel %vm567_vm4, %v2688_v49, %v564_v56 }
 0x56e   :  { %v573_v5 = vsel %vm570_vm5, %v572_v61, %v568_v60  ;;  %v549_v19 = vsel %vm548_vm8, %v2690_v51, %v545_v62  ;;  %vm1310_vm5 = vcmask 1045504  }
 0x56f   :  { %v554_v25 = vsel %vm551_vm10, %v553_v23, %v549_v19  ;;  %v600_v9 = vmul.f32 %v598_v29, %v573_v5 }
 0x570   :  { %v580_v34 = vmul.f32 %v578_v33, %v554_v25 }
 0x5af   :  { %v603_v2 = vpop.permute.xlu1 %602 }
 0x5b0   :  { %v605_v12 = vmul.f32 %v603_v2, %v573_v5 }
 0x5b2   :  { %607 = vrot.lane.b32.xlu0 %v605_v12, %s3117_s4 }
 0x5b5   :  { %v583_v27 = vpop.permute.xlu2 %582 }
 0x5b6   :  { %v585_v63 = vmul.f32 %v583_v27, %v554_v25 }
 0x5b8   :  { %587 = vrot.lane.b32.xlu1 %v585_v63, %s3117_s4 }
 0x624   :  { %v608_v31 = vpop.permute.xlu0 %607 }
 0x625   :  { %v3365_v32 = vadd.f32 %v608_v31, %v600_v9 }
 0x627   :  { %2691 = vtanh.f32 %v3365_v32  ;;  %v735_v29 = vrot.slane %v3365_v32, 2 }
 0x62a   :  { %v588_v35 = vpop.permute.xlu1 %587 }
 0x62b   :  { %v3369_v36 = vadd.f32 %v588_v35, %v580_v34 }
 0x62d   :  { %v2692_v37 = vpop.eup %2691  ;;  %2693 = vtanh.f32 %v3369_v36  ;;  %v715_v35 = vrot.slane %v3369_v36, 6 }
 0x62e   :  { %613 = vrot.lane.b32.xlu2 %v2692_v37, %s3117_s4 }
 0x633   :  { %v2694_v39 = vpop.eup %2693 }
 0x634   :  { %593 = vrot.lane.b32.xlu0 %v2694_v39, %s3117_s4 }
 0x688   :  { %v614_v14 = vpop.permute.xlu2 %613 }
 0x689   :  { %v3374_v40 = vmul.f32 %v614_v14, %v573_v5 }
 0x68b   :  { %v648_v41 = vrot.slane %v3374_v40, 2 }
 0x68d   :  { %649 = vrot.lane.b32.xlu1 %v648_v41, %s3118_s15 }
 0x6a6   :  { %v594_v24 = vpop.permute.xlu0 %593 }
 0x6a7   :  { %v596_v42 = vmul.f32 %v594_v24, %v554_v25 }
 0x6a9   :  { %v618_v44 = vrot.slane %v596_v42, 4  ;;  %v3382_v45 = vsel %vm1308_vm12, %v1307_v43, %v596_v42 }
 0x6ab   :  { %619 = vrot.lane.b32.xlu2 %v618_v44, %s3118_s15 }
 0x6ff   :  { %v650_v46 = vpop.permute.xlu1 %649 }
 0x700   :  { %2578 = vmatmul.msk.f32.vlgmr.msra.gmra.mxu3 %vm215_vm9, %v650_v46 }
 0x701   :  { %1217 = vmatpush.msra.mxu3 %v3215_v1 }
 0x703   :  { %1218 = vmatpush.msra.mxu3 %v3221_v4 }
 0x705   :  { %v620_v47 = vpop.permute.xlu2 %619  ;;  %1219 = vmatpush.msra.mxu3 %v3225_v7 }
 0x706   :  { %2577 = vmatmul.msk.f32.vlgmr.msra.gmra.mxu2 %vm215_vm9, %v620_v47 }
 0x707   :  { %1220 = vmatpush.msra.mxu3 %v3231_v11  ;;  %1187 = vmatpush.msra.mxu2 %v3213_v0 }
 0x709   :  { %1188 = vmatpush.msra.mxu2 %v3219_v3 }
 0x70b   :  { %1189 = vmatpush.msra.mxu2 %v3223_v6 }
 0x70d   :  { %1190 = vmatpush.msra.mxu2 %v3229_v10 }
 0x783   :  { %v670_v21 = vpop.f32.mrf.mxu3 }
 0x784   :  { %v673_v1 = vadd.f32 %v670_v21, %v3283_v20 }
 0x786   :  { %2695 = vtanh.f32 %v673_v1  ;;  %v2580_v0 = vmul.f32 -1.442695, %v673_v1 }
 0x789   :  { %v640_v4 = vpop.f32.mrf.mxu2 }
 0x78a   :  { %v644_v30 = vrot.slane %v640_v4, 2 }
 0x78c   :  { %v2696_v48 = vpop.eup %2695  ;;  %v646_v7 = vadd.f32 %v644_v30, %v3289_v26  ;;  %v3426_v30 = vadd.f32 %v3358_v38, %v158_v22 }
 0x78d   :  { %739 = vrot.lane.b32.xlu0 %v2696_v48, %s3117_s4 }
 0x78e   :  { %2697 = vtanh.f32 %v646_v7  ;;  %v2579_v3 = vmul.f32 -1.442695, %v646_v7 }
 0x78f   :  { %2699 = vpow2.f32 %v2580_v0 }
 0x790   :  { %2701 = vpow2.f32 %v2579_v3 }
 0x794   :  { %v2698_v11 = vpop.eup %2697 }
 0x795   :  { %719 = vrot.lane.b32.xlu1 %v2698_v11, %s3117_s4  ;;  %v2700_v6 = vpop.eup %2699 }
 0x796   :  { %v696_v10 = vadd.f32 1.0, %v2700_v6  ;;  %v2702_v20 = vpop.eup %2701 }
 0x797   :  { %v677_v49 = vadd.f32 1.0, %v2702_v20 }
 0x798   :  { %2703 = vrcp.f32 %v696_v10  ;;  %v708_v57 = vand.u32 2147483648, %v696_v10  ;;  %vm702_vm14 = vweird.f32 %v696_v10  ;;  %v706_v58 = vand.u32 2147483647, %v696_v10 }
 0x799   :  { %2705 = vrcp.f32 %v677_v49  ;;  %v689_v12 = vand.u32 2147483648, %v677_v49  ;;  %vm683_vm2 = vweird.f32 %v677_v49  ;;  %v687_v17 = vand.u32 2147483647, %v677_v49 }
 0x79a   :  { %v709_v61 = vor.u32 1.1754944e-38, %v708_v57  ;;  %vm707_vm0 = vcmp.eq.f32.partialorder %v706_v58, 8.507059e+37 }
 0x79b   :  { %v690_v23 = vor.u32 1.1754944e-38, %v689_v12  ;;  %vm688_vm4 = vcmp.eq.f32.partialorder %v687_v17, 8.507059e+37 }
 0x79e   :  { %v2704_v50 = vpop.eup %2703 }
 0x79f   :  { %v698_v51 = vmul.f32 %v2704_v50, %v696_v10  ;;  %v2706_v26 = vpop.eup %2705  ;;  %vm703_vm13 = vweird.f32 %v2704_v50 }
 0x7a0   :  { %v679_v54 = vmul.f32 %v2706_v26, %v677_v49  ;;  %vm704_vm15 = vmor %vm702_vm14, %vm703_vm13  ;;  %vm684_vm1 = vweird.f32 %v2706_v26 }
 0x7a1   :  { %v699_v52 = vsub.f32 1.0, %v698_v51  ;;  %vm685_vm3 = vmor %vm683_vm2, %vm684_vm1 }
 0x7a2   :  { %v680_v56 = vsub.f32 1.0, %v679_v54 }
 0x7a3   :  { %v700_v53 = vmul.f32 %v2704_v50, %v699_v52 }
 0x7a4   :  { %v681_v60 = vmul.f32 %v2706_v26, %v680_v56 }
 0x7a5   :  { %v701_v55 = vadd.f32 %v2704_v50, %v700_v53 }
 0x7a6   :  { %v682_v8 = vadd.f32 %v2706_v26, %v681_v60 }
 0x7a7   :  { %v705_v59 = vsel %vm704_vm15, %v2704_v50, %v701_v55 }
 0x7a8   :  { %v710_v2 = vsel %vm707_vm0, %v709_v61, %v705_v59  ;;  %v686_v19 = vsel %vm685_vm3, %v2706_v26, %v682_v8 }
 0x7a9   :  { %v691_v27 = vsel %vm688_vm4, %v690_v23, %v686_v19  ;;  %v737_v9 = vmul.f32 %v735_v29, %v710_v2 }
 0x7aa   :  { %v717_v37 = vmul.f32 %v715_v35, %v691_v27 }
 0x7ff   :  { %v740_v62 = vpop.permute.xlu0 %739 }
 0x800   :  { %v742_v5 = vmul.f32 %v740_v62, %v710_v2 }
 0x802   :  { %744 = vrot.lane.b32.xlu2 %v742_v5, %s3117_s4 }
 0x807   :  { %v720_v25 = vpop.permute.xlu1 %719 }
 0x808   :  { %v722_v63 = vmul.f32 %v720_v25, %v691_v27 }
 0x80a   :  { %724 = vrot.lane.b32.xlu0 %v722_v63, %s3117_s4 }
 0x85c   :  { %v745_v31 = vpop.permute.xlu2 %744 }
 0x85d   :  { %v3402_v33 = vadd.f32 %v745_v31, %v737_v9 }
 0x85f   :  { %2707 = vtanh.f32 %v3402_v33  ;;  %v871_v25 = vrot.slane %v3402_v33, 2 }
 0x865   :  { %v2708_v34 = vpop.eup %2707 }
 0x866   :  { %750 = vrot.lane.b32.xlu1 %v2708_v34, %s3117_s4 }
 0x87c   :  { %v725_v39 = vpop.permute.xlu0 %724 }
 0x87d   :  { %v3407_v14 = vadd.f32 %v725_v39, %v717_v37 }
 0x87f   :  { %2709 = vtanh.f32 %v3407_v14  ;;  %v851_v9 = vrot.slane %v3407_v14, 6 }
 0x885   :  { %v2710_v41 = vpop.eup %2709 }
 0x886   :  { %730 = vrot.lane.b32.xlu2 %v2710_v41, %s3117_s4 }
 0x8d8   :  { %v751_v32 = vpop.permute.xlu1 %750 }
 0x8d9   :  { %v3411_v24 = vmul.f32 %v751_v32, %v710_v2 }
 0x8db   :  { %782 = vrot.lane.b32.xlu0 %v3411_v24, %s3118_s15 }
 0x8e0   :  { %v731_v42 = vpop.permute.xlu2 %730 }
 0x8e1   :  { %v733_v43 = vmul.f32 %v731_v42, %v691_v27 }
 0x8e3   :  { %v755_v44 = vrot.slane %v733_v43, 6  ;;  %v3417_v36 = vsel %vm1310_vm5, %v3382_v45, %v733_v43 }
 0x8e5   :  { %756 = vrot.lane.b32.xlu1 %v755_v44, %s3118_s15 }
 0x94d   :  { %v783_v46 = vpop.permute.xlu0 %782 }
 0x94e   :  { %2582 = vmatmul.msk.f32.vlgmr.msra.gmra.mxu1 %vm215_vm9, %v783_v46 }
 0x957   :  { %v757_v47 = vpop.permute.xlu1 %756 }
 0x958   :  { %2581 = vmatmul.msk.f32.vlgmr.msra.gmra.mxu0 %vm215_vm9, %v757_v47 }
 0x9cb   :  { %v803_v21 = vpop.f32.mrf.mxu1 }
 0x9cc   :  { %v807_v1 = vrot.slane %v803_v21, 2 }
 0x9ce   :  { %v809_v4 = vadd.f32 %v807_v1, %v3281_v18 }
 0x9d0   :  { %2711 = vtanh.f32 %v809_v4  ;;  %v2584_v0 = vmul.f32 -1.442695, %v809_v4 }
 0x9d5   :  { %v777_v45 = vpop.f32.mrf.mxu0 }
 0x9d6   :  { %v2712_v48 = vpop.eup %2711  ;;  %v780_v7 = vadd.f32 %v777_v45, %v3426_v30 }
 0x9d7   :  { %875 = vrot.lane.b32.xlu2 %v2712_v48, %s3117_s4 }
 0x9d8   :  { %2713 = vtanh.f32 %v780_v7  ;;  %v2583_v22 = vmul.f32 -1.442695, %v780_v7 }
 0x9d9   :  { %2715 = vpow2.f32 %v2584_v0 }
 0x9de   :  { %v2714_v11 = vpop.eup %2713 }
 0x9df   :  { %855 = vrot.lane.b32.xlu0 %v2714_v11, %s3117_s4  ;;  %v2716_v3 = vpop.eup %2715 }
 0x9e0   :  { %v832_v6 = vadd.f32 1.0, %v2716_v3 }
 0x9e2   :  { %2717 = vrcp.f32 %v832_v6  ;;  %v844_v50 = vand.u32 2147483648, %v832_v6  ;;  %vm838_vm7 = vweird.f32 %v832_v6  ;;  %v842_v51 = vand.u32 2147483647, %v832_v6 }
 0x9e3   :  { %2719 = vpow2.f32 %v2583_v22 }
 0x9e4   :  { %v845_v53 = vor.u32 1.1754944e-38, %v844_v50  ;;  %vm843_vm10 = vcmp.eq.f32.partialorder %v842_v51, 8.507059e+37 }
 0x9e8   :  { %v2718_v10 = vpop.eup %2717 }
 0x9e9   :  { %v834_v15 = vmul.f32 %v2718_v10, %v832_v6  ;;  %vm839_vm6 = vweird.f32 %v2718_v10  ;;  %v2720_v52 = vpop.eup %2719 }
 0x9ea   :  { %vm840_vm8 = vmor %vm838_vm7, %vm839_vm6  ;;  %v813_v54 = vadd.f32 1.0, %v2720_v52 }
 0x9eb   :  { %v835_v20 = vsub.f32 1.0, %v834_v15 }
 0x9ec   :  { %2721 = vrcp.f32 %v813_v54  ;;  %v825_v2 = vand.u32 2147483648, %v813_v54  ;;  %vm819_vm14 = vweird.f32 %v813_v54  ;;  %v823_v5 = vand.u32 2147483647, %v813_v54 }
 0x9ed   :  { %v836_v38 = vmul.f32 %v2718_v10, %v835_v20 }
 0x9ee   :  { %v826_v12 = vor.u32 1.1754944e-38, %v825_v2  ;;  %vm824_vm0 = vcmp.eq.f32.partialorder %v823_v5, 8.507059e+37 }
 0x9ef   :  { %v837_v49 = vadd.f32 %v2718_v10, %v836_v38 }
 0x9f1   :  { %v841_v26 = vsel %vm840_vm8, %v2718_v10, %v837_v49 }
 0x9f2   :  { %v846_v55 = vsel %vm843_vm10, %v845_v53, %v841_v26  ;;  %v2722_v58 = vpop.eup %2721 }
 0x9f3   :  { %v815_v59 = vmul.f32 %v2722_v58, %v813_v54  ;;  %vm820_vm13 = vweird.f32 %v2722_v58  ;;  %v873_v27 = vmul.f32 %v871_v25, %v846_v55 }
 0x9f4   :  { %vm821_vm15 = vmor %vm819_vm14, %vm820_vm13 }
 0x9f5   :  { %v816_v60 = vsub.f32 1.0, %v815_v59 }
 0x9f7   :  { %v817_v61 = vmul.f32 %v2722_v58, %v816_v60 }
 0x9f9   :  { %v818_v62 = vadd.f32 %v2722_v58, %v817_v61 }
 0x9fb   :  { %v822_v8 = vsel %vm821_vm15, %v2722_v58, %v818_v62 }
 0x9fc   :  { %v827_v19 = vsel %vm824_vm0, %v826_v12, %v822_v8 }
 0x9fd   :  { %v853_v31 = vmul.f32 %v851_v9, %v827_v19 }
 0xa31   :  { %v876_v56 = vpop.permute.xlu2 %875 }
 0xa32   :  { %v878_v57 = vmul.f32 %v876_v56, %v846_v55 }
 0xa34   :  { %880 = vrot.lane.b32.xlu1 %v878_v57, %s3117_s4 }
 0xa51   :  { %v856_v17 = vpop.permute.xlu0 %855 }
 0xa52   :  { %v858_v23 = vmul.f32 %v856_v17, %v827_v19 }
 0xa54   :  { %860 = vrot.lane.b32.xlu2 %v858_v23, %s3117_s4 }
 0xaa6   :  { %v881_v63 = vpop.permute.xlu1 %880 }
 0xaa7   :  { %v3434_v29 = vadd.f32 %v881_v63, %v873_v27 }
 0xaa9   :  { %2723 = vtanh.f32 %v3434_v29  ;;  %v1010_v23 = vrot.slane %v3434_v29, 2 }
 0xaae   :  { %v861_v34 = vpop.permute.xlu2 %860 }
 0xaaf   :  { %v2724_v35 = vpop.eup %2723  ;;  %v3438_v37 = vadd.f32 %v861_v34, %v853_v31 }
 0xab0   :  { %886 = vrot.lane.b32.xlu0 %v2724_v35, %s3117_s4 }
 0xab1   :  { %2725 = vtanh.f32 %v3438_v37  ;;  %v990_v9 = vrot.slane %v3438_v37, 6 }
 0xab7   :  { %v2726_v39 = vpop.eup %2725 }
 0xab8   :  { %866 = vrot.lane.b32.xlu1 %v2726_v39, %s3117_s4 }
 0xb22   :  { %v887_v33 = vpop.permute.xlu0 %886 }
 0xb23   :  { %v3443_v41 = vmul.f32 %v887_v33, %v846_v55 }
 0xb25   :  { %v920_v32 = vrot.slane %v3443_v41, 6 }
 0xb27   :  { %921 = vrot.lane.b32.xlu2 %v920_v32, %s3118_s15 }
 0xb2a   :  { %v867_v14 = vpop.permute.xlu1 %866 }
 0xb2b   :  { %v3447_v42 = vmul.f32 %v867_v14, %v827_v19 }
 0xb2d   :  { %891 = vrot.lane.b32.xlu0 %v3447_v42, %s3118_s15 }
 0xb81   :  { %v922_v43 = vpop.permute.xlu2 %921 }
 0xb82   :  { %2586 = vmatmul.msk.f32.vlgmr.msrb.gmra.mxu3 %vm215_vm9, %v922_v43 }
 0xb9f   :  { %v892_v44 = vpop.permute.xlu0 %891 }
 0xba0   :  { %2585 = vmatmul.msk.f32.vlgmr.msrb.gmra.mxu2 %vm215_vm9, %v892_v44 }
 0xc05   :  { %v942_v46 = vpop.f32.mrf.mxu3 }
 0xc06   :  { %v946_v47 = vrot.slane %v942_v46, 4 }
 0xc08   :  { %v948_v21 = vadd.f32 %v946_v47, %v3281_v18 }
 0xc0a   :  { %2727 = vtanh.f32 %v948_v21  ;;  %v2588_v11 = vmul.f32 -1.442695, %v948_v21 }
 0xc10   :  { %v2728_v1 = vpop.eup %2727 }
 0xc11   :  { %1014 = vrot.lane.b32.xlu1 %v2728_v1, %s3117_s4 }
 0xc23   :  { %v912_v4 = vpop.f32.mrf.mxu2 }
 0xc24   :  { %v916_v45 = vrot.slane %v912_v4, 6 }
 0xc26   :  { %v918_v48 = vadd.f32 %v916_v45, %v3426_v30 }
 0xc28   :  { %2729 = vtanh.f32 %v918_v48  ;;  %v2587_v0 = vmul.f32 -1.442695, %v918_v48 }
 0xc29   :  { %2731 = vpow2.f32 %v2588_v11 }
 0xc2a   :  { %2733 = vpow2.f32 %v2587_v0 }
 0xc2e   :  { %v2730_v7 = vpop.eup %2729 }
 0xc2f   :  { %994 = vrot.lane.b32.xlu2 %v2730_v7, %s3117_s4  ;;  %v2732_v3 = vpop.eup %2731 }
 0xc30   :  { %v971_v6 = vadd.f32 1.0, %v2732_v3  ;;  %v2734_v10 = vpop.eup %2733 }
 0xc31   :  { %v952_v15 = vadd.f32 1.0, %v2734_v10 }
 0xc32   :  { %2735 = vrcp.f32 %v971_v6  ;;  %v983_v53 = vand.u32 2147483648, %v971_v6  ;;  %vm977_vm2 = vweird.f32 %v971_v6  ;;  %v981_v54 = vand.u32 2147483647, %v971_v6 }
 0xc33   :  { %2737 = vrcp.f32 %v952_v15  ;;  %v964_v61 = vand.u32 2147483648, %v952_v15  ;;  %vm958_vm7 = vweird.f32 %v952_v15  ;;  %v962_v2 = vand.u32 2147483647, %v952_v15 }
 0xc34   :  { %v984_v57 = vor.u32 1.1754944e-38, %v983_v53  ;;  %vm982_vm4 = vcmp.eq.f32.partialorder %v981_v54, 8.507059e+37 }
 0xc35   :  { %v965_v8 = vor.u32 1.1754944e-38, %v964_v61  ;;  %vm963_vm10 = vcmp.eq.f32.partialorder %v962_v2, 8.507059e+37 }
 0xc38   :  { %v2736_v20 = vpop.eup %2735 }
 0xc39   :  { %v973_v22 = vmul.f32 %v2736_v20, %v971_v6  ;;  %v2738_v38 = vpop.eup %2737  ;;  %vm978_vm1 = vweird.f32 %v2736_v20 }
 0xc3a   :  { %v954_v50 = vmul.f32 %v2738_v38, %v952_v15  ;;  %vm979_vm3 = vmor %vm977_vm2, %vm978_vm1  ;;  %vm959_vm6 = vweird.f32 %v2738_v38 }
 0xc3b   :  { %v974_v49 = vsub.f32 1.0, %v973_v22  ;;  %vm960_vm8 = vmor %vm958_vm7, %vm959_vm6 }
 0xc3c   :  { %v955_v52 = vsub.f32 1.0, %v954_v50 }
 0xc3d   :  { %v975_v51 = vmul.f32 %v2736_v20, %v974_v49 }
 0xc3e   :  { %v956_v55 = vmul.f32 %v2738_v38, %v955_v52 }
 0xc3f   :  { %v976_v26 = vadd.f32 %v2736_v20, %v975_v51 }
 0xc40   :  { %v957_v58 = vadd.f32 %v2738_v38, %v956_v55 }
 0xc41   :  { %v980_v56 = vsel %vm979_vm3, %v2736_v20, %v976_v26 }
 0xc42   :  { %v985_v60 = vsel %vm982_vm4, %v984_v57, %v980_v56  ;;  %v961_v5 = vsel %vm960_vm8, %v2738_v38, %v957_v58 }
 0xc43   :  { %v966_v12 = vsel %vm963_vm10, %v965_v8, %v961_v5  ;;  %v1012_v25 = vmul.f32 %v1010_v23, %v985_v60 }
 0xc44   :  { %v992_v31 = vmul.f32 %v990_v9, %v966_v12 }
 0xc83   :  { %v1015_v59 = vpop.permute.xlu1 %1014 }
 0xc84   :  { %v1017_v62 = vmul.f32 %v1015_v59, %v985_v60 }
 0xc86   :  { %1019 = vrot.lane.b32.xlu0 %v1017_v62, %s3117_s4 }
 0xc89   :  { %v995_v17 = vpop.permute.xlu2 %994 }
 0xc8a   :  { %v997_v19 = vmul.f32 %v995_v17, %v966_v12 }
 0xc8c   :  { %999 = vrot.lane.b32.xlu1 %v997_v19, %s3117_s4 }
 0xcf8   :  { %v1020_v27 = vpop.permute.xlu0 %1019 }
 0xcf9   :  { %v3460_v63 = vadd.f32 %v1020_v27, %v1012_v25 }
 0xcfb   :  { %2739 = vtanh.f32 %v3460_v63  ;;  %v1150_v27 = vrot.slane %v3460_v63, 2 }
 0xcfe   :  { %v1000_v34 = vpop.permute.xlu1 %999 }
 0xcff   :  { %v3464_v35 = vadd.f32 %v1000_v34, %v992_v31 }
 0xd01   :  { %v2740_v39 = vpop.eup %2739  ;;  %2741 = vtanh.f32 %v3464_v35 }
 0xd02   :  { %1025 = vrot.lane.b32.xlu2 %v2740_v39, %s3117_s4 }
 0xd07   :  { %v2742_v33 = vpop.eup %2741 }
 0xd08   :  { %1005 = vrot.lane.b32.xlu0 %v2742_v33, %s3117_s4  ;;  %v1130_v33 = vrot.slane %v3464_v35, 6 }
 0xd5c   :  { %v1026_v29 = vpop.permute.xlu2 %1025 }
 0xd5d   :  { %v3469_v32 = vmul.f32 %v1026_v29, %v985_v60 }
 0xd5f   :  { %v1060_v14 = vrot.slane %v3469_v32, 4 }
 0xd61   :  { %1061 = vrot.lane.b32.xlu1 %v1060_v14, %s3118_s15 }
 0xd7a   :  { %v1006_v37 = vpop.permute.xlu0 %1005 }
 0xd7b   :  { %v3473_v43 = vmul.f32 %v1006_v37, %v966_v12 }
 0xd7d   :  { %v1030_v44 = vrot.slane %v3473_v43, 2  ;;  %v1312_v35 = vsel %vm1306_vm11, %v3447_v42, %v3473_v43 }
 0xd7f   :  { %1031 = vrot.lane.b32.xlu2 %v1030_v44, %s3118_s15 }
 0xdd3   :  { %v1062_v46 = vpop.permute.xlu1 %1061 }
 0xdd4   :  { %2590 = vmatmul.msk.f32.vlgmr.msrb.gmra.mxu1 %vm215_vm9, %v1062_v46 }
 0xdd9   :  { %v1032_v47 = vpop.permute.xlu2 %1031 }
 0xdda   :  { %2589 = vmatmul.msk.f32.vlgmr.msrb.gmra.mxu0 %vm215_vm9, %v1032_v47 }
 0xe51   :  { %v1082_v21 = vpop.f32.mrf.mxu1 }
 0xe52   :  { %v1086_v1 = vrot.slane %v1082_v21, 6 }
 0xe54   :  { %v1088_v4 = vadd.f32 %v1086_v1, %v3281_v18 }
 0xe56   :  { %2743 = vtanh.f32 %v1088_v4  ;;  %v2592_v3 = vmul.f32 -1.442695, %v1088_v4 }
 0xe57   :  { %v1052_v45 = vpop.f32.mrf.mxu0 }
 0xe58   :  { %v1056_v48 = vrot.slane %v1052_v45, 4 }
 0xe5a   :  { %v1058_v7 = vadd.f32 %v1056_v48, %v3426_v30 }
 0xe5c   :  { %v2744_v11 = vpop.eup %2743  ;;  %2745 = vtanh.f32 %v1058_v7  ;;  %v2591_v6 = vmul.f32 -1.442695, %v1058_v7 }
 0xe5d   :  { %1154 = vrot.lane.b32.xlu0 %v2744_v11, %s3117_s4  ;;  %2747 = vpow2.f32 %v2592_v3 }
 0xe5e   :  { %2749 = vpow2.f32 %v2591_v6 }
 0xe62   :  { %v2746_v0 = vpop.eup %2745 }
 0xe63   :  { %1134 = vrot.lane.b32.xlu1 %v2746_v0, %s3117_s4  ;;  %v2748_v10 = vpop.eup %2747 }
 0xe64   :  { %v1111_v15 = vadd.f32 1.0, %v2748_v10  ;;  %v2750_v20 = vpop.eup %2749 }
 0xe65   :  { %v1092_v22 = vadd.f32 1.0, %v2750_v20 }
 0xe66   :  { %2751 = vrcp.f32 %v1111_v15  ;;  %v1123_v55 = vand.u32 2147483648, %v1111_v15  ;;  %vm1117_vm14 = vweird.f32 %v1111_v15  ;;  %v1121_v56 = vand.u32 2147483647, %v1111_v15 }
 0xe67   :  { %2753 = vrcp.f32 %v1092_v22  ;;  %v1104_v2 = vand.u32 2147483648, %v1092_v22  ;;  %vm1098_vm2 = vweird.f32 %v1092_v22  ;;  %v1102_v8 = vand.u32 2147483647, %v1092_v22 }
 0xe68   :  { %v1124_v59 = vor.u32 1.1754944e-38, %v1123_v55  ;;  %vm1122_vm0 = vcmp.eq.f32.partialorder %v1121_v56, 8.507059e+37 }
 0xe69   :  { %v1105_v17 = vor.u32 1.1754944e-38, %v1104_v2  ;;  %vm1103_vm4 = vcmp.eq.f32.partialorder %v1102_v8, 8.507059e+37 }
 0xe6c   :  { %v2752_v38 = vpop.eup %2751 }
 0xe6d   :  { %v1113_v49 = vmul.f32 %v2752_v38, %v1111_v15  ;;  %v2754_v50 = vpop.eup %2753  ;;  %vm1118_vm13 = vweird.f32 %v2752_v38 }
 0xe6e   :  { %v1094_v52 = vmul.f32 %v2754_v50, %v1092_v22  ;;  %vm1119_vm15 = vmor %vm1117_vm14, %vm1118_vm13  ;;  %vm1099_vm1 = vweird.f32 %v2754_v50 }
 0xe6f   :  { %v1114_v51 = vsub.f32 1.0, %v1113_v49  ;;  %vm1100_vm3 = vmor %vm1098_vm2, %vm1099_vm1  ;;  %vm1369_vm1 = vcmask 523264  }
 0xe70   :  { %v1095_v53 = vsub.f32 1.0, %v1094_v52 }
 0xe71   :  { %v1115_v26 = vmul.f32 %v2752_v38, %v1114_v51 }
 0xe72   :  { %v1096_v57 = vmul.f32 %v2754_v50, %v1095_v53 }
 0xe73   :  { %v1116_v54 = vadd.f32 %v2752_v38, %v1115_v26 }
 0xe74   :  { %v1097_v60 = vadd.f32 %v2754_v50, %v1096_v57 }
 0xe75   :  { %v1120_v58 = vsel %vm1119_vm15, %v2752_v38, %v1116_v54 }
 0xe76   :  { %v1125_v62 = vsel %vm1122_vm0, %v1124_v59, %v1120_v58  ;;  %v1101_v12 = vsel %vm1100_vm3, %v2754_v50, %v1097_v60 }
 0xe77   :  { %v1106_v23 = vsel %vm1103_vm4, %v1105_v17, %v1101_v12  ;;  %v1152_v9 = vmul.f32 %v1150_v27, %v1125_v62 }
 0xe78   :  { %v1132_v29 = vmul.f32 %v1130_v33, %v1106_v23 }
 0xecf   :  { %v1155_v61 = vpop.permute.xlu0 %1154 }
 0xed0   :  { %v1157_v5 = vmul.f32 %v1155_v61, %v1125_v62 }
 0xed2   :  { %1159 = vrot.lane.b32.xlu2 %v1157_v5, %s3117_s4 }
 0xed5   :  { %v1135_v19 = vpop.permute.xlu1 %1134 }
 0xed6   :  { %v1137_v25 = vmul.f32 %v1135_v19, %v1106_v23 }
 0xed8   :  { %1139 = vrot.lane.b32.xlu0 %v1137_v25, %s3117_s4 }
 0xf2c   :  { %v1160_v31 = vpop.permute.xlu2 %1159 }
 0xf2d   :  { %v3486_v34 = vadd.f32 %v1160_v31, %v1152_v9  ;;  %v1318_v9 = vsel %vm1306_vm11, %v3411_v24, %v3374_v40 }
 0xf2e   :  { %v1319_v31 = vsel %vm1308_vm12, %v1318_v9, %v3338_v28 }
 0xf2f   :  { %2755 = vtanh.f32 %v3486_v34  ;;  %v1287_v33 = vrot.slane %v3486_v34, 2  ;;  %v1354_v34 = vld [vmem:[#allocation10 + $0x78] sm:$0xff] }
 0xf30   :  { %1407 = vmatpush.msra.mxu1 %v1354_v34 }
 0xf35   :  { %v2756_v39 = vpop.eup %2755 }
 0xf36   :  { %1165 = vrot.lane.b32.xlu1 %v2756_v39, %s3117_s4  ;;  %v1320_v39 = vsel %vm1310_vm5, %v1319_v31, %v3304_v16 }
 0xf4a   :  { %v1140_v14 = vpop.permute.xlu0 %1139 }
 0xf4b   :  { %v3491_v37 = vadd.f32 %v1140_v14, %v1132_v29 }
 0xf4d   :  { %2757 = vtanh.f32 %v3491_v37 }
 0xf53   :  { %v2758_v44 = vpop.eup %2757 }
 0xf54   :  { %1145 = vrot.lane.b32.xlu2 %v2758_v44, %s3117_s4 }
 0xfa8   :  { %v1166_v63 = vpop.permute.xlu1 %1165 }
 0xfa9   :  { %v3495_v46 = vmul.f32 %v1166_v63, %v1125_v62 }
 0xfab   :  { %v1200_v47 = vrot.slane %v3495_v46, 2 }
 0xfad   :  { %1201 = vrot.lane.b32.xlu0 %v1200_v47, %s3118_s15  ;;  %v1353_v47 = vld [vmem:[#allocation10 + $0x70] sm:$0xff] }
 0xfae   :  { %v1146_v21 = vpop.permute.xlu2 %1145  ;;  %1384 = vmatpush.msra.mxu0 %v1353_v47 }
 0xfaf   :  { %v1148_v1 = vmul.f32 %v1146_v21, %v1106_v23  ;;  %v1351_v21 = vld [vmem:[#allocation10 + $0x60] sm:$0xff] }
 0xfb0   :  { %1385 = vmatpush.msra.mxu0 %v1351_v21 }
 0xfb1   :  { %v1170_v4 = vrot.slane %v1148_v1, 4  ;;  %v3503_v45 = vsel %vm1308_vm12, %v1312_v35, %v1148_v1  ;;  %v1352_v1 = vld [vmem:[#allocation10 + $0x68] sm:$0xff]  ;;  %v1349_v35 = vld [vmem:[#allocation10 + $0x50] sm:$0xff] }
 0xfb2   :  { %1408 = vmatpush.msra.mxu1 %v1352_v1  ;;  %1386 = vmatpush.msra.mxu0 %v1349_v35 }
 0xfb3   :  { %1171 = vrot.lane.b32.xlu1 %v1170_v4, %s3118_s15  ;;  %v1350_v4 = vld [vmem:[#allocation10 + $0x58] sm:$0xff] }
 0xfb4   :  { %1409 = vmatpush.msra.mxu1 %v1350_v4 }
0x101f   :  { %v1202_v48 = vpop.permute.xlu0 %1201 }
0x1020   :  { %2594 = vmatmul.msk.f32.vlgmr.msra.gmra.mxu3 %vm215_vm9, %v1202_v48  ;;  %v3538_v48 = vld [vmem:[#allocation11 + $0x10] sm:$0xff] }
0x1025   :  { %v1172_v7 = vpop.permute.xlu1 %1171 }
0x1026   :  { %2593 = vmatmul.msk.f32.vlgmr.msra.gmra.mxu2 %vm215_vm9, %v1172_v7  ;;  %v1347_v7 = vld [vmem:[#allocation10 + $0x40] sm:$0xff] }
0x1027   :  { %1387 = vmatpush.msra.mxu0 %v1347_v7 }
0x10a3   :  { %v1222_v11 = vpop.f32.mrf.mxu3 }
0x10a4   :  { %v1225_v0 = vadd.f32 %v1222_v11, %v3281_v18  ;;  %v1348_v11 = vld [vmem:[#allocation10 + $0x48] sm:$0xff] }
0x10a5   :  { %1410 = vmatpush.msra.mxu1 %v1348_v11 }
0x10a6   :  { %2759 = vtanh.f32 %v1225_v0  ;;  %v2596_v15 = vmul.f32 -1.442695, %v1225_v0  ;;  %v3541_v0 = vld [vmem:[#allocation13 + $0x18] sm:$0xff] }
0x10a7   :  { %1455 = vmatpush.msrb.mxu3 %v3541_v0 }
0x10a9   :  { %v1192_v3 = vpop.f32.mrf.mxu2 }
0x10aa   :  { %v1196_v6 = vrot.slane %v1192_v3, 2  ;;  %v3543_v3 = vld [vmem:[#allocation11 + $0x8] sm:$0xff] }
0x10ac   :  { %v2760_v10 = vpop.eup %2759  ;;  %v1198_v42 = vadd.f32 %v1196_v6, %v3426_v30  ;;  %v3545_v6 = vld [vmem:[#allocation13 + $0x10] sm:$0xff] }
0x10ad   :  { %1291 = vrot.lane.b32.xlu2 %v2760_v10, %s3117_s4  ;;  %v1345_v10 = vld [vmem:[#allocation10 + $0x30] sm:$0xff]  ;;  %1456 = vmatpush.msrb.mxu3 %v3545_v6 }
0x10ae   :  { %2761 = vtanh.f32 %v1198_v42  ;;  %v2595_v50 = vmul.f32 -1.442695, %v1198_v42  ;;  %v1346_v42 = vld [vmem:[#allocation10 + $0x38] sm:$0xff]  ;;  %1388 = vmatpush.msra.mxu0 %v1345_v10 }
0x10af   :  { %2763 = vpow2.f32 %v2596_v15  ;;  %v3551_v15 = vld [vmem:[#allocation13 + $0x8] sm:$0xff]  ;;  %1411 = vmatpush.msra.mxu1 %v1346_v42 }
0x10b0   :  { %1457 = vmatpush.msrb.mxu3 %v3551_v15 }
0x10b4   :  { %v2762_v43 = vpop.eup %2761 }
0x10b5   :  { %1271 = vrot.lane.b32.xlu0 %v2762_v43, %s3117_s4  ;;  %v2764_v20 = vpop.eup %2763  ;;  %v3549_v43 = vld [vmem:[#allocation11] sm:$0xff] }
0x10b6   :  { %v1248_v22 = vadd.f32 1.0, %v2764_v20  ;;  %v1343_v20 = vld [vmem:[#allocation10 + $0x20] sm:$0xff] }
0x10b7   :  { %1389 = vmatpush.msra.mxu0 %v1343_v20 }
0x10b8   :  { %2765 = vrcp.f32 %v1248_v22  ;;  %v1260_v30 = vand.u32 2147483648, %v1248_v22  ;;  %vm1254_vm7 = vweird.f32 %v1248_v22  ;;  %v1258_v26 = vand.u32 2147483647, %v1248_v22 }
0x10b9   :  { %2767 = vpow2.f32 %v2595_v50 }
0x10ba   :  { %v1261_v55 = vor.u32 1.1754944e-38, %v1260_v30  ;;  %vm1259_vm10 = vcmp.eq.f32.partialorder %v1258_v26, 8.507059e+37 }
0x10be   :  { %v2766_v38 = vpop.eup %2765 }
0x10bf   :  { %v1250_v49 = vmul.f32 %v2766_v38, %v1248_v22  ;;  %vm1255_vm6 = vweird.f32 %v2766_v38  ;;  %v2768_v53 = vpop.eup %2767  ;;  %v1344_v22 = vld [vmem:[#allocation10 + $0x28] sm:$0xff] }
0x10c0   :  { %vm1256_vm8 = vmor %vm1254_vm7, %vm1255_vm6  ;;  %v1229_v56 = vadd.f32 1.0, %v2768_v53  ;;  %1412 = vmatpush.msra.mxu1 %v1344_v22 }
0x10c1   :  { %v1251_v18 = vsub.f32 1.0, %v1250_v49  ;;  %v1342_v49 = vld [vmem:[#allocation10 + $0x18] sm:$0xff] }
0x10c2   :  { %2769 = vrcp.f32 %v1229_v56  ;;  %v1241_v8 = vand.u32 2147483648, %v1229_v56  ;;  %vm1235_vm14 = vweird.f32 %v1229_v56  ;;  %v1239_v12 = vand.u32 2147483647, %v1229_v56  ;;  %1413 = vmatpush.msra.mxu1 %v1342_v49 }
0x10c3   :  { %v1252_v51 = vmul.f32 %v2766_v38, %v1251_v18 }
0x10c4   :  { %v1242_v19 = vor.u32 1.1754944e-38, %v1241_v8  ;;  %vm1240_vm0 = vcmp.eq.f32.partialorder %v1239_v12, 8.507059e+37 }
0x10c5   :  { %v1253_v52 = vadd.f32 %v2766_v38, %v1252_v51 }
0x10c7   :  { %v1257_v54 = vsel %vm1256_vm8, %v2766_v38, %v1253_v52  ;;  %v1341_v38 = vld [vmem:[#allocation10 + $0x10] sm:$0xff] }
0x10c8   :  { %v3512_v57 = vsel %vm1259_vm10, %v1261_v55, %v1257_v54  ;;  %v2770_v60 = vpop.eup %2769  ;;  %1390 = vmatpush.msra.mxu0 %v1341_v38  ;;  %v1339_v54 = vld [vmem:[#allocation10] sm:$0xff]  ;;  %v1340_v55 = vld [vmem:[#allocation10 + $0x8] sm:$0xff] }
0x10c9   :  { %v1231_v61 = vmul.f32 %v2770_v60, %v1229_v56  ;;  %vm1236_vm13 = vweird.f32 %v2770_v60  ;;  %v1289_v29 = vmul.f32 %v1287_v33, %v3512_v57  ;;  %1414 = vmatpush.msra.mxu1 %v1340_v55 }
0x10ca   :  { %vm1237_vm15 = vmor %vm1235_vm14, %vm1236_vm13  ;;  %1391 = vmatpush.msra.mxu0 %v1339_v54 }
0x10cb   :  { %v1232_v62 = vsub.f32 1.0, %v1231_v61  ;;  %1868 = vmatpush.msrb.mxu1 %v3541_v0 }
0x10cd   :  { %v1233_v2 = vmul.f32 %v2770_v60, %v1232_v62  ;;  %1869 = vmatpush.msrb.mxu1 %v3545_v6 }
0x10cf   :  { %v1234_v5 = vadd.f32 %v2770_v60, %v1233_v2  ;;  %1870 = vmatpush.msrb.mxu1 %v3551_v15 }
0x10d1   :  { %v1238_v17 = vsel %vm1237_vm15, %v2770_v60, %v1234_v5 }
0x10d2   :  { %v3516_v25 = vsel %vm1240_vm0, %v1242_v19, %v1238_v17 }
0x1107   :  { %v1292_v58 = vpop.permute.xlu2 %1291 }
0x1108   :  { %v1294_v59 = vmul.f32 %v1292_v58, %v3512_v57 }
0x110a   :  { %1296 = vrot.lane.b32.xlu1 %v1294_v59, %s3117_s4  ;;  %v3615_v59 = vld [vmem:[%s3893_s8] sm:$0x3]  ;;  %s3120_s8 = smov [#allocation14]  }
0x110b   :  { %v1365_v60 = vperm.slane %v3615_v59, 0  ;;  %v1366_v61 = vperm.slane %v3615_v59, 1  ;;  %s2545_s27 = sshll.u32 %s3120_s8, 4  ;;  %s2546_s27 = int_to_ptr.vmem [resolvable:$true] %s2545_s27 }
0x1127   :  { %v1272_v23 = vpop.permute.xlu0 %1271 }
0x1128   :  { %v1274_v27 = vmul.f32 %v1272_v23, %v3516_v25 }
0x112a   :  { %1276 = vrot.lane.b32.xlu2 %v1274_v27, %s3117_s4 }
0x1132   :  { %1323 = vrot.lane.b32.xlu2 %v3417_v36, %s3118_s15  ;;  %v1267_v36 = vrot.slane %v3491_v37, 6  ;;  %v3536_v37 = vld [vmem:[#allocation11 + $0x18] sm:$0xff] }
0x1133   :  { %1434 = vmatpush.msrb.mxu2 %v3536_v37  ;;  %1838 = vmatpush.msrb.mxu0 %v3536_v37 }
0x1134   :  { %v1269_v40 = vmul.f32 %v1267_v36, %v3516_v25 }
0x1135   :  { %1435 = vmatpush.msrb.mxu2 %v3538_v48  ;;  %1839 = vmatpush.msrb.mxu0 %v3538_v48 }
0x1137   :  { %1436 = vmatpush.msrb.mxu2 %v3543_v3  ;;  %1840 = vmatpush.msrb.mxu0 %v3543_v3 }
0x1139   :  { %1437 = vmatpush.msrb.mxu2 %v3549_v43  ;;  %1841 = vmatpush.msrb.mxu0 %v3549_v43 }
0x113a   :  { %1333 = vrot.lane.b32.xlu2 %v1320_v39, %s3119_s22  ;;  %1438 = vmatmul.f32.vlgmr.msrb.gmra.mxu2 %v3116_v13 }
0x113b   :  { %1558 = vmatpush.msra.mxu2 %v3536_v37 }
0x113d   :  { %1559 = vmatpush.msra.mxu2 %v3538_v48 }
0x113f   :  { %1560 = vmatpush.msra.mxu2 %v3543_v3 }
0x1141   :  { %1561 = vmatpush.msra.mxu2 %v3549_v43 }
0x1143   :  { %1698 = vmatpush.msrb.mxu2 %v3536_v37 }
0x1145   :  { %1699 = vmatpush.msrb.mxu2 %v3538_v48 }
0x1147   :  { %1700 = vmatpush.msrb.mxu2 %v3543_v3 }
0x1149   :  { %1701 = vmatpush.msrb.mxu2 %v3549_v43 }
0x117c   :  { %v1297_v14 = vpop.permute.xlu1 %1296 }
0x117d   :  { %v1299_v44 = vadd.f32 %v1297_v14, %v1289_v29 }
0x117f   :  { %2771 = vtanh.f32 %v1299_v44 }
0x1184   :  { %v1277_v24 = vpop.permute.xlu2 %1276 }
0x1185   :  { %v2772_v63 = vpop.eup %2771  ;;  %v1279_v28 = vadd.f32 %v1277_v24, %v1269_v40 }
0x1186   :  { %1302 = vrot.lane.b32.xlu0 %v2772_v63, %s3117_s4 }
0x1187   :  { %2773 = vtanh.f32 %v1279_v28 }
0x118d   :  { %v2774_v16 = vpop.eup %2773 }
0x118e   :  { %1282 = vrot.lane.b32.xlu1 %v2774_v16, %s3117_s4 }
0x11bd   :  { %v1439_v62 = vpop.f32.mrf.mxu2 }
0x11f8   :  { %v1303_v18 = vpop.permute.xlu0 %1302 }
0x11f9   :  { %v1305_v50 = vmul.f32 %v1303_v18, %v3512_v57 }
0x11fb   :  { %v1315_v51 = vsel %vm1306_vm11, %v1305_v50, %v3495_v46 }
0x11fc   :  { %v1316_v52 = vsel %vm1308_vm12, %v1315_v51, %v3469_v32  ;;  %v3578_v32 = vld [vmem:[#allocation13] sm:$0xff] }
0x11fd   :  { %v1317_v30 = vsel %vm1310_vm5, %v1316_v52, %v3443_v41  ;;  %1458 = vmatpush.msrb.mxu3 %v3578_v32  ;;  %1871 = vmatpush.msrb.mxu1 %v3578_v32 }
0x11fe   :  { %1331 = vrot.lane.b32.xlu0 %v1317_v30, %s3119_s22  ;;  %1459 = vmatmul.f32.vlgmr.msrb.gmra.mxu3 %v3116_v13  ;;  %v1324_v13 = vpop.permute.xlu2 %1323 }
0x11ff   :  { %1588 = vmatpush.msra.mxu3 %v3541_v0 }
0x1200   :  { %v1283_v26 = vpop.permute.xlu1 %1282 }
0x1201   :  { %v1285_v53 = vmul.f32 %v1283_v26, %v3516_v25  ;;  %1589 = vmatpush.msra.mxu3 %v3545_v6 }
0x1203   :  { %v1314_v46 = vsel %vm1310_vm5, %v3503_v45, %v1285_v53  ;;  %1590 = vmatpush.msra.mxu3 %v3551_v15 }
0x1204   :  { %1325 = vrot.lane.b32.xlu1 %v1314_v46, %s3118_s15 }
0x1205   :  { %1591 = vmatpush.msra.mxu3 %v3578_v32 }
0x1206   :  { %v1334_v57 = vpop.permute.xlu2 %1333 }
0x1207   :  { %1728 = vmatpush.msrb.mxu3 %v3541_v0 }
0x1209   :  { %1729 = vmatpush.msrb.mxu3 %v3545_v6 }
0x120b   :  { %1730 = vmatpush.msrb.mxu3 %v3551_v15 }
0x120d   :  { %1731 = vmatpush.msrb.mxu3 %v3578_v32 }
0x1270   :  { %v1332_v41 = vpop.permute.xlu0 %1331 }
0x1271   :  { %v1337_v45 = vsel %vm215_vm9, %v1324_v13, %v1332_v41 }
0x1272   :  { %2597 = vmatmul.msk.f32.vlgmr.msra.gmra.mxu0 %vm1369_vm1, %v1337_v45  ;;  %2599 = vmatmul.msk.f32.vlgmr.msra.gmra.mxu1 %vm1369_vm1, %v1337_v45 }
0x1273   :  { %2110 = vmatpush.msra.mxu0 %v3536_v37  ;;  %2140 = vmatpush.msra.mxu1 %v3541_v0 }
0x1275   :  { %2111 = vmatpush.msra.mxu0 %v3538_v48  ;;  %2141 = vmatpush.msra.mxu1 %v3545_v6 }
0x1276   :  { %v1326_v56 = vpop.permute.xlu1 %1325 }
0x1277   :  { %2112 = vmatpush.msra.mxu0 %v3543_v3  ;;  %2142 = vmatpush.msra.mxu1 %v3551_v15  ;;  %v1338_v58 = vsel %vm215_vm9, %v1326_v56, %v1334_v57 }
0x1279   :  { %2113 = vmatpush.msra.mxu0 %v3549_v43  ;;  %2143 = vmatpush.msra.mxu1 %v3578_v32 }
0x127a   :  { %2598 = vmatmul.msk.f32.gmra.mxu0 %vm1369_vm1, %v1338_v58  ;;  %2600 = vmatmul.msk.f32.gmra.mxu1 %vm1369_vm1, %v1338_v58 }
0x1281   :  { %v1460_v19 = vpop.f32.mrf.mxu3 }
0x1282   :  { %v1464_v23 = vrot.slane %v1460_v19, 2 }
0x12ef   :  { %v1393_v2 = vpop.f32.mrf.mxu0  ;;  %v1416_v5 = vpop.f32.mrf.mxu1 }
0x12f0   :  { %v3621_v8 = vadd.f32 %v1393_v2, %v1365_v60  ;;  %v3623_v12 = vadd.f32 %v1416_v5, %v1366_v61 }
0x12f2   :  { %v1442_v17 = vadd.f32 %v1439_v62, %v3621_v8 }
0x12f4   :  { %2775 = vtanh.f32 %v1442_v17  ;;  %v2601_v33 = vmul.f32 -1.442695, %v1442_v17 }
0x12f7   :  { %v1419_v25 = vpop.f32.mrf.mxu1 }
0x12f8   :  { %v3626_v27 = vadd.f32 %v1419_v25, %v1366_v61 }
0x12fa   :  { %v2776_v9 = vpop.eup %2775  ;;  %v1466_v31 = vadd.f32 %v1464_v23, %v3626_v27 }
0x12fb   :  { %1509 = vrot.lane.b32.xlu1 %v2776_v9, %s3117_s4 }
0x12fc   :  { %2777 = vtanh.f32 %v1466_v31  ;;  %v2602_v29 = vmul.f32 -1.442695, %v1466_v31 }
0x12fd   :  { %2779 = vpow2.f32 %v2601_v33 }
0x12fe   :  { %2781 = vpow2.f32 %v2602_v29 }
0x1302   :  { %v2778_v39 = vpop.eup %2777 }
0x1303   :  { %1526 = vrot.lane.b32.xlu0 %v2778_v39, %s3117_s4  ;;  %v2780_v14 = vpop.eup %2779 }
0x1304   :  { %v1470_v44 = vadd.f32 1.0, %v2780_v14  ;;  %v2782_v36 = vpop.eup %2781 }
0x1305   :  { %v1489_v40 = vadd.f32 1.0, %v2782_v36 }
0x1306   :  { %2783 = vrcp.f32 %v1470_v44  ;;  %v1482_v35 = vand.u32 2147483648, %v1470_v44  ;;  %vm1476_vm3 = vweird.f32 %v1470_v44  ;;  %v1480_v4 = vand.u32 2147483647, %v1470_v44 }
0x1307   :  { %2785 = vrcp.f32 %v1489_v40  ;;  %v1501_v49 = vand.u32 2147483648, %v1489_v40  ;;  %vm1495_vm8 = vweird.f32 %v1489_v40  ;;  %v1499_v18 = vand.u32 2147483647, %v1489_v40 }
0x1308   :  { %v1483_v10 = vor.u32 1.1754944e-38, %v1482_v35  ;;  %vm1481_vm6 = vcmp.eq.f32.partialorder %v1480_v4, 8.507059e+37 }
0x1309   :  { %v1502_v51 = vor.u32 1.1754944e-38, %v1501_v49  ;;  %vm1500_vm13 = vcmp.eq.f32.partialorder %v1499_v18, 8.507059e+37 }
0x130c   :  { %v2784_v24 = vpop.eup %2783 }
0x130d   :  { %v1472_v63 = vmul.f32 %v2784_v24, %v1470_v44  ;;  %v2786_v16 = vpop.eup %2785  ;;  %vm1477_vm2 = vweird.f32 %v2784_v24 }
0x130e   :  { %v1491_v34 = vmul.f32 %v2786_v16, %v1489_v40  ;;  %vm1478_vm4 = vmor %vm1476_vm3, %vm1477_vm2  ;;  %vm1496_vm7 = vweird.f32 %v2786_v16 }
0x130f   :  { %v1473_v28 = vsub.f32 1.0, %v1472_v63  ;;  %vm1497_vm10 = vmor %vm1495_vm8, %vm1496_vm7 }
0x1310   :  { %v1492_v1 = vsub.f32 1.0, %v1491_v34 }
0x1311   :  { %v1474_v47 = vmul.f32 %v2784_v24, %v1473_v28 }
0x1312   :  { %v1493_v11 = vmul.f32 %v2786_v16, %v1492_v1 }
0x1313   :  { %v1475_v21 = vadd.f32 %v2784_v24, %v1474_v47 }
0x1314   :  { %v1494_v38 = vadd.f32 %v2786_v16, %v1493_v11 }
0x1315   :  { %v1479_v7 = vsel %vm1478_vm4, %v2784_v24, %v1475_v21 }
0x1316   :  { %v1484_v20 = vsel %vm1481_vm6, %v1483_v10, %v1479_v7  ;;  %v1498_v50 = vsel %vm1497_vm10, %v2786_v16, %v1494_v38 }
0x1317   :  { %v1503_v30 = vsel %vm1500_vm13, %v1502_v51, %v1498_v50  ;;  %v1507_v13 = vmul.f32 0.0, %v1484_v20 }
0x1318   :  { %v1524_v53 = vmul.f32 0.0, %v1503_v30 }
0x136d   :  { %v1510_v42 = vpop.permute.xlu1 %1509 }
0x136e   :  { %v1512_v22 = vmul.f32 %v1510_v42, %v1484_v20 }
0x1370   :  { %1514 = vrot.lane.b32.xlu0 %v1512_v22, %s3117_s4 }
0x1375   :  { %v1527_v52 = vpop.permute.xlu0 %1526 }
0x1376   :  { %v1529_v26 = vmul.f32 %v1527_v52, %v1503_v30 }
0x1378   :  { %1531 = vrot.lane.b32.xlu2 %v1529_v26, %s3117_s4 }
0x13d2   :  { %v1532_v46 = vpop.permute.xlu2 %1531 }
0x13d3   :  { %v3633_v54 = vadd.f32 %v1532_v46, %v1524_v53 }
0x13d5   :  { %2787 = vtanh.f32 %v3633_v54 }
0x13db   :  { %v2788_v55 = vpop.eup %2787 }
0x13dc   :  { %1537 = vrot.lane.b32.xlu1 %v2788_v55, %s3117_s4 }
0x13e2   :  { %v1515_v41 = vpop.permute.xlu0 %1514 }
0x13e3   :  { %v3637_v45 = vadd.f32 %v1515_v41, %v1507_v13 }
0x13e5   :  { %2789 = vtanh.f32 %v3637_v45  ;;  %v1641_v55 = vrot.slane %v3637_v45, 6 }
0x13eb   :  { %v2790_v56 = vpop.eup %2789 }
0x13ec   :  { %1520 = vrot.lane.b32.xlu2 %v2790_v56, %s3117_s4 }
0x1446   :  { %v1521_v57 = vpop.permute.xlu2 %1520 }
0x1447   :  { %v3641_v58 = vmul.f32 %v1521_v57, %v1484_v20  ;;  %v1661_v57 = vrot.slane %v3633_v54, 2 }
0x1449   :  { %1542 = vrot.lane.b32.xlu0 %v3641_v58, %s3118_s15 }
0x144e   :  { %v1538_v61 = vpop.permute.xlu1 %1537 }
0x144f   :  { %v3645_v62 = vmul.f32 %v1538_v61, %v1503_v30 }
0x1451   :  { %v1571_v2 = vrot.slane %v3645_v62, 6 }
0x1453   :  { %1572 = vrot.lane.b32.xlu1 %v1571_v2, %s3118_s15 }
0x14bb   :  { %v1543_v5 = vpop.permute.xlu0 %1542 }
0x14bc   :  { %2603 = vmatmul.msk.f32.vlgmr.msra.gmra.mxu2 %vm215_vm9, %v1543_v5 }
0x14bd   :  { %1975 = vmatpush.msra.mxu2 %v3536_v37 }
0x14bf   :  { %1976 = vmatpush.msra.mxu2 %v3538_v48 }
0x14c1   :  { %1977 = vmatpush.msra.mxu2 %v3543_v3 }
0x14c3   :  { %1978 = vmatpush.msra.mxu2 %v3549_v43 }
0x14c5   :  { %v1573_v17 = vpop.permute.xlu1 %1572 }
0x14c6   :  { %2604 = vmatmul.msk.f32.vlgmr.msra.gmra.mxu3 %vm215_vm9, %v1573_v17 }
0x14c7   :  { %2001 = vmatpush.msra.mxu3 %v3541_v0 }
0x14c9   :  { %2002 = vmatpush.msra.mxu3 %v3545_v6 }
0x14cb   :  { %2003 = vmatpush.msra.mxu3 %v3551_v15 }
0x14cd   :  { %2004 = vmatpush.msra.mxu3 %v3578_v32 }
0x153f   :  { %v1563_v19 = vpop.f32.mrf.mxu2 }
0x1540   :  { %v1567_v23 = vrot.slane %v1563_v19, 6 }
0x1542   :  { %v1569_v25 = vadd.f32 %v1567_v23, %v3621_v8 }
0x1544   :  { %2791 = vtanh.f32 %v1569_v25  ;;  %v2605_v14 = vmul.f32 -1.442695, %v1569_v25 }
0x1549   :  { %v1593_v9 = vpop.f32.mrf.mxu3 }
0x154a   :  { %v2792_v31 = vpop.eup %2791  ;;  %v1597_v39 = vrot.slane %v1593_v9, 4 }
0x154b   :  { %1645 = vrot.lane.b32.xlu2 %v2792_v31, %s3117_s4 }
0x154c   :  { %v1599_v33 = vadd.f32 %v1597_v39, %v3626_v27 }
0x154e   :  { %2793 = vtanh.f32 %v1599_v33  ;;  %v2606_v28 = vmul.f32 -1.442695, %v1599_v33 }
0x154f   :  { %2795 = vpow2.f32 %v2605_v14 }
0x1554   :  { %v2794_v29 = vpop.eup %2793 }
0x1555   :  { %1665 = vrot.lane.b32.xlu0 %v2794_v29, %s3117_s4  ;;  %v2796_v44 = vpop.eup %2795 }
0x1556   :  { %v1603_v36 = vadd.f32 1.0, %v2796_v44 }
0x1558   :  { %2797 = vrcp.f32 %v1603_v36  ;;  %v1615_v34 = vand.u32 2147483648, %v1603_v36  ;;  %vm1609_vm15 = vweird.f32 %v1603_v36  ;;  %v1613_v21 = vand.u32 2147483647, %v1603_v36 }
0x1559   :  { %2799 = vpow2.f32 %v2606_v28 }
0x155a   :  { %v1616_v35 = vor.u32 1.1754944e-38, %v1615_v34  ;;  %vm1614_vm2 = vcmp.eq.f32.partialorder %v1613_v21, 8.507059e+37 }
0x155e   :  { %v2798_v40 = vpop.eup %2797 }
0x155f   :  { %v1605_v24 = vmul.f32 %v2798_v40, %v1603_v36  ;;  %vm1610_vm14 = vweird.f32 %v2798_v40  ;;  %v2800_v4 = vpop.eup %2799 }
0x1560   :  { %vm1611_vm0 = vmor %vm1609_vm15, %vm1610_vm14  ;;  %v1622_v42 = vadd.f32 1.0, %v2800_v4 }
0x1561   :  { %v1606_v63 = vsub.f32 1.0, %v1605_v24 }
0x1562   :  { %2801 = vrcp.f32 %v1622_v42  ;;  %v1634_v50 = vand.u32 2147483648, %v1622_v42  ;;  %vm1628_vm4 = vweird.f32 %v1622_v42  ;;  %v1632_v51 = vand.u32 2147483647, %v1622_v42 }
0x1563   :  { %v1607_v16 = vmul.f32 %v2798_v40, %v1606_v63 }
0x1564   :  { %v1635_v30 = vor.u32 1.1754944e-38, %v1634_v50  ;;  %vm1633_vm7 = vcmp.eq.f32.partialorder %v1632_v51, 8.507059e+37 }
0x1565   :  { %v1608_v47 = vadd.f32 %v2798_v40, %v1607_v16 }
0x1567   :  { %v1612_v1 = vsel %vm1611_vm0, %v2798_v40, %v1608_v47 }
0x1568   :  { %v1617_v11 = vsel %vm1614_vm2, %v1616_v35, %v1612_v1  ;;  %v2802_v20 = vpop.eup %2801 }
0x1569   :  { %v1624_v22 = vmul.f32 %v2802_v20, %v1622_v42  ;;  %vm1629_vm3 = vweird.f32 %v2802_v20  ;;  %v1643_v13 = vmul.f32 %v1641_v55, %v1617_v11 }
0x156a   :  { %vm1630_vm6 = vmor %vm1628_vm4, %vm1629_vm3 }
0x156b   :  { %v1625_v38 = vsub.f32 1.0, %v1624_v22 }
0x156d   :  { %v1626_v49 = vmul.f32 %v2802_v20, %v1625_v38 }
0x156f   :  { %v1627_v18 = vadd.f32 %v2802_v20, %v1626_v49 }
0x1571   :  { %v1631_v52 = vsel %vm1630_vm6, %v2802_v20, %v1627_v18 }
0x1572   :  { %v1636_v53 = vsel %vm1633_vm7, %v1635_v30, %v1631_v52 }
0x1573   :  { %v1663_v2 = vmul.f32 %v1661_v57, %v1636_v53 }
0x15a5   :  { %v1646_v7 = vpop.permute.xlu2 %1645 }
0x15a6   :  { %v1648_v10 = vmul.f32 %v1646_v7, %v1617_v11 }
0x15a8   :  { %1650 = vrot.lane.b32.xlu1 %v1648_v10, %s3117_s4 }
0x15c7   :  { %v1666_v26 = vpop.permute.xlu0 %1665 }
0x15c8   :  { %v1668_v46 = vmul.f32 %v1666_v26, %v1636_v53 }
0x15ca   :  { %1670 = vrot.lane.b32.xlu2 %v1668_v46, %s3117_s4 }
0x161a   :  { %v1651_v41 = vpop.permute.xlu1 %1650 }
0x161b   :  { %v3666_v56 = vadd.f32 %v1651_v41, %v1643_v13 }
0x161d   :  { %2803 = vtanh.f32 %v3666_v56 }
0x1623   :  { %v2804_v61 = vpop.eup %2803 }
0x1624   :  { %v1671_v5 = vpop.permute.xlu2 %1670  ;;  %1656 = vrot.lane.b32.xlu0 %v2804_v61, %s3117_s4 }
0x1625   :  { %v3671_v17 = vadd.f32 %v1671_v5, %v1663_v2 }
0x1627   :  { %2805 = vtanh.f32 %v3671_v17 }
0x162d   :  { %v2806_v19 = vpop.eup %2805 }
0x162e   :  { %1676 = vrot.lane.b32.xlu1 %v2806_v19, %s3117_s4  ;;  %v1781_v19 = vrot.slane %v3666_v56, 6 }
0x1696   :  { %v1657_v45 = vpop.permute.xlu0 %1656 }
0x1697   :  { %v3675_v23 = vmul.f32 %v1657_v45, %v1617_v11 }
0x1699   :  { %v1681_v25 = vrot.slane %v3675_v23, 2 }
0x169b   :  { %1682 = vrot.lane.b32.xlu2 %v1681_v25, %s3118_s15 }
0x16a0   :  { %v1677_v54 = vpop.permute.xlu1 %1676 }
0x16a1   :  { %v3679_v9 = vmul.f32 %v1677_v54, %v1636_v53 }
0x16a3   :  { %v1711_v31 = vrot.slane %v3679_v9, 4 }
0x16a5   :  { %1712 = vrot.lane.b32.xlu0 %v1711_v31, %s3118_s15  ;;  %v1801_v31 = vrot.slane %v3671_v17, 2 }
0x16f5   :  { %v1683_v39 = vpop.permute.xlu2 %1682 }
0x16f6   :  { %2607 = vmatmul.msk.f32.vlgmr.msrb.gmra.mxu2 %vm215_vm9, %v1683_v39 }
0x16f7   :  { %2250 = vmatpush.msrb.mxu2 %v3536_v37 }
0x16f9   :  { %2251 = vmatpush.msrb.mxu2 %v3538_v48 }
0x16fb   :  { %2252 = vmatpush.msrb.mxu2 %v3543_v3 }
0x16fd   :  { %2253 = vmatpush.msrb.mxu2 %v3549_v43 }
0x1717   :  { %v1713_v33 = vpop.permute.xlu0 %1712 }
0x1718   :  { %2608 = vmatmul.msk.f32.vlgmr.msrb.gmra.mxu3 %vm215_vm9, %v1713_v33 }
0x1719   :  { %2280 = vmatpush.msrb.mxu3 %v3541_v0 }
0x171b   :  { %2281 = vmatpush.msrb.mxu3 %v3545_v6 }
0x171d   :  { %2282 = vmatpush.msrb.mxu3 %v3551_v15 }
0x171f   :  { %2283 = vmatpush.msrb.mxu3 %v3578_v32 }
0x1779   :  { %v1703_v29 = vpop.f32.mrf.mxu2 }
0x177a   :  { %v1707_v14 = vrot.slane %v1703_v29, 4 }
0x177c   :  { %v1709_v44 = vadd.f32 %v1707_v14, %v3621_v8 }
0x177e   :  { %2807 = vtanh.f32 %v1709_v44  ;;  %v2609_v16 = vmul.f32 -1.442695, %v1709_v44 }
0x1784   :  { %v2808_v36 = vpop.eup %2807 }
0x1785   :  { %1785 = vrot.lane.b32.xlu1 %v2808_v36, %s3117_s4 }
0x179b   :  { %v1733_v40 = vpop.f32.mrf.mxu3 }
0x179c   :  { %v1737_v24 = vrot.slane %v1733_v40, 6  ;;  %v2509_v40 = vsel %vm1306_vm11, %v3641_v58, %v3675_v23  ;;  %v3730_v23 = vpop.f32.mrf.mxu0 }
0x179e   :  { %v1739_v63 = vadd.f32 %v1737_v24, %v3626_v27 }
0x17a0   :  { %2809 = vtanh.f32 %v1739_v63  ;;  %v2610_v34 = vmul.f32 -1.442695, %v1739_v63 }
0x17a1   :  { %2811 = vpow2.f32 %v2609_v16 }
0x17a2   :  { %2813 = vpow2.f32 %v2610_v34 }
0x17a6   :  { %v2810_v28 = vpop.eup %2809 }
0x17a7   :  { %1805 = vrot.lane.b32.xlu2 %v2810_v28, %s3117_s4  ;;  %v2812_v47 = vpop.eup %2811 }
0x17a8   :  { %v1743_v21 = vadd.f32 1.0, %v2812_v47  ;;  %v2814_v1 = vpop.eup %2813 }
0x17a9   :  { %v1762_v4 = vadd.f32 1.0, %v2814_v1 }
0x17aa   :  { %2815 = vrcp.f32 %v1743_v21  ;;  %v1755_v38 = vand.u32 2147483648, %v1743_v21  ;;  %vm1749_vm10 = vweird.f32 %v1743_v21  ;;  %v1753_v49 = vand.u32 2147483647, %v1743_v21 }
0x17ab   :  { %2817 = vrcp.f32 %v1762_v4  ;;  %v1774_v55 = vand.u32 2147483648, %v1762_v4  ;;  %vm1768_vm0 = vweird.f32 %v1762_v4  ;;  %v1772_v13 = vand.u32 2147483647, %v1762_v4 }
0x17ac   :  { %v1756_v51 = vor.u32 1.1754944e-38, %v1755_v38  ;;  %vm1754_vm14 = vcmp.eq.f32.partialorder %v1753_v49, 8.507059e+37 }
0x17ad   :  { %v1775_v57 = vor.u32 1.1754944e-38, %v1774_v55  ;;  %vm1773_vm3 = vcmp.eq.f32.partialorder %v1772_v13, 8.507059e+37 }
0x17b0   :  { %v2816_v35 = vpop.eup %2815 }
0x17b1   :  { %v1745_v7 = vmul.f32 %v2816_v35, %v1743_v21  ;;  %v2818_v10 = vpop.eup %2817  ;;  %vm1750_vm8 = vweird.f32 %v2816_v35 }
0x17b2   :  { %v1764_v20 = vmul.f32 %v2818_v10, %v1762_v4  ;;  %vm1751_vm13 = vmor %vm1749_vm10, %vm1750_vm8  ;;  %vm1769_vm15 = vweird.f32 %v2818_v10 }
0x17b3   :  { %v1746_v11 = vsub.f32 1.0, %v1745_v7  ;;  %vm1770_vm2 = vmor %vm1768_vm0, %vm1769_vm15 }
0x17b4   :  { %v1765_v18 = vsub.f32 1.0, %v1764_v20 }
0x17b5   :  { %v1747_v42 = vmul.f32 %v2816_v35, %v1746_v11 }
0x17b6   :  { %v1766_v52 = vmul.f32 %v2818_v10, %v1765_v18 }
0x17b7   :  { %v1748_v22 = vadd.f32 %v2816_v35, %v1747_v42 }
0x17b8   :  { %v1767_v46 = vadd.f32 %v2818_v10, %v1766_v52 }
0x17b9   :  { %v1752_v50 = vsel %vm1751_vm13, %v2816_v35, %v1748_v22 }
0x17ba   :  { %v1757_v30 = vsel %vm1754_vm14, %v1756_v51, %v1752_v50  ;;  %v1771_v41 = vsel %vm1770_vm2, %v2818_v10, %v1767_v46 }
0x17bb   :  { %v1776_v2 = vsel %vm1773_vm3, %v1775_v57, %v1771_v41  ;;  %v1783_v45 = vmul.f32 %v1781_v19, %v1757_v30 }
0x17bc   :  { %v1803_v33 = vmul.f32 %v1801_v31, %v1776_v2 }
0x17f7   :  { %v1786_v26 = vpop.permute.xlu1 %1785 }
0x17f8   :  { %v1788_v53 = vmul.f32 %v1786_v26, %v1757_v30 }
0x17fa   :  { %1790 = vrot.lane.b32.xlu0 %v1788_v53, %s3117_s4 }
0x1801   :  { %v1806_v61 = vpop.permute.xlu2 %1805 }
0x1802   :  { %v1808_v5 = vmul.f32 %v1806_v61, %v1776_v2 }
0x1804   :  { %1810 = vrot.lane.b32.xlu1 %v1808_v5, %s3117_s4 }
0x186c   :  { %v1791_v25 = vpop.permute.xlu0 %1790 }
0x186d   :  { %v3700_v54 = vadd.f32 %v1791_v25, %v1783_v45 }
0x186f   :  { %2819 = vtanh.f32 %v3700_v54 }
0x1875   :  { %v2820_v39 = vpop.eup %2819 }
0x1876   :  { %1796 = vrot.lane.b32.xlu2 %v2820_v39, %s3117_s4  ;;  %v1811_v29 = vpop.permute.xlu1 %1810  ;;  %v1918_v39 = vrot.slane %v3700_v54, 6 }
0x1877   :  { %v3705_v14 = vadd.f32 %v1811_v29, %v1803_v33 }
0x1879   :  { %2821 = vtanh.f32 %v3705_v14  ;;  %v1938_v5 = vrot.slane %v3705_v14, 2 }
0x187f   :  { %v2822_v44 = vpop.eup %2821 }
0x1880   :  { %1816 = vrot.lane.b32.xlu0 %v2822_v44, %s3117_s4 }
0x18d0   :  { %v1797_v56 = vpop.permute.xlu2 %1796 }
0x18d1   :  { %v1799_v36 = vmul.f32 %v1797_v56, %v1757_v30 }
0x18d3   :  { %v1821_v24 = vrot.slane %v1799_v36, 4  ;;  %v3713_v17 = vsel %vm1308_vm12, %v2509_v40, %v1799_v36 }
0x18d5   :  { %1822 = vrot.lane.b32.xlu1 %v1821_v24, %s3118_s15 }
0x18f2   :  { %v1817_v63 = vpop.permute.xlu0 %1816 }
0x18f3   :  { %v3716_v28 = vmul.f32 %v1817_v63, %v1776_v2 }
0x18f5   :  { %v1851_v16 = vrot.slane %v3716_v28, 2 }
0x18f7   :  { %1852 = vrot.lane.b32.xlu2 %v1851_v16, %s3118_s15 }
0x1947   :  { %v1823_v47 = vpop.permute.xlu1 %1822 }
0x1948   :  { %2611 = vmatmul.msk.f32.vlgmr.msrb.gmra.mxu0 %vm215_vm9, %v1823_v47 }
0x1949   :  { %2390 = vmatpush.msrb.mxu0 %v3536_v37 }
0x194b   :  { %2391 = vmatpush.msrb.mxu0 %v3538_v48 }
0x194d   :  { %2392 = vmatpush.msrb.mxu0 %v3543_v3 }
0x194f   :  { %2393 = vmatpush.msrb.mxu0 %v3549_v43 }
0x1951   :  { %v1853_v58 = vpop.permute.xlu2 %1852 }
0x1952   :  { %2612 = vmatmul.msk.f32.vlgmr.msrb.gmra.mxu1 %vm215_vm9, %v1853_v58  ;;  %v3762_v58 = vadd.f32 %v3730_v23, %v1365_v60 }
0x1953   :  { %2420 = vmatpush.msrb.mxu1 %v3541_v0 }
0x1955   :  { %2421 = vmatpush.msrb.mxu1 %v3545_v6 }
0x1957   :  { %2422 = vmatpush.msrb.mxu1 %v3551_v15 }
0x1959   :  { %2423 = vmatpush.msrb.mxu1 %v3578_v32 }
0x19c5   :  { %v1843_v37 = vpop.f32.mrf.mxu0 }
0x19c6   :  { %v1847_v34 = vrot.slane %v1843_v37, 2 }
0x19c8   :  { %v1849_v48 = vadd.f32 %v1847_v34, %v3621_v8 }
0x19ca   :  { %2823 = vtanh.f32 %v1849_v48  ;;  %v2613_v6 = vmul.f32 -1.442695, %v1849_v48 }
0x19cf   :  { %v1873_v3 = vpop.f32.mrf.mxu1 }
0x19d0   :  { %v2824_v43 = vpop.eup %2823  ;;  %v1876_v21 = vadd.f32 %v1873_v3, %v3626_v27 }
0x19d1   :  { %1922 = vrot.lane.b32.xlu1 %v2824_v43, %s3117_s4 }
0x19d2   :  { %2825 = vtanh.f32 %v1876_v21  ;;  %v2614_v15 = vmul.f32 -1.442695, %v1876_v21 }
0x19d3   :  { %2827 = vpow2.f32 %v2613_v6 }
0x19d4   :  { %2829 = vpow2.f32 %v2614_v15 }
0x19d8   :  { %v2826_v0 = vpop.eup %2825 }
0x19d9   :  { %1942 = vrot.lane.b32.xlu0 %v2826_v0, %s3117_s4  ;;  %v2828_v32 = vpop.eup %2827 }
0x19da   :  { %v1880_v1 = vadd.f32 1.0, %v2828_v32  ;;  %v2830_v35 = vpop.eup %2829 }
0x19db   :  { %v1899_v8 = vadd.f32 1.0, %v2830_v35 }
0x19dc   :  { %2831 = vrcp.f32 %v1880_v1  ;;  %v1892_v38 = vand.u32 2147483648, %v1880_v1  ;;  %vm1886_vm6 = vweird.f32 %v1880_v1  ;;  %v1890_v49 = vand.u32 2147483647, %v1880_v1 }
0x19dd   :  { %2833 = vrcp.f32 %v1899_v8  ;;  %v1911_v46 = vand.u32 2147483648, %v1899_v8  ;;  %vm1905_vm13 = vweird.f32 %v1899_v8  ;;  %v1909_v55 = vand.u32 2147483647, %v1899_v8 }
0x19de   :  { %v1893_v51 = vor.u32 1.1754944e-38, %v1892_v38  ;;  %vm1891_vm8 = vcmp.eq.f32.partialorder %v1890_v49, 8.507059e+37 }
0x19df   :  { %v1912_v41 = vor.u32 1.1754944e-38, %v1911_v46  ;;  %vm1910_vm15 = vcmp.eq.f32.partialorder %v1909_v55, 8.507059e+37 }
0x19e2   :  { %v2832_v4 = vpop.eup %2831 }
0x19e3   :  { %v1882_v7 = vmul.f32 %v2832_v4, %v1880_v1  ;;  %v2834_v27 = vpop.eup %2833  ;;  %vm1887_vm4 = vweird.f32 %v2832_v4 }
0x19e4   :  { %v1901_v42 = vmul.f32 %v2834_v27, %v1899_v8  ;;  %vm1888_vm7 = vmor %vm1886_vm6, %vm1887_vm4  ;;  %vm1906_vm10 = vweird.f32 %v2834_v27 }
0x19e5   :  { %v1883_v11 = vsub.f32 1.0, %v1882_v7  ;;  %vm1907_vm14 = vmor %vm1905_vm13, %vm1906_vm10 }
0x19e6   :  { %v1902_v22 = vsub.f32 1.0, %v1901_v42 }
0x19e7   :  { %v1884_v10 = vmul.f32 %v2832_v4, %v1883_v11 }
0x19e8   :  { %v1903_v50 = vmul.f32 %v2834_v27, %v1902_v22 }
0x19e9   :  { %v1885_v20 = vadd.f32 %v2832_v4, %v1884_v10 }
0x19ea   :  { %v1904_v53 = vadd.f32 %v2834_v27, %v1903_v50 }
0x19eb   :  { %v1889_v18 = vsel %vm1888_vm7, %v2832_v4, %v1885_v20 }
0x19ec   :  { %v1894_v30 = vsel %vm1891_vm8, %v1893_v51, %v1889_v18  ;;  %v1908_v13 = vsel %vm1907_vm14, %v2834_v27, %v1904_v53 }
0x19ed   :  { %v1913_v61 = vsel %vm1910_vm15, %v1912_v41, %v1908_v13  ;;  %v1920_v33 = vmul.f32 %v1918_v39, %v1894_v30 }
0x19ee   :  { %v1940_v19 = vmul.f32 %v1938_v5, %v1913_v61 }
0x1a43   :  { %v1923_v52 = vpop.permute.xlu1 %1922 }
0x1a44   :  { %v1925_v26 = vmul.f32 %v1923_v52, %v1894_v30 }
0x1a46   :  { %1927 = vrot.lane.b32.xlu0 %v1925_v26, %s3117_s4 }
0x1a4b   :  { %v1943_v57 = vpop.permute.xlu0 %1942 }
0x1a4c   :  { %v1945_v2 = vmul.f32 %v1943_v57, %v1913_v61 }
0x1a4e   :  { %1947 = vrot.lane.b32.xlu2 %v1945_v2, %s3117_s4 }
0x1aa8   :  { %v1948_v45 = vpop.permute.xlu2 %1947 }
0x1aa9   :  { %v3739_v25 = vadd.f32 %v1948_v45, %v1940_v19 }
0x1aab   :  { %2835 = vtanh.f32 %v3739_v25  ;;  %v2074_v5 = vrot.slane %v3739_v25, 2 }
0x1ab1   :  { %v2836_v31 = vpop.eup %2835 }
0x1ab2   :  { %1953 = vrot.lane.b32.xlu1 %v2836_v31, %s3117_s4 }
0x1ab8   :  { %v1928_v29 = vpop.permute.xlu0 %1927 }
0x1ab9   :  { %v3744_v44 = vadd.f32 %v1928_v29, %v1920_v33 }
0x1abb   :  { %2837 = vtanh.f32 %v3744_v44  ;;  %v2054_v41 = vrot.slane %v3744_v44, 6 }
0x1ac1   :  { %v2838_v56 = vpop.eup %2837 }
0x1ac2   :  { %1933 = vrot.lane.b32.xlu2 %v2838_v56, %s3117_s4 }
0x1b1c   :  { %v1934_v14 = vpop.permute.xlu2 %1933 }
0x1b1d   :  { %v1936_v36 = vmul.f32 %v1934_v14, %v1894_v30 }
0x1b1f   :  { %v1958_v40 = vrot.slane %v1936_v36, 6  ;;  %v3750_v24 = vsel %vm1310_vm5, %v3713_v17, %v1936_v36 }
0x1b21   :  { %1959 = vrot.lane.b32.xlu1 %v1958_v40, %s3118_s15 }
0x1b24   :  { %v1954_v63 = vpop.permute.xlu1 %1953 }
0x1b25   :  { %v3753_v54 = vmul.f32 %v1954_v63, %v1913_v61 }
0x1b27   :  { %1985 = vrot.lane.b32.xlu0 %v3753_v54, %s3118_s15 }
0x1b93   :  { %v1960_v16 = vpop.permute.xlu1 %1959 }
0x1b94   :  { %2615 = vmatmul.msk.f32.vlgmr.msra.gmra.mxu2 %vm215_vm9, %v1960_v16 }
0x1b99   :  { %v1986_v47 = vpop.permute.xlu0 %1985 }
0x1b9a   :  { %2616 = vmatmul.msk.f32.vlgmr.msra.gmra.mxu3 %vm215_vm9, %v1986_v47 }
0x1c17   :  { %v1980_v17 = vpop.f32.mrf.mxu2 }
0x1c18   :  { %v1983_v37 = vadd.f32 %v1980_v17, %v3762_v58 }
0x1c1a   :  { %2839 = vtanh.f32 %v1983_v37  ;;  %v2617_v23 = vmul.f32 -1.442695, %v1983_v37 }
0x1c1d   :  { %v2006_v34 = vpop.f32.mrf.mxu3 }
0x1c1e   :  { %v2010_v48 = vrot.slane %v2006_v34, 2 }
0x1c20   :  { %v2840_v3 = vpop.eup %2839  ;;  %v2012_v43 = vadd.f32 %v2010_v48, %v3623_v12 }
0x1c21   :  { %2058 = vrot.lane.b32.xlu0 %v2840_v3, %s3117_s4 }
0x1c22   :  { %2841 = vtanh.f32 %v2012_v43  ;;  %v2618_v0 = vmul.f32 -1.442695, %v2012_v43 }
0x1c24   :  { %2843 = vpow2.f32 %v2618_v0 }
0x1c28   :  { %v2842_v21 = vpop.eup %2841 }
0x1c29   :  { %2078 = vrot.lane.b32.xlu2 %v2842_v21, %s3117_s4 }
0x1c2a   :  { %v2844_v59 = vpop.eup %2843 }
0x1c2b   :  { %v2035_v60 = vadd.f32 1.0, %v2844_v59 }
0x1c2d   :  { %2845 = vrcp.f32 %v2035_v60  ;;  %v2047_v11 = vand.u32 2147483648, %v2035_v60  ;;  %vm2041_vm2 = vweird.f32 %v2035_v60  ;;  %v2045_v27 = vand.u32 2147483647, %v2035_v60 }
0x1c2e   :  { %2847 = vpow2.f32 %v2617_v23 }
0x1c2f   :  { %v2048_v20 = vor.u32 1.1754944e-38, %v2047_v11  ;;  %vm2046_vm4 = vcmp.eq.f32.partialorder %v2045_v27, 8.507059e+37 }
0x1c33   :  { %v2846_v6 = vpop.eup %2845 }
0x1c34   :  { %v2848_v15 = vpop.eup %2847  ;;  %v2037_v32 = vmul.f32 %v2846_v6, %v2035_v60  ;;  %vm2042_vm0 = vweird.f32 %v2846_v6 }
0x1c35   :  { %v2016_v1 = vadd.f32 1.0, %v2848_v15  ;;  %vm2043_vm3 = vmor %vm2041_vm2, %vm2042_vm0 }
0x1c36   :  { %v2038_v35 = vsub.f32 1.0, %v2037_v32 }
0x1c37   :  { %2849 = vrcp.f32 %v2016_v1  ;;  %v2028_v52 = vand.u32 2147483648, %v2016_v1  ;;  %vm2022_vm7 = vweird.f32 %v2016_v1  ;;  %v2026_v30 = vand.u32 2147483647, %v2016_v1 }
0x1c38   :  { %v2039_v8 = vmul.f32 %v2846_v6, %v2038_v35 }
0x1c39   :  { %v2029_v53 = vor.u32 1.1754944e-38, %v2028_v52  ;;  %vm2027_vm10 = vcmp.eq.f32.partialorder %v2026_v30, 8.507059e+37 }
0x1c3a   :  { %v2040_v4 = vadd.f32 %v2846_v6, %v2039_v8 }
0x1c3c   :  { %v2044_v10 = vsel %vm2043_vm3, %v2846_v6, %v2040_v4 }
0x1c3d   :  { %v2850_v7 = vpop.eup %2849  ;;  %v2049_v22 = vsel %vm2046_vm4, %v2048_v20, %v2044_v10 }
0x1c3e   :  { %v2018_v42 = vmul.f32 %v2850_v7, %v2016_v1  ;;  %vm2023_vm6 = vweird.f32 %v2850_v7  ;;  %v2076_v19 = vmul.f32 %v2074_v5, %v2049_v22 }
0x1c3f   :  { %vm2024_vm8 = vmor %vm2022_vm7, %vm2023_vm6 }
0x1c40   :  { %v2019_v18 = vsub.f32 1.0, %v2018_v42 }
0x1c42   :  { %v2020_v50 = vmul.f32 %v2850_v7, %v2019_v18 }
0x1c44   :  { %v2021_v51 = vadd.f32 %v2850_v7, %v2020_v50 }
0x1c46   :  { %v2025_v26 = vsel %vm2024_vm8, %v2850_v7, %v2021_v51 }
0x1c47   :  { %v2030_v55 = vsel %vm2027_vm10, %v2029_v53, %v2025_v26 }
0x1c48   :  { %v2056_v57 = vmul.f32 %v2054_v41, %v2030_v55 }
0x1c83   :  { %v2079_v38 = vpop.permute.xlu2 %2078 }
0x1c84   :  { %v2081_v49 = vmul.f32 %v2079_v38, %v2049_v22 }
0x1c86   :  { %2083 = vrot.lane.b32.xlu1 %v2081_v49, %s3117_s4 }
0x1c93   :  { %v2059_v46 = vpop.permute.xlu0 %2058 }
0x1c94   :  { %v2061_v13 = vmul.f32 %v2059_v46, %v2030_v55 }
0x1c96   :  { %2063 = vrot.lane.b32.xlu2 %v2061_v13, %s3117_s4 }
0x1cf0   :  { %v2064_v61 = vpop.permute.xlu2 %2063 }
0x1cf1   :  { %v3771_v2 = vadd.f32 %v2064_v61, %v2056_v57 }
0x1cf3   :  { %2851 = vtanh.f32 %v3771_v2 }
0x1cf8   :  { %v2084_v45 = vpop.permute.xlu1 %2083 }
0x1cf9   :  { %v2852_v31 = vpop.eup %2851  ;;  %v3775_v39 = vadd.f32 %v2084_v45, %v2076_v19 }
0x1cfa   :  { %2069 = vrot.lane.b32.xlu1 %v2852_v31, %s3117_s4 }
0x1cfb   :  { %2853 = vtanh.f32 %v3775_v39  ;;  %v2213_v61 = vrot.slane %v3775_v39, 2 }
0x1d01   :  { %v2854_v33 = vpop.eup %2853 }
0x1d02   :  { %2089 = vrot.lane.b32.xlu0 %v2854_v33, %s3117_s4 }
0x1d6c   :  { %v2070_v29 = vpop.permute.xlu1 %2069 }
0x1d6d   :  { %v3780_v44 = vmul.f32 %v2070_v29, %v2030_v55  ;;  %v2193_v55 = vrot.slane %v3771_v2, 6 }
0x1d6f   :  { %2094 = vrot.lane.b32.xlu2 %v3780_v44, %s3118_s15 }
0x1d74   :  { %v2090_v56 = vpop.permute.xlu0 %2089 }
0x1d75   :  { %v3784_v25 = vmul.f32 %v2090_v56, %v2049_v22 }
0x1d77   :  { %v2123_v14 = vrot.slane %v3784_v25, 6 }
0x1d79   :  { %2124 = vrot.lane.b32.xlu0 %v2123_v14, %s3118_s15 }
0x1dc9   :  { %v2095_v36 = vpop.permute.xlu2 %2094 }
0x1dca   :  { %2619 = vmatmul.msk.f32.vlgmr.msra.gmra.mxu0 %vm215_vm9, %v2095_v36 }
0x1deb   :  { %v2125_v40 = vpop.permute.xlu0 %2124 }
0x1dec   :  { %2620 = vmatmul.msk.f32.vlgmr.msra.gmra.mxu1 %vm215_vm9, %v2125_v40 }
0x1e47   :  { %v2115_v63 = vpop.f32.mrf.mxu0 }
0x1e48   :  { %v2119_v16 = vrot.slane %v2115_v63, 6 }
0x1e4a   :  { %v2121_v47 = vadd.f32 %v2119_v16, %v3762_v58 }
0x1e4c   :  { %2855 = vtanh.f32 %v2121_v47  ;;  %v2621_v43 = vmul.f32 -1.442695, %v2121_v47 }
0x1e52   :  { %v2856_v17 = vpop.eup %2855 }
0x1e53   :  { %2197 = vrot.lane.b32.xlu1 %v2856_v17, %s3117_s4 }
0x1e69   :  { %v2145_v37 = vpop.f32.mrf.mxu1 }
0x1e6a   :  { %v2149_v34 = vrot.slane %v2145_v37, 4 }
0x1e6c   :  { %v2151_v48 = vadd.f32 %v2149_v34, %v3623_v12 }
0x1e6e   :  { %2857 = vtanh.f32 %v2151_v48  ;;  %v2622_v0 = vmul.f32 -1.442695, %v2151_v48 }
0x1e6f   :  { %2859 = vpow2.f32 %v2621_v43 }
0x1e70   :  { %2861 = vpow2.f32 %v2622_v0 }
0x1e74   :  { %v2858_v3 = vpop.eup %2857 }
0x1e75   :  { %2217 = vrot.lane.b32.xlu2 %v2858_v3, %s3117_s4  ;;  %v2860_v21 = vpop.eup %2859 }
0x1e76   :  { %v2155_v59 = vadd.f32 1.0, %v2860_v21  ;;  %v2862_v60 = vpop.eup %2861 }
0x1e77   :  { %v2174_v6 = vadd.f32 1.0, %v2862_v60 }
0x1e78   :  { %2863 = vrcp.f32 %v2155_v59  ;;  %v2167_v7 = vand.u32 2147483648, %v2155_v59  ;;  %vm2161_vm14 = vweird.f32 %v2155_v59  ;;  %v2165_v11 = vand.u32 2147483647, %v2155_v59 }
0x1e79   :  { %2865 = vrcp.f32 %v2174_v6  ;;  %v2186_v50 = vand.u32 2147483648, %v2174_v6  ;;  %vm2180_vm3 = vweird.f32 %v2174_v6  ;;  %v2184_v51 = vand.u32 2147483647, %v2174_v6 }
0x1e7a   :  { %v2168_v42 = vor.u32 1.1754944e-38, %v2167_v7  ;;  %vm2166_vm0 = vcmp.eq.f32.partialorder %v2165_v11, 8.507059e+37 }
0x1e7b   :  { %v2187_v30 = vor.u32 1.1754944e-38, %v2186_v50  ;;  %vm2185_vm6 = vcmp.eq.f32.partialorder %v2184_v51, 8.507059e+37 }
0x1e7e   :  { %v2864_v23 = vpop.eup %2863 }
0x1e7f   :  { %v2157_v15 = vmul.f32 %v2864_v23, %v2155_v59  ;;  %v2866_v1 = vpop.eup %2865  ;;  %vm2162_vm13 = vweird.f32 %v2864_v23 }
0x1e80   :  { %v2176_v8 = vmul.f32 %v2866_v1, %v2174_v6  ;;  %vm2163_vm15 = vmor %vm2161_vm14, %vm2162_vm13  ;;  %vm2181_vm2 = vweird.f32 %v2866_v1 }
0x1e81   :  { %v2158_v32 = vsub.f32 1.0, %v2157_v15  ;;  %vm2182_vm4 = vmor %vm2180_vm3, %vm2181_vm2 }
0x1e82   :  { %v2177_v27 = vsub.f32 1.0, %v2176_v8 }
0x1e83   :  { %v2159_v35 = vmul.f32 %v2864_v23, %v2158_v32 }
0x1e84   :  { %v2178_v20 = vmul.f32 %v2866_v1, %v2177_v27 }
0x1e85   :  { %v2160_v4 = vadd.f32 %v2864_v23, %v2159_v35 }
0x1e86   :  { %v2179_v18 = vadd.f32 %v2866_v1, %v2178_v20 }
0x1e87   :  { %v2164_v10 = vsel %vm2163_vm15, %v2864_v23, %v2160_v4 }
0x1e88   :  { %v2169_v38 = vsel %vm2166_vm0, %v2168_v42, %v2164_v10  ;;  %v2183_v52 = vsel %vm2182_vm4, %v2866_v1, %v2179_v18 }
0x1e89   :  { %v2188_v26 = vsel %vm2185_vm6, %v2187_v30, %v2183_v52  ;;  %v2195_v13 = vmul.f32 %v2193_v55, %v2169_v38 }
0x1e8a   :  { %v2215_v19 = vmul.f32 %v2213_v61, %v2188_v26 }
0x1ec5   :  { %v2198_v22 = vpop.permute.xlu1 %2197 }
0x1ec6   :  { %v2200_v49 = vmul.f32 %v2198_v22, %v2169_v38 }
0x1ec8   :  { %2202 = vrot.lane.b32.xlu0 %v2200_v49, %s3117_s4 }
0x1ecf   :  { %v2218_v53 = vpop.permute.xlu2 %2217 }
0x1ed0   :  { %v2220_v46 = vmul.f32 %v2218_v53, %v2188_v26 }
0x1ed2   :  { %2222 = vrot.lane.b32.xlu1 %v2220_v46, %s3117_s4 }
0x1f3a   :  { %v2203_v41 = vpop.permute.xlu0 %2202 }
0x1f3b   :  { %v3797_v57 = vadd.f32 %v2203_v41, %v2195_v13 }
0x1f3d   :  { %2867 = vtanh.f32 %v3797_v57  ;;  %v2333_v13 = vrot.slane %v3797_v57, 6 }
0x1f43   :  { %v2868_v5 = vpop.eup %2867 }
0x1f44   :  { %2208 = vrot.lane.b32.xlu2 %v2868_v5, %s3117_s4  ;;  %v2223_v45 = vpop.permute.xlu1 %2222 }
0x1f45   :  { %v3802_v31 = vadd.f32 %v2223_v45, %v2215_v19 }
0x1f47   :  { %2869 = vtanh.f32 %v3802_v31  ;;  %v2353_v45 = vrot.slane %v3802_v31, 2 }
0x1f4d   :  { %v2870_v33 = vpop.eup %2869 }
0x1f4e   :  { %2228 = vrot.lane.b32.xlu0 %v2870_v33, %s3117_s4 }
0x1f9e   :  { %v2209_v2 = vpop.permute.xlu2 %2208 }
0x1f9f   :  { %v3806_v29 = vmul.f32 %v2209_v2, %v2169_v38 }
0x1fa1   :  { %v2233_v56 = vrot.slane %v3806_v29, 2 }
0x1fa3   :  { %2234 = vrot.lane.b32.xlu1 %v2233_v56, %s3118_s15 }
0x1fc0   :  { %v2229_v39 = vpop.permute.xlu0 %2228 }
0x1fc1   :  { %v3810_v14 = vmul.f32 %v2229_v39, %v2188_v26 }
0x1fc3   :  { %v2263_v36 = vrot.slane %v3810_v14, 4 }
0x1fc5   :  { %2264 = vrot.lane.b32.xlu2 %v2263_v36, %s3118_s15 }
0x2015   :  { %v2235_v40 = vpop.permute.xlu1 %2234 }
0x2016   :  { %2623 = vmatmul.msk.f32.vlgmr.msrb.gmra.mxu2 %vm215_vm9, %v2235_v40  ;;  %v2512_v40 = vsel %vm1306_vm11, %v3780_v44, %v3806_v29 }
0x201f   :  { %v2265_v63 = vpop.permute.xlu2 %2264 }
0x2020   :  { %2624 = vmatmul.msk.f32.vlgmr.msrb.gmra.mxu3 %vm215_vm9, %v2265_v63 }
0x2099   :  { %v2255_v16 = vpop.f32.mrf.mxu2 }
0x209a   :  { %v2259_v47 = vrot.slane %v2255_v16, 4 }
0x209c   :  { %v2261_v17 = vadd.f32 %v2259_v47, %v3762_v58 }
0x209e   :  { %2871 = vtanh.f32 %v2261_v17  ;;  %v2625_v21 = vmul.f32 -1.442695, %v2261_v17 }
0x20a3   :  { %v2285_v37 = vpop.f32.mrf.mxu3 }
0x20a4   :  { %v2872_v34 = vpop.eup %2871  ;;  %v2289_v48 = vrot.slane %v2285_v37, 6 }
0x20a5   :  { %2337 = vrot.lane.b32.xlu0 %v2872_v34, %s3117_s4 }
0x20a6   :  { %v2291_v3 = vadd.f32 %v2289_v48, %v3623_v12 }
0x20a8   :  { %2873 = vtanh.f32 %v2291_v3  ;;  %v2626_v59 = vmul.f32 -1.442695, %v2291_v3 }
0x20a9   :  { %2875 = vpow2.f32 %v2625_v21 }
0x20aa   :  { %2877 = vpow2.f32 %v2626_v59 }
0x20ae   :  { %v2874_v43 = vpop.eup %2873 }
0x20af   :  { %2357 = vrot.lane.b32.xlu1 %v2874_v43, %s3117_s4  ;;  %v2876_v0 = vpop.eup %2875 }
0x20b0   :  { %v2295_v60 = vadd.f32 1.0, %v2876_v0  ;;  %v2878_v23 = vpop.eup %2877 }
0x20b1   :  { %v2314_v15 = vadd.f32 1.0, %v2878_v23 }
0x20b2   :  { %2879 = vrcp.f32 %v2295_v60  ;;  %v2307_v11 = vand.u32 2147483648, %v2295_v60  ;;  %vm2301_vm8 = vweird.f32 %v2295_v60  ;;  %v2305_v27 = vand.u32 2147483647, %v2295_v60 }
0x20b3   :  { %2881 = vrcp.f32 %v2314_v15  ;;  %v2326_v51 = vand.u32 2147483648, %v2314_v15  ;;  %vm2320_vm15 = vweird.f32 %v2314_v15  ;;  %v2324_v52 = vand.u32 2147483647, %v2314_v15 }
0x20b4   :  { %v2308_v20 = vor.u32 1.1754944e-38, %v2307_v11  ;;  %vm2306_vm13 = vcmp.eq.f32.partialorder %v2305_v27, 8.507059e+37 }
0x20b5   :  { %v2327_v26 = vor.u32 1.1754944e-38, %v2326_v51  ;;  %vm2325_vm2 = vcmp.eq.f32.partialorder %v2324_v52, 8.507059e+37 }
0x20b8   :  { %v2880_v6 = vpop.eup %2879 }
0x20b9   :  { %v2297_v32 = vmul.f32 %v2880_v6, %v2295_v60  ;;  %v2882_v35 = vpop.eup %2881  ;;  %vm2302_vm7 = vweird.f32 %v2880_v6 }
0x20ba   :  { %v2316_v4 = vmul.f32 %v2882_v35, %v2314_v15  ;;  %vm2303_vm10 = vmor %vm2301_vm8, %vm2302_vm7  ;;  %vm2321_vm14 = vweird.f32 %v2882_v35 }
0x20bb   :  { %v2298_v1 = vsub.f32 1.0, %v2297_v32  ;;  %vm2322_vm0 = vmor %vm2320_vm15, %vm2321_vm14 }
0x20bc   :  { %v2317_v10 = vsub.f32 1.0, %v2316_v4 }
0x20bd   :  { %v2299_v8 = vmul.f32 %v2880_v6, %v2298_v1 }
0x20be   :  { %v2318_v22 = vmul.f32 %v2882_v35, %v2317_v10 }
0x20bf   :  { %v2300_v7 = vadd.f32 %v2880_v6, %v2299_v8 }
0x20c0   :  { %v2319_v50 = vadd.f32 %v2882_v35, %v2318_v22 }
0x20c1   :  { %v2304_v42 = vsel %vm2303_vm10, %v2880_v6, %v2300_v7 }
0x20c2   :  { %v2309_v49 = vsel %vm2306_vm13, %v2308_v20, %v2304_v42  ;;  %v2323_v30 = vsel %vm2322_vm0, %v2882_v35, %v2319_v50 }
0x20c3   :  { %v2328_v46 = vsel %vm2325_vm2, %v2327_v26, %v2323_v30  ;;  %v2335_v41 = vmul.f32 %v2333_v13, %v2309_v49  ;;  %v2518_v13 = vsel %vm1306_vm11, %v3753_v54, %v3716_v28 }
0x20c4   :  { %v2355_v33 = vmul.f32 %v2353_v45, %v2328_v46 }
0x2117   :  { %v2338_v38 = vpop.permute.xlu0 %2337 }
0x2118   :  { %v2340_v18 = vmul.f32 %v2338_v38, %v2309_v49 }
0x211a   :  { %2342 = vrot.lane.b32.xlu2 %v2340_v18, %s3117_s4 }
0x2121   :  { %v2358_v53 = vpop.permute.xlu1 %2357 }
0x2122   :  { %v2360_v55 = vmul.f32 %v2358_v53, %v2328_v46 }
0x2124   :  { %2362 = vrot.lane.b32.xlu0 %v2360_v55, %s3117_s4 }
0x2174   :  { %v2343_v61 = vpop.permute.xlu2 %2342 }
0x2175   :  { %v3823_v5 = vadd.f32 %v2343_v61, %v2335_v41  ;;  %v2519_v41 = vsel %vm1308_vm12, %v2518_v13, %v3679_v9 }
0x2176   :  { %v2520_v61 = vsel %vm1310_vm5, %v2519_v41, %v3645_v62 }
0x2177   :  { %2883 = vtanh.f32 %v3823_v5 }
0x217d   :  { %v2884_v19 = vpop.eup %2883 }
0x217e   :  { %2348 = vrot.lane.b32.xlu1 %v2884_v19, %s3117_s4  ;;  %v2470_v19 = vrot.slane %v3823_v5, 6 }
0x2196   :  { %v2363_v2 = vpop.permute.xlu0 %2362 }
0x2197   :  { %v3828_v56 = vadd.f32 %v2363_v2, %v2355_v33 }
0x2199   :  { %2885 = vtanh.f32 %v3828_v56 }
0x219f   :  { %v2886_v39 = vpop.eup %2885 }
0x21a0   :  { %2368 = vrot.lane.b32.xlu2 %v2886_v39, %s3117_s4 }
0x21f0   :  { %v2349_v57 = vpop.permute.xlu1 %2348 }
0x21f1   :  { %v2351_v36 = vmul.f32 %v2349_v57, %v2309_v49 }
0x21f3   :  { %v2373_v63 = vrot.slane %v2351_v36, 4  ;;  %v3836_v16 = vsel %vm1308_vm12, %v2512_v40, %v2351_v36 }
0x21f5   :  { %2374 = vrot.lane.b32.xlu0 %v2373_v63, %s3118_s15 }
0x21fa   :  { %v2369_v31 = vpop.permute.xlu2 %2368 }
0x21fb   :  { %v3839_v47 = vmul.f32 %v2369_v31, %v2328_v46 }
0x21fd   :  { %v2403_v17 = vrot.slane %v3839_v47, 2 }
0x21ff   :  { %2404 = vrot.lane.b32.xlu1 %v2403_v17, %s3118_s15 }
0x2267   :  { %v2375_v37 = vpop.permute.xlu0 %2374 }
0x2268   :  { %2627 = vmatmul.msk.f32.vlgmr.msrb.gmra.mxu0 %vm215_vm9, %v2375_v37 }
0x2271   :  { %v2405_v34 = vpop.permute.xlu1 %2404 }
0x2272   :  { %2628 = vmatmul.msk.f32.vlgmr.msrb.gmra.mxu1 %vm215_vm9, %v2405_v34 }
0x22e5   :  { %v2395_v44 = vpop.f32.mrf.mxu0 }
0x22e6   :  { %v2399_v29 = vrot.slane %v2395_v44, 2 }
0x22e8   :  { %v2401_v48 = vadd.f32 %v2399_v29, %v3762_v58 }
0x22ea   :  { %2887 = vtanh.f32 %v2401_v48  ;;  %v2629_v6 = vmul.f32 -1.442695, %v2401_v48 }
0x22ef   :  { %v2425_v3 = vpop.f32.mrf.mxu1 }
0x22f0   :  { %v2888_v43 = vpop.eup %2887  ;;  %v2428_v21 = vadd.f32 %v2425_v3, %v3623_v12 }
0x22f1   :  { %2474 = vrot.lane.b32.xlu0 %v2888_v43, %s3117_s4 }
0x22f2   :  { %2889 = vtanh.f32 %v2428_v21  ;;  %v2630_v59 = vmul.f32 -1.442695, %v2428_v21 }
0x22f4   :  { %2891 = vpow2.f32 %v2630_v59 }
0x22f8   :  { %v2890_v0 = vpop.eup %2889 }
0x22f9   :  { %2494 = vrot.lane.b32.xlu2 %v2890_v0, %s3117_s4 }
0x22fa   :  { %v2892_v60 = vpop.eup %2891 }
0x22fb   :  { %v2451_v23 = vadd.f32 1.0, %v2892_v60 }
0x22fd   :  { %2893 = vrcp.f32 %v2451_v23  ;;  %v2463_v7 = vand.u32 2147483648, %v2451_v23  ;;  %vm2457_vm4 = vweird.f32 %v2451_v23  ;;  %v2461_v11 = vand.u32 2147483647, %v2451_v23 }
0x22fe   :  { %2895 = vpow2.f32 %v2629_v6 }
0x22ff   :  { %v2464_v42 = vor.u32 1.1754944e-38, %v2463_v7  ;;  %vm2462_vm7 = vcmp.eq.f32.partialorder %v2461_v11, 8.507059e+37 }
0x2303   :  { %v2894_v15 = vpop.eup %2893 }
0x2304   :  { %v2896_v58 = vpop.eup %2895  ;;  %v2453_v32 = vmul.f32 %v2894_v15, %v2451_v23  ;;  %vm2458_vm3 = vweird.f32 %v2894_v15 }
0x2305   :  { %v2432_v1 = vadd.f32 1.0, %v2896_v58  ;;  %vm2459_vm6 = vmor %vm2457_vm4, %vm2458_vm3 }
0x2306   :  { %v2454_v35 = vsub.f32 1.0, %v2453_v32 }
0x2307   :  { %2897 = vrcp.f32 %v2432_v1  ;;  %v2444_v51 = vand.u32 2147483648, %v2432_v1  ;;  %vm2438_vm10 = vweird.f32 %v2432_v1  ;;  %v2442_v52 = vand.u32 2147483647, %v2432_v1 }
0x2308   :  { %v2455_v12 = vmul.f32 %v2894_v15, %v2454_v35 }
0x2309   :  { %v2445_v26 = vor.u32 1.1754944e-38, %v2444_v51  ;;  %vm2443_vm14 = vcmp.eq.f32.partialorder %v2442_v52, 8.507059e+37 }
0x230a   :  { %v2456_v8 = vadd.f32 %v2894_v15, %v2455_v12 }
0x230c   :  { %v2460_v27 = vsel %vm2459_vm6, %v2894_v15, %v2456_v8 }
0x230d   :  { %v2898_v4 = vpop.eup %2897  ;;  %v2465_v22 = vsel %vm2462_vm7, %v2464_v42, %v2460_v27 }
0x230e   :  { %v2434_v10 = vmul.f32 %v2898_v4, %v2432_v1  ;;  %vm2439_vm8 = vweird.f32 %v2898_v4 }
0x230f   :  { %vm2440_vm13 = vmor %vm2438_vm10, %vm2439_vm8 }
0x2310   :  { %v2435_v49 = vsub.f32 1.0, %v2434_v10 }
0x2312   :  { %v2436_v18 = vmul.f32 %v2898_v4, %v2435_v49 }
0x2314   :  { %v2437_v50 = vadd.f32 %v2898_v4, %v2436_v18 }
0x2316   :  { %v2441_v30 = vsel %vm2440_vm13, %v2898_v4, %v2437_v50 }
0x2317   :  { %v2446_v46 = vsel %vm2443_vm14, %v2445_v26, %v2441_v30 }
0x2318   :  { %v2472_v45 = vmul.f32 %v2470_v19, %v2446_v46 }
0x2353   :  { %v2495_v20 = vpop.permute.xlu2 %2494 }
0x2354   :  { %v2497_v38 = vmul.f32 %v2495_v20, %v2465_v22 }
0x2356   :  { %2499 = vrot.lane.b32.xlu1 %v2497_v38, %s3117_s4 }
0x2363   :  { %v2475_v53 = vpop.permute.xlu0 %2474 }
0x2364   :  { %v2477_v55 = vmul.f32 %v2475_v53, %v2446_v46 }
0x2366   :  { %2479 = vrot.lane.b32.xlu2 %v2477_v55, %s3117_s4 }
0x236e   :  { %2523 = vrot.lane.b32.xlu2 %v3750_v24, %s3118_s15  ;;  %v2490_v24 = vrot.slane %v3828_v56, 2 }
0x2370   :  { %v2492_v39 = vmul.f32 %v2490_v24, %v2465_v22 }
0x2376   :  { %2533 = vrot.lane.b32.xlu2 %v2520_v61, %s3119_s22 }
0x23c0   :  { %v2480_v33 = vpop.permute.xlu2 %2479 }
0x23c1   :  { %v2482_v2 = vadd.f32 %v2480_v33, %v2472_v45 }
0x23c3   :  { %2899 = vtanh.f32 %v2482_v2 }
0x23c8   :  { %v2500_v57 = vpop.permute.xlu1 %2499  ;;  %v2524_v37 = vpop.permute.xlu2 %2523 }
0x23c9   :  { %v2900_v36 = vpop.eup %2899  ;;  %v2502_v28 = vadd.f32 %v2500_v57, %v2492_v39 }
0x23ca   :  { %2485 = vrot.lane.b32.xlu1 %v2900_v36, %s3117_s4 }
0x23cb   :  { %2901 = vtanh.f32 %v2502_v28 }
0x23d0   :  { %v2534_v34 = vpop.permute.xlu2 %2533 }
0x23d1   :  { %v2902_v9 = vpop.eup %2901 }
0x23d2   :  { %2505 = vrot.lane.b32.xlu0 %v2902_v9, %s3117_s4 }
0x243c   :  { %v2486_v62 = vpop.permute.xlu1 %2485 }
0x243d   :  { %v2488_v54 = vmul.f32 %v2486_v62, %v2446_v46 }
0x243f   :  { %v2514_v5 = vsel %vm1310_vm5, %v3836_v16, %v2488_v54 }
0x2440   :  { %2525 = vrot.lane.b32.xlu0 %v2514_v5, %s3118_s15 }
0x2444   :  { %v2506_v40 = vpop.permute.xlu0 %2505 }
0x2445   :  { %v2508_v63 = vmul.f32 %v2506_v40, %v2465_v22 }
0x2447   :  { %v2515_v56 = vsel %vm1306_vm11, %v2508_v63, %v3839_v47 }
0x2448   :  { %v2516_v31 = vsel %vm1308_vm12, %v2515_v56, %v3810_v14 }
0x2449   :  { %v2517_v17 = vsel %vm1310_vm5, %v2516_v31, %v3784_v25 }
0x244a   :  { %2531 = vrot.lane.b32.xlu1 %v2517_v17, %s3119_s22 }
0x24b2   :  { %v2526_v44 = vpop.permute.xlu0 %2525 }
0x24b3   :  { %v2538_v16 = vsel %vm215_vm9, %v2526_v44, %v2534_v34 }
0x24b4   :  { %2540 = vst.msk [vmem:[#allocation14 + $0x8] sm:$0xff] %vm1369_vm1, %v2538_v16 }
0x24bc   :  { %v2532_v47 = vpop.permute.xlu1 %2531 }
0x24bd   :  { %v2537_v25 = vsel %vm215_vm9, %v2524_v37, %v2532_v47 }
0x24be   :  { %2539 = vst.msk [vmem:[#allocation14] sm:$0xff] %vm1369_vm1, %v2537_v25 }
0x24bf   :  { %2553 = dma.vmem_to_hbm [thread:$0]  %s2546_s27, 256, %s2548_s6, [#allocation4], %s3109_s23, %s3109_s23, %s3110_s24  }
0x24c0   :  { %3103 = dma.done.wait [#allocation4], 256  }
0x24c1   :  { %3104 = vsyncadd [#allocation4], 4294967040 }
0x24c2   :  { %2558 = vsyncpa [#allocation3], 1 }
0x24c3   :  { %2559 = vsyncpa [#allocation6], 1 }
0x24c4   :  { %2560 = vsyncpa [#allocation9], 1 }
0x24c5   :  { %2561 = vsyncpa [#allocation12], 1 }
0x24c6   :  { %2562 = vsyncpa [#allocation4], 1 }

</bundles_post_ra>
